<compile_context>
chip_gen: v7x
topology: tpu7x:2x2x1
jax: 0.10.0
libtpu: 0.0.40
codegen_flags: <defaults>
</compile_context>

<pallas_src>
import math
import functools

import jax
import jax.numpy as jnp
from jax.experimental import pallas as pl
from jax.experimental.pallas import tpu as pltpu

# ---- small, TPU-friendly hyper-parameters (scaled down from the original) ----
EMBED_DIM = 128          # original: 512
NUM_HEADS = 4
HEAD_DIM = EMBED_DIM // NUM_HEADS
HIDDEN_DIM = 128         # original: 256
NUM_LAYERS = 2           # original: 4
VOCAB_SIZE = 256         # original: 6062
MAX_SEQ_LEN = 64         # original: 700
LN_EPS = 1e-5            # PyTorch nn.LayerNorm default


def _layer_norm(x, gamma, beta):
    mean = jnp.mean(x, axis=-1, keepdims=True)
    var = jnp.mean(jnp.square(x - mean), axis=-1, keepdims=True)
    return (x - mean) * jax.lax.rsqrt(var + LN_EPS) * gamma + beta


# --------------------------- fused Pallas kernel ------------------------------

def fused_transformer_kernel(B, S,
                             tok_ref, embed_ref, pos_ref,
                             wqkv_ref, bqkv_ref, wo_ref, bo_ref,
                             ln1_g_ref, ln1_b_ref,
                             w1_ref, b1_ref, w2_ref, b2_ref,
                             ln2_g_ref, ln2_b_ref,
                             fc_w_ref, fc_b_ref,
                             out_ref,
                             h_ref):
    """One grid step == one transformer layer. Activation (B*S, E) lives in h_ref."""
    M = B * S
    E, H, D, V = EMBED_DIM, NUM_HEADS, HEAD_DIM, VOCAB_SIZE
    layer = pl.program_id(0)

    # ---- fused embedding gather (exact one-hot MXU matmul) + pos-enc add -----
    @pl.when(layer == 0)
    def _():
        ids = tok_ref[...]                                            # (M, 1) i32
        onehot = (ids == jax.lax.broadcasted_iota(jnp.int32, (M, V), 1)
                  ).astype(jnp.float32)                               # (M, V)
        x0 = jnp.dot(onehot, embed_ref[...],
                     preferred_element_type=jnp.float32)              # exact row gather
        x0 = (x0.reshape(B, S, E) + pos_ref[...][None, :, :]).reshape(M, E)
        h_ref[...] = x0

    x = h_ref[...]                                                    # (M, E) f32
    x_bf = x.astype(jnp.bfloat16)

    # ---- fused QKV projection: one (M,E)x(E,3E) MXU pass ---------------------
    qkv = (jnp.dot(x_bf, wqkv_ref[...], preferred_element_type=jnp.float32)
           + bqkv_ref[...])                                           # (M, 3E) f32
    scale = 1.0 / math.sqrt(D)
    q = qkv[:, 0 * E:1 * E] * scale                                   # lane-aligned slices
    k = qkv[:, 1 * E:2 * E]
    v = qkv[:, 2 * E:3 * E]

    # ---- attention: batch and heads folded into a single batched einsum ------
    def to_heads(t):
        return t.reshape(B, S, H, D).transpose(0, 2, 1, 3).reshape(B * H, S, D)

    qh = to_heads(q).astype(jnp.bfloat16)                             # (BH, S, D)
    kh = to_heads(k).astype(jnp.bfloat16)
    vh = to_heads(v).astype(jnp.bfloat16)

    scores = jnp.einsum('bqd,bkd->bqk', qh, kh,
                        preferred_element_type=jnp.float32)           # (BH, S, S) f32
    scores = scores - jnp.max(scores, axis=-1, keepdims=True)
    p = jnp.exp(scores)
    p = p * pl.reciprocal(jnp.sum(p, axis=-1, keepdims=True), approx=True)
    ctx = jnp.einsum('bqk,bkd->bqd', p.astype(jnp.bfloat16), vh,
                     preferred_element_type=jnp.float32)              # (BH, S, D)
    attn = ctx.reshape(B, H, S, D).transpose(0, 2, 1, 3).reshape(M, E)

    attn = (jnp.dot(attn.astype(jnp.bfloat16), wo_ref[...],
                    preferred_element_type=jnp.float32) + bo_ref[...])

    # dropout1 (p=0.5) -> identity in eval mode
    h1 = _layer_norm(x + attn, ln1_g_ref[...], ln1_b_ref[...])

    # ---- feed forward ---------------------------------------------------------
    ff = (jnp.dot(h1.astype(jnp.bfloat16), w1_ref[...],
                  preferred_element_type=jnp.float32) + b1_ref[...])
    ff = jnp.maximum(ff, 0.0)
    ff = (jnp.dot(ff.astype(jnp.bfloat16), w2_ref[...],
                  preferred_element_type=jnp.float32) + b2_ref[...])

    # dropout2 (p=0.5) -> identity in eval mode
    h2 = _layer_norm(h1 + ff, ln2_g_ref[...], ln2_b_ref[...])
    h_ref[...] = h2

    # ---- fused vocab projection on the last layer -----------------------------
    @pl.when(layer == pl.num_programs(0) - 1)
    def _():
        out_ref[...] = (jnp.dot(h2.astype(jnp.bfloat16), fc_w_ref[...],
                                preferred_element_type=jnp.float32)
                        + fc_b_ref[...])


# ------------------------------ wrapper ----------------------------------------

def run_fused_transformer(tokens, params, B, S):
    M, E, V, L = B * S, EMBED_DIM, VOCAB_SIZE, NUM_LAYERS
    stacked = params["stacked"]

    def layer_spec(arr):
        d1, d2 = arr.shape[1], arr.shape[2]
        return pl.BlockSpec((pl.Squeezed(), d1, d2), lambda l: (l, 0, 0))

    def full_spec(arr):
        return pl.BlockSpec(arr.shape, lambda l: (0, 0))

    weight_names = ("wqkv", "bqkv", "wo", "bo", "ln1_g", "ln1_b",
                    "w1", "b1", "w2", "b2", "ln2_g", "ln2_b")
    weights = [stacked[n] for n in weight_names]

    tok2d = tokens.reshape(M, 1).astype(jnp.int32)
    pos = params["pos_enc"][:S]                                       # (S, E) f32

    inputs = [tok2d, params["embed"], pos] + weights + [params["fc_w"], params["fc_b"]]
    in_specs = ([full_spec(tok2d), full_spec(params["embed"]), full_spec(pos)]
                + [layer_spec(w) for w in weights]
                + [full_spec(params["fc_w"]), full_spec(params["fc_b"])])

    kernel = functools.partial(fused_transformer_kernel, B, S)
    return pl.pallas_call(
        kernel,
        out_shape=jax.ShapeDtypeStruct((M, V), jnp.float32),
        grid=(L,),
        in_specs=in_specs,
        out_specs=pl.BlockSpec((M, V), lambda l: (0, 0)),
        scratch_shapes=[pltpu.VMEM((M, E), jnp.float32)],
        compiler_params=pltpu.CompilerParams(
            dimension_semantics=("arbitrary",),
            vmem_limit_bytes=64 * 1024 * 1024),
    )(*inputs)


# --------------------------- parameter init -----------------------------------

def make_positional_encoding():
    position = jnp.arange(MAX_SEQ_LEN, dtype=jnp.float32)[:, None]
    div_term = jnp.exp(jnp.arange(0, EMBED_DIM, 2, dtype=jnp.float32)
                       * -(math.log(10000.0) / EMBED_DIM))
    pe = jnp.zeros((MAX_SEQ_LEN, EMBED_DIM), jnp.float32)
    pe = pe.at[:, 0::2].set(jnp.sin(position * div_term))
    pe = pe.at[:, 1::2].set(jnp.cos(position * div_term))
    return pe


def init_params(key):
    def dense(k, n_in, n_out):
        return (jax.random.normal(k, (n_in, n_out), jnp.float32) * 0.02,
                jnp.zeros((1, n_out), jnp.float32))

    keys = jax.random.split(key, 2 + NUM_LAYERS)
    per_layer = {n: [] for n in ("wqkv", "bqkv", "wo", "bo", "ln1_g", "ln1_b",
                                 "w1", "b1", "w2", "b2", "ln2_g", "ln2_b")}
    for i in range(NUM_LAYERS):
        bk = jax.random.split(keys[1 + i], 6)
        wq, bq = dense(bk[0], EMBED_DIM, EMBED_DIM)
        wk, bkk = dense(bk[1], EMBED_DIM, EMBED_DIM)
        wv, bv = dense(bk[2], EMBED_DIM, EMBED_DIM)
        wo, bo = dense(bk[3], EMBED_DIM, EMBED_DIM)
        w1, b1 = dense(bk[4], EMBED_DIM, HIDDEN_DIM)
        w2, b2 = dense(bk[5], HIDDEN_DIM, EMBED_DIM)
        per_layer["wqkv"].append(jnp.concatenate([wq, wk, wv], axis=1))   # (E, 3E)
        per_layer["bqkv"].append(jnp.concatenate([bq, bkk, bv], axis=1))  # (1, 3E)
        per_layer["wo"].append(wo)
        per_layer["bo"].append(bo)
        per_layer["ln1_g"].append(jnp.ones((1, EMBED_DIM), jnp.float32))
        per_layer["ln1_b"].append(jnp.zeros((1, EMBED_DIM), jnp.float32))
        per_layer["w1"].append(w1)
        per_layer["b1"].append(b1)
        per_layer["w2"].append(w2)
        per_layer["b2"].append(b2)
        per_layer["ln2_g"].append(jnp.ones((1, EMBED_DIM), jnp.float32))
        per_layer["ln2_b"].append(jnp.zeros((1, EMBED_DIM), jnp.float32))

    bf16_names = {"wqkv", "wo", "w1", "w2"}   # MXU weights bf16; biases/LN/embed f32
    stacked = {}
    for name, arrs in per_layer.items():
        a = jnp.stack(arrs, axis=0)
        stacked[name] = a.astype(jnp.bfloat16) if name in bf16_names else a

    fc_w, fc_b = dense(keys[-1], EMBED_DIM, VOCAB_SIZE)
    return {
        "embed": jax.random.normal(keys[0], (VOCAB_SIZE, EMBED_DIM), jnp.float32) * 0.02,
        "pos_enc": make_positional_encoding(),
        "stacked": stacked,
        "fc_w": fc_w.astype(jnp.bfloat16),
        "fc_b": fc_b,
    }


# ------------------------------ full forward ----------------------------------

def transformer_forward(tokens, params):
    B, S = tokens.shape
    logits = run_fused_transformer(tokens, params, B, S)
    return logits.reshape(B, S, VOCAB_SIZE)


if __name__ == "__main__":
    key = jax.random.PRNGKey(0)
    pkey, tkey = jax.random.split(key)
    params = init_params(pkey)

    B, S = 2, 16
    tokens = jax.random.randint(tkey, (B, S), 0, VOCAB_SIZE, dtype=jnp.int32)

    logits = transformer_forward(tokens, params)
    logits = jax.block_until_ready(logits)

    assert logits.shape == (B, S, VOCAB_SIZE), logits.shape
    assert bool(jnp.all(jnp.isfinite(logits)))
    print("KERNEL_OK")
</pallas_src>

<mosaic_0001>
module attributes {stable_mosaic.version = 11 : i64} {
  func.func @fused_transformer_kernel(%arg0: i32, %arg1: memref<32x1xi32, #tpu.memory_space<vmem>>, %arg2: memref<256x128xf32, #tpu.memory_space<vmem>>, %arg3: memref<16x128xf32, #tpu.memory_space<vmem>>, %arg4: memref<1x128x384xbf16, #tpu.memory_space<vmem>>, %arg5: memref<1x1x384xf32, #tpu.memory_space<vmem>>, %arg6: memref<1x128x128xbf16, #tpu.memory_space<vmem>>, %arg7: memref<1x1x128xf32, #tpu.memory_space<vmem>>, %arg8: memref<1x1x128xf32, #tpu.memory_space<vmem>>, %arg9: memref<1x1x128xf32, #tpu.memory_space<vmem>>, %arg10: memref<1x128x128xbf16, #tpu.memory_space<vmem>>, %arg11: memref<1x1x128xf32, #tpu.memory_space<vmem>>, %arg12: memref<1x128x128xbf16, #tpu.memory_space<vmem>>, %arg13: memref<1x1x128xf32, #tpu.memory_space<vmem>>, %arg14: memref<1x1x128xf32, #tpu.memory_space<vmem>>, %arg15: memref<1x1x128xf32, #tpu.memory_space<vmem>>, %arg16: memref<128x256xbf16, #tpu.memory_space<vmem>>, %arg17: memref<1x256xf32, #tpu.memory_space<vmem>>, %arg18: memref<32x256xf32, #tpu.memory_space<vmem>>, %arg19: memref<32x128xf32, #tpu.memory_space<vmem>>) attributes {dimension_semantics = [#tpu.dimension_semantics<arbitrary>], iteration_bounds = array<i64: 2>, scalar_prefetch = 0 : i64, scratch_operands = 1 : i64, tpu.core_type = #tpu.core_type<tc>, window_params = [{pipeline_mode = #tpu.pipeline_mode<synchronous>, transform_indices = @transform_0, window_bounds = array<i64: 32, 1>}, {pipeline_mode = #tpu.pipeline_mode<synchronous>, transform_indices = @transform_1, window_bounds = array<i64: 256, 128>}, {pipeline_mode = #tpu.pipeline_mode<synchronous>, transform_indices = @transform_2, window_bounds = array<i64: 16, 128>}, {transform_indices = @transform_3, window_bounds = array<i64: 1, 128, 384>}, {transform_indices = @transform_4, window_bounds = array<i64: 1, 1, 384>}, {transform_indices = @transform_5, window_bounds = array<i64: 1, 128, 128>}, {transform_indices = @transform_6, window_bounds = array<i64: 1, 1, 128>}, {transform_indices = @transform_7, window_bounds = array<i64: 1, 1, 128>}, {transform_indices = @transform_8, window_bounds = array<i64: 1, 1, 128>}, {transform_indices = @transform_9, window_bounds = array<i64: 1, 128, 128>}, {transform_indices = @transform_10, window_bounds = array<i64: 1, 1, 128>}, {transform_indices = @transform_11, window_bounds = array<i64: 1, 128, 128>}, {transform_indices = @transform_12, window_bounds = array<i64: 1, 1, 128>}, {transform_indices = @transform_13, window_bounds = array<i64: 1, 1, 128>}, {transform_indices = @transform_14, window_bounds = array<i64: 1, 1, 128>}, {pipeline_mode = #tpu.pipeline_mode<synchronous>, transform_indices = @transform_15, window_bounds = array<i64: 128, 256>}, {pipeline_mode = #tpu.pipeline_mode<synchronous>, transform_indices = @transform_16, window_bounds = array<i64: 1, 256>}, {pipeline_mode = #tpu.pipeline_mode<synchronous>, transform_indices = @transform_17, window_bounds = array<i64: 32, 256>}]} {
    %c0_i32 = arith.constant 0 : i32
    %0 = arith.cmpi eq, %arg0, %c0_i32 : i32
    %1 = arith.extui %0 : i1 to i32
    %c0_i32_0 = arith.constant 0 : i32
    %2 = arith.cmpi ne, %1, %c0_i32_0 : i32
    scf.if %2 {
      %c0_60 = arith.constant 0 : index
      %c0_61 = arith.constant 0 : index
      %129 = vector.load %arg1[%c0_60, %c0_61] : memref<32x1xi32, #tpu.memory_space<vmem>>, vector<32x1xi32>
      %130 = tpu.iota {dimensions = array<i32: 1>} : vector<32x256xi32>
      %131 = vector.broadcast %129 : vector<32x1xi32> to vector<32x256xi32>
      %132 = arith.cmpi eq, %131, %130 : vector<32x256xi32>
      %133 = arith.extui %132 : vector<32x256xi1> to vector<32x256xi32>
      %134 = arith.sitofp %133 : vector<32x256xi32> to vector<32x256xf32>
      %c0_62 = arith.constant 0 : index
      %c0_63 = arith.constant 0 : index
      %135 = vector.load %arg2[%c0_62, %c0_63] : memref<256x128xf32, #tpu.memory_space<vmem>>, vector<256x128xf32>
      %cst_64 = arith.constant dense<0.000000e+00> : vector<32x128xf32>
      %136 = tpu.matmul %134, %135, %cst_64 {dimension_numbers = #tpu.dot_dimension_numbers<[1], [0], [0], [1], [0, 0, 1, 1], [], []>} : vector<32x256xf32>, vector<256x128xf32>, vector<32x128xf32> -> vector<32x128xf32>
      %137 = vector.shape_cast %136 : vector<32x128xf32> to vector<2x16x128xf32>
      %c0_65 = arith.constant 0 : index
      %c0_66 = arith.constant 0 : index
      %138 = vector.load %arg3[%c0_65, %c0_66] : memref<16x128xf32, #tpu.memory_space<vmem>>, vector<16x128xf32>
      %139 = vector.shape_cast %138 : vector<16x128xf32> to vector<1x16x128xf32>
      %140 = vector.broadcast %139 : vector<1x16x128xf32> to vector<2x16x128xf32>
      %141 = arith.addf %137, %140 : vector<2x16x128xf32>
      %142 = vector.shape_cast %141 : vector<2x16x128xf32> to vector<32x128xf32>
      %c0_67 = arith.constant 0 : index
      %c0_68 = arith.constant 0 : index
      %143 = vector.load %arg19[%c0_67, %c0_68] : memref<32x128xf32, #tpu.memory_space<vmem>>, vector<32x128xf32>
      tpu.vector_store %arg19[%c0_67, %c0_68], %142 {strides = array<i32>} : memref<32x128xf32, #tpu.memory_space<vmem>>, vector<32x128xf32>,
    } else {
    }
    %c0 = arith.constant 0 : index
    %c0_1 = arith.constant 0 : index
    %3 = vector.load %arg19[%c0, %c0_1] : memref<32x128xf32, #tpu.memory_space<vmem>>, vector<32x128xf32>
    %4 = arith.truncf %3 : vector<32x128xf32> to vector<32x128xbf16>
    %c0_2 = arith.constant 0 : index
    %c0_3 = arith.constant 0 : index
    %c0_4 = arith.constant 0 : index
    %5 = vector.load %arg4[%c0_2, %c0_3, %c0_4] : memref<1x128x384xbf16, #tpu.memory_space<vmem>>, vector<1x128x384xbf16>
    %6 = vector.shape_cast %5 : vector<1x128x384xbf16> to vector<128x384xbf16>
    %cst = arith.constant dense<0.000000e+00> : vector<32x384xf32>
    %7 = tpu.matmul %4, %6, %cst {dimension_numbers = #tpu.dot_dimension_numbers<[1], [0], [0], [1], [0, 0, 1, 1], [], []>} : vector<32x128xbf16>, vector<128x384xbf16>, vector<32x384xf32> -> vector<32x384xf32>
    %c0_5 = arith.constant 0 : index
    %c0_6 = arith.constant 0 : index
    %c0_7 = arith.constant 0 : index
    %8 = vector.load %arg5[%c0_5, %c0_6, %c0_7] : memref<1x1x384xf32, #tpu.memory_space<vmem>>, vector<1x1x384xf32>
    %9 = vector.shape_cast %8 : vector<1x1x384xf32> to vector<1x384xf32>
    %10 = vector.broadcast %9 : vector<1x384xf32> to vector<32x384xf32>
    %11 = arith.addf %7, %10 : vector<32x384xf32>
    %12 = vector.extract_strided_slice %11 {offsets = [0, 0], sizes = [32, 128], strides = [1, 1]} : vector<32x384xf32> to vector<32x128xf32>
    %cst_8 = arith.constant 0.176776692 : f32
    %13 = vector.broadcast %cst_8 : f32 to vector<32x128xf32>
    %14 = arith.mulf %12, %13 : vector<32x128xf32>
    %15 = vector.extract_strided_slice %11 {offsets = [0, 128], sizes = [32, 128], strides = [1, 1]} : vector<32x384xf32> to vector<32x128xf32>
    %16 = vector.extract_strided_slice %11 {offsets = [0, 256], sizes = [32, 128], strides = [1, 1]} : vector<32x384xf32> to vector<32x128xf32>
    %17 = vector.shape_cast %14 : vector<32x128xf32> to vector<2x16x4x32xf32>
    %18 = tpu.transpose %17, [0, 2, 1, 3] : vector<2x16x4x32xf32> -> vector<2x4x16x32xf32>
    %19 = vector.shape_cast %18 : vector<2x4x16x32xf32> to vector<8x16x32xf32>
    %20 = arith.truncf %19 : vector<8x16x32xf32> to vector<8x16x32xbf16>
    %21 = vector.shape_cast %15 : vector<32x128xf32> to vector<2x16x4x32xf32>
    %22 = tpu.transpose %21, [0, 2, 1, 3] : vector<2x16x4x32xf32> -> vector<2x4x16x32xf32>
    %23 = vector.shape_cast %22 : vector<2x4x16x32xf32> to vector<8x16x32xf32>
    %24 = arith.truncf %23 : vector<8x16x32xf32> to vector<8x16x32xbf16>
    %25 = vector.shape_cast %16 : vector<32x128xf32> to vector<2x16x4x32xf32>
    %26 = tpu.transpose %25, [0, 2, 1, 3] : vector<2x16x4x32xf32> -> vector<2x4x16x32xf32>
    %27 = vector.shape_cast %26 : vector<2x4x16x32xf32> to vector<8x16x32xf32>
    %28 = arith.truncf %27 : vector<8x16x32xf32> to vector<8x16x32xbf16>
    "tpu.trace_start"() <{level = 10 : i32, message = "bqd,bkd->bqk"}> : () -> ()
    %cst_9 = arith.constant dense<0.000000e+00> : vector<8x16x16xf32>
    %29 = tpu.matmul %20, %24, %cst_9 {dimension_numbers = #tpu.dot_dimension_numbers<[2], [2], [1], [1], [0, 0, 0, 1, 1, 1], [0], [0]>} : vector<8x16x32xbf16>, vector<8x16x32xbf16>, vector<8x16x16xf32> -> vector<8x16x16xf32>
    "tpu.trace_stop"() : () -> ()
    %cst_10 = arith.constant dense<0xFF800000> : vector<8x16xf32>
    %30 = vector.multi_reduction <maximumf>, %29, %cst_10 [2] : vector<8x16x16xf32> to vector<8x16xf32>
    %31 = vector.shape_cast %30 : vector<8x16xf32> to vector<8x16x1xf32>
    %32 = vector.broadcast %31 : vector<8x16x1xf32> to vector<8x16x16xf32>
    %33 = arith.subf %29, %32 : vector<8x16x16xf32>
    %34 = math.exp %33 : vector<8x16x16xf32>
    %cst_11 = arith.constant dense<0.000000e+00> : vector<8x16xf32>
    %35 = vector.multi_reduction <add>, %34, %cst_11 [2] : vector<8x16x16xf32> to vector<8x16xf32>
    %36 = vector.shape_cast %35 : vector<8x16xf32> to vector<8x16x1xf32>
    %37 = tpu.reciprocal %36 {approx = true} : vector<8x16x1xf32> -> vector<8x16x1xf32>
    %38 = vector.broadcast %37 : vector<8x16x1xf32> to vector<8x16x16xf32>
    %39 = arith.mulf %34, %38 : vector<8x16x16xf32>
    %40 = arith.truncf %39 : vector<8x16x16xf32> to vector<8x16x16xbf16>
    "tpu.trace_start"() <{level = 10 : i32, message = "bqk,bkd->bqd"}> : () -> ()
    %cst_12 = arith.constant dense<0.000000e+00> : vector<8x16x32xf32>
    %41 = tpu.matmul %40, %28, %cst_12 {dimension_numbers = #tpu.dot_dimension_numbers<[2], [1], [1], [2], [0, 0, 0, 1, 1, 2], [0], [0]>} : vector<8x16x16xbf16>, vector<8x16x32xbf16>, vector<8x16x32xf32> -> vector<8x16x32xf32>
    "tpu.trace_stop"() : () -> ()
    %42 = vector.shape_cast %41 : vector<8x16x32xf32> to vector<2x4x16x32xf32>
    %43 = tpu.transpose %42, [0, 2, 1, 3] : vector<2x4x16x32xf32> -> vector<2x16x4x32xf32>
    %44 = vector.shape_cast %43 : vector<2x16x4x32xf32> to vector<32x128xf32>
    %45 = arith.truncf %44 : vector<32x128xf32> to vector<32x128xbf16>
    %c0_13 = arith.constant 0 : index
    %c0_14 = arith.constant 0 : index
    %c0_15 = arith.constant 0 : index
    %46 = vector.load %arg6[%c0_13, %c0_14, %c0_15] : memref<1x128x128xbf16, #tpu.memory_space<vmem>>, vector<1x128x128xbf16>
    %47 = vector.shape_cast %46 : vector<1x128x128xbf16> to vector<128x128xbf16>
    %cst_16 = arith.constant dense<0.000000e+00> : vector<32x128xf32>
    %48 = tpu.matmul %45, %47, %cst_16 {dimension_numbers = #tpu.dot_dimension_numbers<[1], [0], [0], [1], [0, 0, 1, 1], [], []>} : vector<32x128xbf16>, vector<128x128xbf16>, vector<32x128xf32> -> vector<32x128xf32>
    %c0_17 = arith.constant 0 : index
    %c0_18 = arith.constant 0 : index
    %c0_19 = arith.constant 0 : index
    %49 = vector.load %arg7[%c0_17, %c0_18, %c0_19] : memref<1x1x128xf32, #tpu.memory_space<vmem>>, vector<1x1x128xf32>
    %50 = vector.shape_cast %49 : vector<1x1x128xf32> to vector<1x128xf32>
    %51 = vector.broadcast %50 : vector<1x128xf32> to vector<32x128xf32>
    %52 = arith.addf %48, %51 : vector<32x128xf32>
    %53 = arith.addf %3, %52 : vector<32x128xf32>
    %c0_20 = arith.constant 0 : index
    %c0_21 = arith.constant 0 : index
    %c0_22 = arith.constant 0 : index
    %54 = vector.load %arg8[%c0_20, %c0_21, %c0_22] : memref<1x1x128xf32, #tpu.memory_space<vmem>>, vector<1x1x128xf32>
    %55 = vector.shape_cast %54 : vector<1x1x128xf32> to vector<1x128xf32>
    %c0_23 = arith.constant 0 : index
    %c0_24 = arith.constant 0 : index
    %c0_25 = arith.constant 0 : index
    %56 = vector.load %arg9[%c0_23, %c0_24, %c0_25] : memref<1x1x128xf32, #tpu.memory_space<vmem>>, vector<1x1x128xf32>
    %57 = vector.shape_cast %56 : vector<1x1x128xf32> to vector<1x128xf32>
    %cst_26 = arith.constant dense<0.000000e+00> : vector<32xf32>
    %58 = vector.multi_reduction <add>, %53, %cst_26 [1] : vector<32x128xf32> to vector<32xf32>
    %59 = vector.shape_cast %58 : vector<32xf32> to vector<32x1xf32>
    %cst_27 = arith.constant 1.280000e+02 : f32
    %60 = vector.broadcast %cst_27 : f32 to vector<32x1xf32>
    %61 = arith.divf %59, %60 : vector<32x1xf32>
    %62 = vector.broadcast %61 : vector<32x1xf32> to vector<32x128xf32>
    %63 = arith.subf %53, %62 : vector<32x128xf32>
    %64 = arith.mulf %63, %63 : vector<32x128xf32>
    %cst_28 = arith.constant dense<0.000000e+00> : vector<32xf32>
    %65 = vector.multi_reduction <add>, %64, %cst_28 [1] : vector<32x128xf32> to vector<32xf32>
    %66 = vector.shape_cast %65 : vector<32xf32> to vector<32x1xf32>
    %cst_29 = arith.constant 1.280000e+02 : f32
    %67 = vector.broadcast %cst_29 : f32 to vector<32x1xf32>
    %68 = arith.divf %66, %67 : vector<32x1xf32>
    %69 = vector.broadcast %61 : vector<32x1xf32> to vector<32x128xf32>
    %70 = arith.subf %53, %69 : vector<32x128xf32>
    %cst_30 = arith.constant 9.99999974E-6 : f32
    %71 = vector.broadcast %cst_30 : f32 to vector<32x1xf32>
    %72 = arith.addf %68, %71 : vector<32x1xf32>
    %73 = math.rsqrt %72 : vector<32x1xf32>
    %74 = vector.broadcast %73 : vector<32x1xf32> to vector<32x128xf32>
    %75 = arith.mulf %70, %74 : vector<32x128xf32>
    %76 = vector.broadcast %55 : vector<1x128xf32> to vector<32x128xf32>
    %77 = arith.mulf %75, %76 : vector<32x128xf32>
    %78 = vector.broadcast %57 : vector<1x128xf32> to vector<32x128xf32>
    %79 = arith.addf %77, %78 : vector<32x128xf32>
    %80 = arith.truncf %79 : vector<32x128xf32> to vector<32x128xbf16>
    %c0_31 = arith.constant 0 : index
    %c0_32 = arith.constant 0 : index
    %c0_33 = arith.constant 0 : index
    %81 = vector.load %arg10[%c0_31, %c0_32, %c0_33] : memref<1x128x128xbf16, #tpu.memory_space<vmem>>, vector<1x128x128xbf16>
    %82 = vector.shape_cast %81 : vector<1x128x128xbf16> to vector<128x128xbf16>
    %cst_34 = arith.constant dense<0.000000e+00> : vector<32x128xf32>
    %83 = tpu.matmul %80, %82, %cst_34 {dimension_numbers = #tpu.dot_dimension_numbers<[1], [0], [0], [1], [0, 0, 1, 1], [], []>} : vector<32x128xbf16>, vector<128x128xbf16>, vector<32x128xf32> -> vector<32x128xf32>
    %c0_35 = arith.constant 0 : index
    %c0_36 = arith.constant 0 : index
    %c0_37 = arith.constant 0 : index
    %84 = vector.load %arg11[%c0_35, %c0_36, %c0_37] : memref<1x1x128xf32, #tpu.memory_space<vmem>>, vector<1x1x128xf32>
    %85 = vector.shape_cast %84 : vector<1x1x128xf32> to vector<1x128xf32>
    %86 = vector.broadcast %85 : vector<1x128xf32> to vector<32x128xf32>
    %87 = arith.addf %83, %86 : vector<32x128xf32>
    %cst_38 = arith.constant 0.000000e+00 : f32
    %88 = vector.broadcast %cst_38 : f32 to vector<32x128xf32>
    %89 = arith.maximumf %87, %88 : vector<32x128xf32>
    %90 = arith.truncf %89 : vector<32x128xf32> to vector<32x128xbf16>
    %c0_39 = arith.constant 0 : index
    %c0_40 = arith.constant 0 : index
    %c0_41 = arith.constant 0 : index
    %91 = vector.load %arg12[%c0_39, %c0_40, %c0_41] : memref<1x128x128xbf16, #tpu.memory_space<vmem>>, vector<1x128x128xbf16>
    %92 = vector.shape_cast %91 : vector<1x128x128xbf16> to vector<128x128xbf16>
    %cst_42 = arith.constant dense<0.000000e+00> : vector<32x128xf32>
    %93 = tpu.matmul %90, %92, %cst_42 {dimension_numbers = #tpu.dot_dimension_numbers<[1], [0], [0], [1], [0, 0, 1, 1], [], []>} : vector<32x128xbf16>, vector<128x128xbf16>, vector<32x128xf32> -> vector<32x128xf32>
    %c0_43 = arith.constant 0 : index
    %c0_44 = arith.constant 0 : index
    %c0_45 = arith.constant 0 : index
    %94 = vector.load %arg13[%c0_43, %c0_44, %c0_45] : memref<1x1x128xf32, #tpu.memory_space<vmem>>, vector<1x1x128xf32>
    %95 = vector.shape_cast %94 : vector<1x1x128xf32> to vector<1x128xf32>
    %96 = vector.broadcast %95 : vector<1x128xf32> to vector<32x128xf32>
    %97 = arith.addf %93, %96 : vector<32x128xf32>
    %98 = arith.addf %79, %97 : vector<32x128xf32>
    %c0_46 = arith.constant 0 : index
    %c0_47 = arith.constant 0 : index
    %c0_48 = arith.constant 0 : index
    %99 = vector.load %arg14[%c0_46, %c0_47, %c0_48] : memref<1x1x128xf32, #tpu.memory_space<vmem>>, vector<1x1x128xf32>
    %100 = vector.shape_cast %99 : vector<1x1x128xf32> to vector<1x128xf32>
    %c0_49 = arith.constant 0 : index
    %c0_50 = arith.constant 0 : index
    %c0_51 = arith.constant 0 : index
    %101 = vector.load %arg15[%c0_49, %c0_50, %c0_51] : memref<1x1x128xf32, #tpu.memory_space<vmem>>, vector<1x1x128xf32>
    %102 = vector.shape_cast %101 : vector<1x1x128xf32> to vector<1x128xf32>
    %cst_52 = arith.constant dense<0.000000e+00> : vector<32xf32>
    %103 = vector.multi_reduction <add>, %98, %cst_52 [1] : vector<32x128xf32> to vector<32xf32>
    %104 = vector.shape_cast %103 : vector<32xf32> to vector<32x1xf32>
    %cst_53 = arith.constant 1.280000e+02 : f32
    %105 = vector.broadcast %cst_53 : f32 to vector<32x1xf32>
    %106 = arith.divf %104, %105 : vector<32x1xf32>
    %107 = vector.broadcast %106 : vector<32x1xf32> to vector<32x128xf32>
    %108 = arith.subf %98, %107 : vector<32x128xf32>
    %109 = arith.mulf %108, %108 : vector<32x128xf32>
    %cst_54 = arith.constant dense<0.000000e+00> : vector<32xf32>
    %110 = vector.multi_reduction <add>, %109, %cst_54 [1] : vector<32x128xf32> to vector<32xf32>
    %111 = vector.shape_cast %110 : vector<32xf32> to vector<32x1xf32>
    %cst_55 = arith.constant 1.280000e+02 : f32
    %112 = vector.broadcast %cst_55 : f32 to vector<32x1xf32>
    %113 = arith.divf %111, %112 : vector<32x1xf32>
    %114 = vector.broadcast %106 : vector<32x1xf32> to vector<32x128xf32>
    %115 = arith.subf %98, %114 : vector<32x128xf32>
    %cst_56 = arith.constant 9.99999974E-6 : f32
    %116 = vector.broadcast %cst_56 : f32 to vector<32x1xf32>
    %117 = arith.addf %113, %116 : vector<32x1xf32>
    %118 = math.rsqrt %117 : vector<32x1xf32>
    %119 = vector.broadcast %118 : vector<32x1xf32> to vector<32x128xf32>
    %120 = arith.mulf %115, %119 : vector<32x128xf32>
    %121 = vector.broadcast %100 : vector<1x128xf32> to vector<32x128xf32>
    %122 = arith.mulf %120, %121 : vector<32x128xf32>
    %123 = vector.broadcast %102 : vector<1x128xf32> to vector<32x128xf32>
    %124 = arith.addf %122, %123 : vector<32x128xf32>
    %c0_57 = arith.constant 0 : index
    %c0_58 = arith.constant 0 : index
    %125 = vector.load %arg19[%c0_57, %c0_58] : memref<32x128xf32, #tpu.memory_space<vmem>>, vector<32x128xf32>
    tpu.vector_store %arg19[%c0_57, %c0_58], %124 {strides = array<i32>} : memref<32x128xf32, #tpu.memory_space<vmem>>, vector<32x128xf32>,
    %c1_i32 = arith.constant 1 : i32
    %126 = arith.cmpi eq, %arg0, %c1_i32 : i32
    %127 = arith.extui %126 : i1 to i32
    %c0_i32_59 = arith.constant 0 : i32
    %128 = arith.cmpi ne, %127, %c0_i32_59 : i32
    scf.if %128 {
      %129 = arith.truncf %124 : vector<32x128xf32> to vector<32x128xbf16>
      %c0_60 = arith.constant 0 : index
      %c0_61 = arith.constant 0 : index
      %130 = vector.load %arg16[%c0_60, %c0_61] : memref<128x256xbf16, #tpu.memory_space<vmem>>, vector<128x256xbf16>
      %cst_62 = arith.constant dense<0.000000e+00> : vector<32x256xf32>
      %131 = tpu.matmul %129, %130, %cst_62 {dimension_numbers = #tpu.dot_dimension_numbers<[1], [0], [0], [1], [0, 0, 1, 1], [], []>} : vector<32x128xbf16>, vector<128x256xbf16>, vector<32x256xf32> -> vector<32x256xf32>
      %c0_63 = arith.constant 0 : index
      %c0_64 = arith.constant 0 : index
      %132 = vector.load %arg17[%c0_63, %c0_64] : memref<1x256xf32, #tpu.memory_space<vmem>>, vector<1x256xf32>
      %133 = vector.broadcast %132 : vector<1x256xf32> to vector<32x256xf32>
      %134 = arith.addf %131, %133 : vector<32x256xf32>
      %c0_65 = arith.constant 0 : index
      %c0_66 = arith.constant 0 : index
      %135 = vector.load %arg18[%c0_65, %c0_66] : memref<32x256xf32, #tpu.memory_space<vmem>>, vector<32x256xf32>
      tpu.vector_store %arg18[%c0_65, %c0_66], %134 {strides = array<i32>} : memref<32x256xf32, #tpu.memory_space<vmem>>, vector<32x256xf32>,
    } else {
    }
    return
  }
  func.func @transform_0(%arg0: i32) -> (i32, i32) {
    %c0_i32 = arith.constant 0 : i32
    %c0_i32_0 = arith.constant 0 : i32
    %c0_i32_1 = arith.constant 0 : i32
    return %c0_i32, %c0_i32_0 : i32, i32
  }
  func.func @transform_1(%arg0: i32) -> (i32, i32) {
    %c0_i32 = arith.constant 0 : i32
    %c0_i32_0 = arith.constant 0 : i32
    %c0_i32_1 = arith.constant 0 : i32
    return %c0_i32, %c0_i32_0 : i32, i32
  }
  func.func @transform_2(%arg0: i32) -> (i32, i32) {
    %c0_i32 = arith.constant 0 : i32
    %c0_i32_0 = arith.constant 0 : i32
    %c0_i32_1 = arith.constant 0 : i32
    return %c0_i32, %c0_i32_0 : i32, i32
  }
  func.func @transform_3(%arg0: i32) -> (i32, i32, i32) {
    %c0_i32 = arith.constant 0 : i32
    %c0_i32_0 = arith.constant 0 : i32
    %c0_i32_1 = arith.constant 0 : i32
    return %arg0, %c0_i32, %c0_i32_0 : i32, i32, i32
  }
  func.func @transform_4(%arg0: i32) -> (i32, i32, i32) {
    %c0_i32 = arith.constant 0 : i32
    %c0_i32_0 = arith.constant 0 : i32
    %c0_i32_1 = arith.constant 0 : i32
    return %arg0, %c0_i32, %c0_i32_0 : i32, i32, i32
  }
  func.func @transform_5(%arg0: i32) -> (i32, i32, i32) {
    %c0_i32 = arith.constant 0 : i32
    %c0_i32_0 = arith.constant 0 : i32
    %c0_i32_1 = arith.constant 0 : i32
    return %arg0, %c0_i32, %c0_i32_0 : i32, i32, i32
  }
  func.func @transform_6(%arg0: i32) -> (i32, i32, i32) {
    %c0_i32 = arith.constant 0 : i32
    %c0_i32_0 = arith.constant 0 : i32
    %c0_i32_1 = arith.constant 0 : i32
    return %arg0, %c0_i32, %c0_i32_0 : i32, i32, i32
  }
  func.func @transform_7(%arg0: i32) -> (i32, i32, i32) {
    %c0_i32 = arith.constant 0 : i32
    %c0_i32_0 = arith.constant 0 : i32
    %c0_i32_1 = arith.constant 0 : i32
    return %arg0, %c0_i32, %c0_i32_0 : i32, i32, i32
  }
  func.func @transform_8(%arg0: i32) -> (i32, i32, i32) {
    %c0_i32 = arith.constant 0 : i32
    %c0_i32_0 = arith.constant 0 : i32
    %c0_i32_1 = arith.constant 0 : i32
    return %arg0, %c0_i32, %c0_i32_0 : i32, i32, i32
  }
  func.func @transform_9(%arg0: i32) -> (i32, i32, i32) {
    %c0_i32 = arith.constant 0 : i32
    %c0_i32_0 = arith.constant 0 : i32
    %c0_i32_1 = arith.constant 0 : i32
    return %arg0, %c0_i32, %c0_i32_0 : i32, i32, i32
  }
  func.func @transform_10(%arg0: i32) -> (i32, i32, i32) {
    %c0_i32 = arith.constant 0 : i32
    %c0_i32_0 = arith.constant 0 : i32
    %c0_i32_1 = arith.constant 0 : i32
    return %arg0, %c0_i32, %c0_i32_0 : i32, i32, i32
  }
  func.func @transform_11(%arg0: i32) -> (i32, i32, i32) {
    %c0_i32 = arith.constant 0 : i32
    %c0_i32_0 = arith.constant 0 : i32
    %c0_i32_1 = arith.constant 0 : i32
    return %arg0, %c0_i32, %c0_i32_0 : i32, i32, i32
  }
  func.func @transform_12(%arg0: i32) -> (i32, i32, i32) {
    %c0_i32 = arith.constant 0 : i32
    %c0_i32_0 = arith.constant 0 : i32
    %c0_i32_1 = arith.constant 0 : i32
    return %arg0, %c0_i32, %c0_i32_0 : i32, i32, i32
  }
  func.func @transform_13(%arg0: i32) -> (i32, i32, i32) {
    %c0_i32 = arith.constant 0 : i32
    %c0_i32_0 = arith.constant 0 : i32
    %c0_i32_1 = arith.constant 0 : i32
    return %arg0, %c0_i32, %c0_i32_0 : i32, i32, i32
  }
  func.func @transform_14(%arg0: i32) -> (i32, i32, i32) {
    %c0_i32 = arith.constant 0 : i32
    %c0_i32_0 = arith.constant 0 : i32
    %c0_i32_1 = arith.constant 0 : i32
    return %arg0, %c0_i32, %c0_i32_0 : i32, i32, i32
  }
  func.func @transform_15(%arg0: i32) -> (i32, i32) {
    %c0_i32 = arith.constant 0 : i32
    %c0_i32_0 = arith.constant 0 : i32
    %c0_i32_1 = arith.constant 0 : i32
    return %c0_i32, %c0_i32_0 : i32, i32
  }
  func.func @transform_16(%arg0: i32) -> (i32, i32) {
    %c0_i32 = arith.constant 0 : i32
    %c0_i32_0 = arith.constant 0 : i32
    %c0_i32_1 = arith.constant 0 : i32
    return %c0_i32, %c0_i32_0 : i32, i32
  }
  func.func @transform_17(%arg0: i32) -> (i32, i32) {
    %c0_i32 = arith.constant 0 : i32
    %c0_i32_0 = arith.constant 0 : i32
    %c0_i32_1 = arith.constant 0 : i32
    return %c0_i32, %c0_i32_0 : i32, i32
  }
}

</mosaic_0001>

<bundles_post_ra>
// kernel: tpu_custom_call.1
= control target key start
LH: loop header
LB: loop body
LE: loop exit
PB: predicated region body
PF: predicated region fallthrough
CT: control target
= control target key end

     0   :  { %s9085_s0 = inlined_call_operand.hbm [shape: s32[32,1], index: 0, kind: input, shape index: {}]   ;;  %s9086_s1 = inlined_call_operand.hbm [shape: f32[256,128], index: 1, kind: input, shape index: {}]   ;;  %s9087_s2 = inlined_call_operand.hbm [shape: f32[16,128], index: 2, kind: input, shape index: {}]   ;;  %s9088_s3 = inlined_call_operand.hbm [shape: bf16[2,128,384], index: 3, kind: input, shape index: {}]   ;;  %s9089_s4 = inlined_call_operand.hbm [shape: f32[2,1,384], index: 4, kind: input, shape index: {}]   ;;  %s9090_s5 = inlined_call_operand.hbm [shape: bf16[2,128,128], index: 5, kind: input, shape index: {}]   ;;  %s9091_s6 = inlined_call_operand.hbm [shape: f32[2,1,128], index: 6, kind: input, shape index: {}]   ;;  %s9092_s7 = inlined_call_operand.hbm [shape: f32[2,1,128], index: 7, kind: input, shape index: {}]   ;;  %s9093_s8 = inlined_call_operand.hbm [shape: f32[2,1,128], index: 8, kind: input, shape index: {}]   ;;  %s9094_s9 = inlined_call_operand.hbm [shape: bf16[2,128,128], index: 9, kind: input, shape index: {}]   ;;  %s9095_s10 = inlined_call_operand.hbm [shape: f32[2,1,128], index: 10, kind: input, shape index: {}]   ;;  %s9096_s11 = inlined_call_operand.hbm [shape: bf16[2,128,128], index: 11, kind: input, shape index: {}]   ;;  %s9097_s12 = inlined_call_operand.hbm [shape: f32[2,1,128], index: 12, kind: input, shape index: {}]   ;;  %s9098_s13 = inlined_call_operand.hbm [shape: f32[2,1,128], index: 13, kind: input, shape index: {}]   ;;  %s9099_s14 = inlined_call_operand.hbm [shape: f32[2,1,128], index: 14, kind: input, shape index: {}]   ;;  %s9100_s15 = inlined_call_operand.hbm [shape: bf16[128,256], index: 15, kind: input, shape index: {}]   ;;  %s9101_s16 = inlined_call_operand.hbm [shape: f32[1,256], index: 16, kind: input, shape index: {}]   ;;  %s9102_s17 = inlined_call_operand.hbm [shape: f32[32,256], index: 17, kind: output, shape index: {}]  }
   0x1   :  { %9149 = sst [smem:[#allocation48_spill]] %s9085_s0 }
   0x2   :  { %9150 = sst [smem:[#allocation49_spill]] %s9086_s1 }
   0x3   :  { %9151 = sst [smem:[#allocation50_spill]] %s9087_s2 }
   0x4   :  { %9152 = sst [smem:[#allocation51_spill]] %s9088_s3 }
   0x5   :  { %9153 = sst [smem:[#allocation52_spill]] %s9089_s4 }
   0x6   :  { %9154 = sst [smem:[#allocation53_spill]] %s9090_s5 }
   0x7   :  { %9155 = sst [smem:[#allocation54_spill]] %s9091_s6 }
   0x8   :  { %9156 = sst [smem:[#allocation55_spill]] %s9092_s7 }
   0x9   :  { %9157 = sst [smem:[#allocation56_spill]] %s9093_s8 }
   0xa   :  { %9158 = sst [smem:[#allocation57_spill]] %s9095_s10 }
   0xb   :  { %9159 = sst [smem:[#allocation58_spill]] %s9097_s12 }
   0xc   :  { %9160 = sst [smem:[#allocation59_spill]] %s9099_s14 }
   0xd   :  { %9161 = sst [smem:[#allocation60_spill]] %s9102_s17 }
   0xe   :  { %22 = vsyncpa [#allocation4], 0 }
   0xf   :  { %23 = vsyncpa [#allocation7], 0 }
  0x10   :  { %24 = vsyncpa [#allocation10], 0 }
  0x11   :  { %26 = vsyncpa [#allocation10 + $0x1], 0 }
  0x12   :  { %27 = vsyncpa [#allocation13], 0 }
  0x13   :  { %29 = vsyncpa [#allocation13 + $0x1], 0 }
  0x14   :  { %30 = vsyncpa [#allocation16], 0 }
  0x15   :  { %32 = vsyncpa [#allocation16 + $0x1], 0 }
  0x16   :  { %33 = vsyncpa [#allocation19], 0 }
  0x17   :  { %35 = vsyncpa [#allocation19 + $0x1], 0 }
  0x18   :  { %36 = vsyncpa [#allocation22], 0 }
  0x19   :  { %38 = vsyncpa [#allocation22 + $0x1], 0 }
  0x1a   :  { %39 = vsyncpa [#allocation25], 0 }
  0x1b   :  { %41 = vsyncpa [#allocation25 + $0x1], 0 }
  0x1c   :  { %42 = vsyncpa [#allocation28], 0 }
  0x1d   :  { %43 = vsyncpa [#allocation5], 0  ;;  %s7410_s24 = smov 0   ;;  %s7412_s25 = smov 0  }
  0x1e   :  { %s7414_s26 = smov 0   ;;  %s7416_s27 = smov 0  }
  0x1f LB: > { %9162 = sst [smem:[#allocation41_spill]] %s7273_s25  ;;  %s7429_s28 = sadd.s32 4294967295, %s7281_s27   ;;  %s7281_s27 = sphi %s7416_s27, %s9227_s27   ;;  %s7277_s26 = sphi %s7414_s26, %s9230_s26   ;;  %s7273_s25 = sphi %s7412_s25, %s9229_s25   ;;  %s7269_s24 = sphi %s7410_s24, %s9228_s24  }
  0x20   : > { %9163 = sst [smem:[#allocation42_spill]] %s7277_s26  ;;  %s7432_s29 = sadd.s32 1, %s7281_s27  }
  0x21   : > { %9164 = sst [smem:[#allocation43_spill]] %s7429_s28  ;;  %s116_s0 = ssub.s32 %s7281_s27, %s7432_s29 }
  0x22   : > { %9165 = sst [smem:[#allocation44_spill]] %s7432_s29  ;;  %s119_s30 = sadd.s32 1, %s7277_s26 }
  0x23   : > { %p117_p0 = scmp.eq.s32.totalorder %s116_s0, 0  ;;  %p126_p1 = scmp.ne.s32.totalorder %s7277_s26, %s7273_s25 }
  0x24   : > { %p127_p2 = scmp.eq.s32.totalorder %s7281_s27, 0  ;;  %p132_p3 = scmp.ne.s32.totalorder %s7273_s25, %s7269_s24 }
  0x25   : > { %s7442_s18 = scalar_select %p117_p0, %s7277_s26, %s119_s30  }
  0x26   : > { %p7444_p4 = por %p127_p2, %p126_p1  ;;  %p9112_p5 = scmp.eq.s32.totalorder %s7429_s28, 0 }
  0x27   : > { %9166 = sst [smem:[#allocation45_spill]] %s7442_s18  ;;  %p5778_p6 = scmp.ge.s32.totalorder %s7281_s27, 1 }
  0x28   : > { %p492_p7 = scmp.lt.s32.totalorder %s7281_s27, 3  ;;  %p7453_p8 = por %p9112_p5, %p132_p3 }
  0x29   : > { %s7283_s21 = smov [#allocation6]   ;;  %p6424_p13 = scmp.lt.s32.totalorder %s7281_s27, 2 }
  0x2a   : > { %s9168_s1 = scalar_select %p7453_p8, 1, 0 }
  0x2b   : > { %p7458_p10 = pnand %p5778_p6, %p492_p7  ;;  %s517_s22 = sshll.u32 %s7283_s21, 4  ;;  %s518_s22 = int_to_ptr.vmem [resolvable:$true] %s517_s22 }
  0x2c   : > { %9169 = sst [smem:[#allocation46_spill]] %s9168_s1  ;;  %s7472_s24 = sand.u32 1, %s7277_s26  }
  0x2d   : > { %s9170_s20 = scalar_select %p7458_p10, 1, 0 }
  0x2e   : > { %p6366_p11 = pneg %p7458_p10  ;;  %p7476_p0 = pnand %p6424_p13, %p7444_p4 }
  0x2f   : > { %9171 = sst [smem:[#allocation47_spill]] %s9170_s20  ;;  %s9174_s29 = sld [smem:[#allocation49_spill]] }
  0x30   : > { %p7466_p12 = pnand %p6366_p11, %p9112_p5 }
  0x31   : > { %s9173_s0 = scalar_select %p7476_p0, 1, 0 }
  0x32   : > { %s9172_s23 = scalar_select %p7466_p12, 1, 0 }
  0x33   : > { %p7488_p2 = pneg %p7466_p12 }
  0x35   : > { %s6685_s17 = scalar_lea.hbm %s9174_s29, 4096 }
  0x36   : > { %p6686_p1 = scmp.ne.s32.totalorder %s9174_s29, %s6685_s17  ;;  %p6692_p6 = scmp.lt.u32.totalorder %s6685_s17, %s9174_s29 }
  0x37   : > { %s9175_s25 = scalar_select %p7488_p2, 1, 0 }
  0x38   : > { %p6688_p3 = pnand %p7488_p2, %p6686_p1 }
  0x3a   : > { %p6689_p4 = pneg %p6688_p3 }
  0x3c   : > { %p6694_p7 = pnand %p6692_p6, %p6689_p4 }
  0x3e   : > { %6697 = shalt.err (!%p6694_p7)
}
  0x3f   : > { %s6698_s18 = scalar_lea.vmem %s518_s22, 4096  ;;  %p6706_p5 = scmp.lt.s32.totalorder %s518_s22, %s518_s22 }
  0x40   : > { %p6699_p11 = scmp.ne.s32.totalorder %s518_s22, %s6698_s18  ;;  %p6707_p8 = scmp.lt.s32.totalorder %s6698_s18, %s6698_s18 }
  0x42   : > { %p6701_p13 = pnand %p6699_p11, %p7488_p2  ;;  %p6708_p10 = por %p6707_p8, %p6706_p5 }
  0x44   : > { %p6702_p9 = pneg %p6701_p13 }
  0x46   : > { %p6709_p0 = pnand %p6708_p10, %p6702_p9 }
  0x48   : > { %6712 = shalt.err (!%p6709_p0)
}
  0x49   : > { %s9129_s1 = smov 128   ;;  %s9132_s30 = smov 8  }
  0x4a   : > { %6372 = dma.hbm_to_vmem [thread:$0]  (!%p7466_p12), %s9174_s29, 4096, %s518_s22, [#allocation7], %s9129_s1, %s9129_s1, %s9132_s30  }
  0x4b   : > { %s7286_s21 = smov [#allocation27]   ;;  %s7508_s18 = sand.u32 1, %s7281_s27  }
  0x4c   : > { %s543_s19 = sshll.u32 %s7286_s21, 4  ;;  %s6713_s14 = scalar_lea.hbm %s9100_s15, 2048  ;;  %s544_s19 = int_to_ptr.vmem [resolvable:$true] %s543_s19 }
  0x4d   : > { %p6714_p5 = scmp.ne.s32.totalorder %s9100_s15, %s6713_s14  ;;  %p6720_p10 = scmp.lt.u32.totalorder %s6713_s14, %s9100_s15 }
  0x4f   : > { %p6716_p8 = pnand %p6714_p5, %p7488_p2 }
  0x51   : > { %p6717_p9 = pneg %p6716_p8 }
  0x53   : > { %p6722_p0 = pnand %p6720_p10, %p6717_p9 }
  0x55   : > { %6725 = shalt.err (!%p6722_p0)
}
  0x56   : > { %s6726_s22 = scalar_lea.vmem %s544_s19, 2048  ;;  %p6734_p6 = scmp.lt.s32.totalorder %s544_s19, %s544_s19 }
  0x57   : > { %p6727_p1 = scmp.ne.s32.totalorder %s544_s19, %s6726_s22  ;;  %p6735_p7 = scmp.lt.s32.totalorder %s6726_s22, %s6726_s22 }
  0x59   : > { %p6729_p3 = pnand %p6727_p1, %p7488_p2  ;;  %p6736_p11 = por %p6735_p7, %p6734_p6 }
  0x5b   : > { %p6730_p4 = pneg %p6729_p3 }
  0x5d   : > { %p6737_p13 = pnand %p6736_p11, %p6730_p4 }
  0x5f   : > { %6740 = shalt.err (!%p6737_p13)
}
  0x60   : > { %6378 = dma.hbm_to_vmem [thread:$0]  (!%p7466_p12), %s9100_s15, 2048, %s544_s19, [#allocation28], %s9129_s1, %s9129_s1, %s9132_s30  }
  0x61   : > { %s6312_s10 = smul.u32 192, %s7472_s24  ;;  %s9176_s3 = sld [smem:[#allocation51_spill]] }
  0x62   : > { %s6313_s12 = smul.u32 3072, %s7281_s27  ;;  %s9131_s21 = scalar_lea.sflag [#allocation10], %s7508_s18 }
  0x63   : > { %s572_s17 = scalar_lea.vmem [#allocation9], %s6312_s10  ;;  %p9177_p8 = scmp.ne.s32.totalorder %s9173_s0, 0 }
  0x64   : > { %s579_s26 = sshll.u32 %s572_s17, 4  ;;  %s7538_s26 = int_to_ptr.vmem [resolvable:$true] %s579_s26 }
  0x65   : > { %p7545_p9 = pneg %p9177_p8 }
  0x67   : > { %s7536_s20 = scalar_lea.hbm %s9176_s3, %s6313_s12  ;;  %s6746_s12 = scalar_lea.hbm %s9176_s3, 6144 }
  0x68   : > { %s6741_s22 = scalar_lea.hbm %s7536_s20, 3072  ;;  %p6747_p1 = scmp.lt.u32.totalorder %s7536_s20, %s9176_s3 }
  0x69   : > { %p6742_p5 = scmp.ne.s32.totalorder %s7536_s20, %s6741_s22  ;;  %p6748_p3 = scmp.lt.u32.totalorder %s6746_s12, %s6741_s22 }
  0x6a   : > { %s9178_s19 = scalar_select %p7545_p9, 1, 0 }
  0x6b   : > { %p6744_p10 = pnand %p7545_p9, %p6742_p5  ;;  %p6749_p4 = por %p6748_p3, %p6747_p1 }
  0x6c   : > { %p6750_p6 = scmp.lt.u32.totalorder %s6741_s22, %s7536_s20 }
  0x6d   : > { %p6745_p0 = pneg %p6744_p10 }
  0x6e   : > { %p6751_p7 = por %p6750_p6, %p6749_p4 }
  0x70   : > { %p6752_p11 = pnand %p6751_p7, %p6745_p0 }
  0x72   : > { %6755 = shalt.err (!%p6752_p11)
}
  0x73   : > { %s6756_s28 = scalar_lea.vmem %s7538_s26, 3072  ;;  %s7287_s17 = smov [#allocation9]  }
  0x74   : > { %p6757_p13 = scmp.ne.s32.totalorder %s7538_s26, %s6756_s28  ;;  %s6761_s6 = sshll.u32 %s7287_s17, 4  ;;  %s6762_s6 = int_to_ptr.vmem [resolvable:$false] %s6761_s6 }
  0x75   : > { %s6763_s8 = scalar_lea.vmem %s6762_s6, 6144  ;;  %p6764_p12 = scmp.lt.s32.totalorder %s7538_s26, %s6762_s6 }
  0x76   : > { %p6759_p5 = pnand %p6757_p13, %p7545_p9  ;;  %p6765_p2 = scmp.lt.s32.totalorder %s6763_s8, %s6756_s28 }
  0x78   : > { %p6760_p10 = pneg %p6759_p5  ;;  %p6766_p1 = por %p6765_p2, %p6764_p12 }
  0x7a   : > { %p6767_p3 = pnand %p6766_p1, %p6760_p10 }
  0x7c   : > { %6770 = shalt.err (!%p6767_p3)
}
  0x7d   : > { %s7288_s22 = smov 192   ;;  %s7289_s12 = smov 12  }
  0x7e   : > { %6385 = dma.hbm_to_vmem [thread:$0]  (!%p9177_p8), %s7536_s20, 3072, %s7538_s26, %s9131_s21, %s7288_s22, %s7288_s22, %s7289_s12  }
  0x7f   : > { %s7571_s10 = sshll.u32 %s7472_s24, 6  ;;  %s7574_s14 = sshll.u32 %s7281_s27, 10 }
  0x80   : > { %s9179_s5 = sld [smem:[#allocation53_spill]]  ;;  %s612_s8 = scalar_lea.vmem [#allocation12], %s7571_s10 }
  0x81   : > { %s619_s1 = sshll.u32 %s612_s8, 4  ;;  %s9134_s20 = scalar_lea.sflag [#allocation13], %s7508_s18  ;;  %s7583_s1 = int_to_ptr.vmem [resolvable:$true] %s619_s1 }
  0x86   : > { %s7580_s6 = scalar_lea.hbm %s9179_s5, %s7574_s14  ;;  %s6776_s28 = scalar_lea.hbm %s9179_s5, 2048 }
  0x87   : > { %s6771_s26 = scalar_lea.hbm %s7580_s6, 1024  ;;  %p6777_p4 = scmp.lt.u32.totalorder %s7580_s6, %s9179_s5 }
  0x88   : > { %p6772_p12 = scmp.ne.s32.totalorder %s7580_s6, %s6771_s26  ;;  %p6778_p6 = scmp.lt.u32.totalorder %s6776_s28, %s6771_s26 }
  0x89   : > { %p6780_p11 = scmp.lt.u32.totalorder %s6771_s26, %s7580_s6 }
  0x8a   : > { %p6774_p2 = pnand %p6772_p12, %p7545_p9  ;;  %p6779_p7 = por %p6778_p6, %p6777_p4 }
  0x8c   : > { %p6775_p0 = pneg %p6774_p2  ;;  %p6781_p13 = por %p6780_p11, %p6779_p7 }
  0x8e   : > { %p6782_p5 = pnand %p6781_p13, %p6775_p0 }
  0x90   : > { %6785 = shalt.err (!%p6782_p5)
}
  0x91   : > { %s6786_s8 = scalar_lea.vmem %s7583_s1, 1024  ;;  %s7290_s22 = smov [#allocation12]  }
  0x92   : > { %p6787_p10 = scmp.ne.s32.totalorder %s7583_s1, %s6786_s8  ;;  %s6791_s12 = sshll.u32 %s7290_s22, 4  ;;  %s6792_s12 = int_to_ptr.vmem [resolvable:$false] %s6791_s12 }
  0x93   : > { %s6793_s21 = scalar_lea.vmem %s6792_s12, 2048  ;;  %p6794_p12 = scmp.lt.s32.totalorder %s7583_s1, %s6792_s12 }
  0x94   : > { %p6789_p1 = pnand %p6787_p10, %p7545_p9  ;;  %p6795_p2 = scmp.lt.s32.totalorder %s6793_s21, %s6786_s8 }
  0x96   : > { %p6790_p3 = pneg %p6789_p1  ;;  %p6796_p4 = por %p6795_p2, %p6794_p12 }
  0x98   : > { %p6797_p6 = pnand %p6796_p4, %p6790_p3 }
  0x9a   : > { %6800 = shalt.err (!%p6797_p6)
}
  0x9b   : > { %s9135_s26 = smov 64   ;;  %s9137_s28 = smov 4  }
  0x9c   : > { %6391 = dma.hbm_to_vmem [thread:$0]  (!%p9177_p8), %s7580_s6, 1024, %s7583_s1, %s9134_s20, %s9135_s26, %s9135_s26, %s9137_s28  }
  0x9d   : > { %s7613_s17 = sshll.u32 %s7281_s27, 4  ;;  %s9180_s7 = sld [smem:[#allocation55_spill]] }
  0x9e   : > { %s649_s21 = scalar_lea.vmem [#allocation15], %s7472_s24  ;;  %s9140_s3 = scalar_lea.sflag [#allocation16], %s7508_s18 }
  0x9f   : > { %s656_s30 = sshll.u32 %s649_s21, 4  ;;  %s657_s30 = int_to_ptr.vmem [resolvable:$true] %s656_s30 }
  0xa3   : > { %s7619_s12 = scalar_lea.hbm %s9180_s7, %s7613_s17  ;;  %s6806_s20 = scalar_lea.hbm %s9180_s7, 32 }
  0xa4   : > { %s6801_s5 = scalar_lea.hbm %s7619_s12, 16  ;;  %p6807_p13 = scmp.lt.u32.totalorder %s7619_s12, %s9180_s7 }
  0xa5   : > { %p6802_p0 = scmp.ne.s32.totalorder %s7619_s12, %s6801_s5  ;;  %p6808_p5 = scmp.lt.u32.totalorder %s6806_s20, %s6801_s5 }
  0xa6   : > { %p6810_p1 = scmp.lt.u32.totalorder %s6801_s5, %s7619_s12 }
  0xa7   : > { %p6804_p7 = pnand %p6802_p0, %p7545_p9  ;;  %p6809_p10 = por %p6808_p5, %p6807_p13 }
  0xa9   : > { %p6805_p11 = pneg %p6804_p7  ;;  %p6811_p3 = por %p6810_p1, %p6809_p10 }
  0xab   : > { %p6812_p12 = pnand %p6811_p3, %p6805_p11 }
  0xad   : > { %6815 = shalt.err (!%p6812_p12)
}
  0xae   : > { %s6816_s21 = scalar_lea.vmem %s657_s30, 16  ;;  %s7293_s26 = smov [#allocation15]  }
  0xaf   : > { %p6817_p2 = scmp.ne.s32.totalorder %s657_s30, %s6816_s21  ;;  %s6821_s28 = sshll.u32 %s7293_s26, 4  ;;  %s6822_s28 = int_to_ptr.vmem [resolvable:$false] %s6821_s28 }
  0xb0   : > { %s6823_s1 = scalar_lea.vmem %s6822_s28, 32  ;;  %p6824_p0 = scmp.lt.s32.totalorder %s657_s30, %s6822_s28 }
  0xb1   : > { %p6819_p4 = pnand %p6817_p2, %p7545_p9  ;;  %p6825_p7 = scmp.lt.s32.totalorder %s6823_s1, %s6816_s21 }
  0xb3   : > { %p6820_p6 = pneg %p6819_p4  ;;  %p6826_p8 = por %p6825_p7, %p6824_p0 }
  0xb5   : > { %p6827_p5 = pnand %p6826_p8, %p6820_p6 }
  0xb7   : > { %6830 = shalt.err (!%p6827_p5)
}
  0xb8   : > { %p9181_p13 = scmp.ne.s32.totalorder %s9173_s0, 0  ;;  %s7646_s26 = scalar_lea.hbm %s9094_s9, %s7574_s14 }
  0xb9   : > { %s684_s28 = scalar_lea.vmem [#allocation18], %s7571_s10  ;;  %s9143_s8 = scalar_lea.sflag [#allocation19], %s7508_s18 }
  0xba   : > { %6397 = dma.hbm_to_vmem [thread:$0]  (!%p9181_p13), %s7619_s12, 16, %s657_s30, %s9140_s3  }
  0xbb   : > { %s691_s6 = sshll.u32 %s684_s28, 4  ;;  %s6831_s22 = scalar_lea.hbm %s7646_s26, 1024  ;;  %s7649_s6 = int_to_ptr.vmem [resolvable:$true] %s691_s6 }
  0xbc   : > { %p6832_p8 = scmp.ne.s32.totalorder %s7646_s26, %s6831_s22  ;;  %s6836_s21 = scalar_lea.hbm %s9094_s9, 2048 }
  0xbd   : > { %p6837_p1 = scmp.lt.u32.totalorder %s7646_s26, %s9094_s9  ;;  %p6838_p3 = scmp.lt.u32.totalorder %s6836_s21, %s6831_s22 }
  0xbe   : > { %p6834_p11 = pnand %p6832_p8, %p7545_p9  ;;  %p6840_p2 = scmp.lt.u32.totalorder %s6831_s22, %s7646_s26 }
  0xbf   : > { %p6839_p12 = por %p6838_p3, %p6837_p1 }
  0xc0   : > { %p6835_p10 = pneg %p6834_p11 }
  0xc1   : > { %p6841_p4 = por %p6840_p2, %p6839_p12 }
  0xc3   : > { %p6842_p6 = pnand %p6841_p4, %p6835_p10 }
  0xc5   : > { %6845 = shalt.err (!%p6842_p6)
}
  0xc6   : > { %s6846_s20 = scalar_lea.vmem %s7649_s6, 1024  ;;  %s7294_s28 = smov [#allocation18]  }
  0xc7   : > { %p6847_p0 = scmp.ne.s32.totalorder %s7649_s6, %s6846_s20  ;;  %s6851_s30 = sshll.u32 %s7294_s28, 4  ;;  %s6852_s30 = int_to_ptr.vmem [resolvable:$false] %s6851_s30 }
  0xc8   : > { %s6853_s12 = scalar_lea.vmem %s6852_s30, 2048  ;;  %p6854_p8 = scmp.lt.s32.totalorder %s7649_s6, %s6852_s30 }
  0xc9   : > { %p6849_p7 = pnand %p6847_p0, %p7545_p9  ;;  %p6855_p11 = scmp.lt.s32.totalorder %s6853_s12, %s6846_s20 }
  0xcb   : > { %p6850_p5 = pneg %p6849_p7  ;;  %p6856_p1 = por %p6855_p11, %p6854_p8 }
  0xcd   : > { %p6857_p3 = pnand %p6856_p1, %p6850_p5 }
  0xcf   : > { %6860 = shalt.err (!%p6857_p3)
}
  0xd0   : > { %s9182_s22 = smov 4   ;;  %s9183_s21 = smov 64  }
  0xd1   : > { %6403 = dma.hbm_to_vmem [thread:$0]  (!%p9181_p13), %s7646_s26, 1024, %s7649_s6, %s9143_s8, %s9183_s21, %s9183_s21, %s9182_s22  }
  0xd2   : > { %s7682_s20 = scalar_lea.hbm %s9096_s11, %s7574_s14  ;;  %s722_s28 = scalar_lea.vmem [#allocation21], %s7571_s10 }
  0xd3   : > { %s729_s30 = sshll.u32 %s722_s28, 4  ;;  %s9142_s12 = scalar_lea.sflag [#allocation22], %s7508_s18  ;;  %s7685_s30 = int_to_ptr.vmem [resolvable:$true] %s729_s30 }
  0xd4   : > { %s6861_s3 = scalar_lea.hbm %s7682_s20, 1024  ;;  %s6866_s1 = scalar_lea.hbm %s9096_s11, 2048 }
  0xd5   : > { %p6862_p10 = scmp.ne.s32.totalorder %s7682_s20, %s6861_s3  ;;  %p6867_p4 = scmp.lt.u32.totalorder %s7682_s20, %s9096_s11 }
  0xd6   : > { %p6868_p6 = scmp.lt.u32.totalorder %s6866_s1, %s6861_s3  ;;  %p6870_p7 = scmp.lt.u32.totalorder %s6861_s3, %s7682_s20 }
  0xd7   : > { %p6864_p12 = pnand %p6862_p10, %p7545_p9 }
  0xd8   : > { %p6869_p0 = por %p6868_p6, %p6867_p4 }
  0xd9   : > { %p6865_p2 = pneg %p6864_p12 }
  0xda   : > { %p6871_p5 = por %p6870_p7, %p6869_p0 }
  0xdc   : > { %p6872_p8 = pnand %p6871_p5, %p6865_p2 }
  0xde   : > { %6875 = shalt.err (!%p6872_p8)
}
  0xdf   : > { %s6876_s10 = scalar_lea.vmem %s7685_s30, 1024  ;;  %s7295_s28 = smov [#allocation21]  }
  0xe0   : > { %p6877_p11 = scmp.ne.s32.totalorder %s7685_s30, %s6876_s10  ;;  %s6881_s26 = sshll.u32 %s7295_s28, 4  ;;  %s6882_s26 = int_to_ptr.vmem [resolvable:$false] %s6881_s26 }
  0xe1   : > { %s6883_s6 = scalar_lea.vmem %s6882_s26, 2048  ;;  %p6884_p10 = scmp.lt.s32.totalorder %s7685_s30, %s6882_s26 }
  0xe2   : > { %p6879_p1 = pnand %p6877_p11, %p7545_p9  ;;  %p6885_p12 = scmp.lt.s32.totalorder %s6883_s6, %s6876_s10 }
  0xe4   : > { %p6880_p3 = pneg %p6879_p1  ;;  %p6886_p4 = por %p6885_p12, %p6884_p10 }
  0xe6   : > { %p6887_p6 = pnand %p6886_p4, %p6880_p3 }
  0xe8   : > { %6890 = shalt.err (!%p6887_p6)
}
  0xe9   : > { %6409 = dma.hbm_to_vmem [thread:$0]  (!%p9181_p13), %s7682_s20, 1024, %s7685_s30, %s9142_s12, %s9183_s21, %s9183_s21, %s9182_s22  }
  0xea   : > { %s7718_s14 = scalar_lea.hbm %s9098_s13, %s7613_s17  ;;  %s759_s5 = scalar_lea.vmem [#allocation24], %s7472_s24 }
  0xeb   : > { %s766_s10 = sshll.u32 %s759_s5, 4  ;;  %s9146_s28 = scalar_lea.sflag [#allocation25], %s7508_s18  ;;  %s767_s10 = int_to_ptr.vmem [resolvable:$true] %s766_s10 }
  0xec   : > { %s6891_s26 = scalar_lea.hbm %s7718_s14, 16  ;;  %s6896_s21 = scalar_lea.hbm %s9098_s13, 32 }
  0xed   : > { %p6892_p2 = scmp.ne.s32.totalorder %s7718_s14, %s6891_s26  ;;  %p6897_p5 = scmp.lt.u32.totalorder %s7718_s14, %s9098_s13 }
  0xee   : > { %p6898_p8 = scmp.lt.u32.totalorder %s6896_s21, %s6891_s26  ;;  %p6900_p1 = scmp.lt.u32.totalorder %s6891_s26, %s7718_s14 }
  0xef   : > { %p6894_p0 = pnand %p6892_p2, %p7545_p9 }
  0xf0   : > { %p6899_p11 = por %p6898_p8, %p6897_p5 }
  0xf1   : > { %p6895_p7 = pneg %p6894_p0 }
  0xf2   : > { %p6901_p3 = por %p6900_p1, %p6899_p11 }
  0xf4   : > { %p6902_p10 = pnand %p6901_p3, %p6895_p7 }
  0xf6   : > { %6905 = shalt.err (!%p6902_p10)
}
  0xf7   : > { %s6906_s3 = scalar_lea.vmem %s767_s10, 16  ;;  %s7296_s1 = smov [#allocation24]  }
  0xf8   : > { %p6907_p12 = scmp.ne.s32.totalorder %s767_s10, %s6906_s3  ;;  %s6911_s5 = sshll.u32 %s7296_s1, 4  ;;  %s6912_s5 = int_to_ptr.vmem [resolvable:$false] %s6911_s5 }
  0xf9   : > { %s6913_s6 = scalar_lea.vmem %s6912_s5, 32  ;;  %p6914_p2 = scmp.lt.s32.totalorder %s767_s10, %s6912_s5 }
  0xfa   : > { %p6909_p4 = pnand %p6907_p12, %p7545_p9  ;;  %p6915_p0 = scmp.lt.s32.totalorder %s6913_s6, %s6906_s3 }
  0xfc   : > { %p6910_p6 = pneg %p6909_p4  ;;  %p6916_p13 = por %p6915_p0, %p6914_p2 }
  0xfe   : > { %p6917_p5 = pnand %p6916_p13, %p6910_p6 }
 0x100   : > { %6920 = shalt.err (!%p6917_p5)
}
 0x101   : > { %p9184_p8 = scmp.ne.s32.totalorder %s9173_s0, 0  ;;  %s7297_s26 = smov [#allocation3]  }
 0x102   : > { %s504_s22 = sshll.u32 %s7297_s26, 4  ;;  %s7298_s21 = smov [#allocation8]   ;;  %s505_s22 = int_to_ptr.vmem [resolvable:$true] %s504_s22 }
 0x103   : > { %6415 = dma.hbm_to_vmem [thread:$0]  (!%p9184_p8), %s7718_s14, 16, %s767_s10, %s9146_s28  }
 0x104   : > { %s530_s20 = sshll.u32 %s7298_s21, 4  ;;  %s9185_s12 = sld [smem:[#allocation48_spill]]  ;;  %s531_s20 = int_to_ptr.vmem [resolvable:$true] %s530_s20 }
 0x105   : > { %p9186_p7 = scmp.ne.s32.totalorder %s9175_s25, 0 }
 0x10a   : > { %s6921_s5 = scalar_lea.hbm %s9185_s12, 512 }
 0x10b   : > { %p6922_p13 = scmp.ne.s32.totalorder %s9185_s12, %s6921_s5  ;;  %p6928_p3 = scmp.lt.u32.totalorder %s6921_s5, %s9185_s12 }
 0x10d   : > { %p6924_p11 = pnand %p6922_p13, %p9186_p7 }
 0x10f   : > { %p6925_p1 = pneg %p6924_p11 }
 0x111   : > { %p6930_p10 = pnand %p6928_p3, %p6925_p1 }
 0x113   : > { %6933 = shalt.err (!%p6930_p10)
}
 0x114   : > { %s6934_s14 = scalar_lea.vmem %s505_s22, 512  ;;  %p6942_p2 = scmp.lt.s32.totalorder %s505_s22, %s505_s22 }
 0x115   : > { %p6935_p12 = scmp.ne.s32.totalorder %s505_s22, %s6934_s14  ;;  %p6943_p0 = scmp.lt.s32.totalorder %s6934_s14, %s6934_s14 }
 0x117   : > { %p6937_p4 = pnand %p6935_p12, %p9186_p7  ;;  %p6944_p5 = por %p6943_p0, %p6942_p2 }
 0x119   : > { %p6938_p6 = pneg %p6937_p4 }
 0x11b   : > { %p6945_p8 = pnand %p6944_p5, %p6938_p6 }
 0x11d   : > { %6948 = shalt.err (!%p6945_p8)
}
 0x11e   : > { %p9187_p13 = scmp.ne.s32.totalorder %s9172_s23, 0  ;;  %s9188_s10 = smov 8  }
 0x11f   : > { %s9189_s26 = smov 128   ;;  %s9190_s2 = sld [smem:[#allocation50_spill]] }
 0x120   : > { %6369 = dma.hbm_to_vmem [thread:$0]  (!%p9187_p13), %s9185_s12, 512, %s505_s22, [#allocation4], %s9189_s26, %s9189_s26, %s9188_s10  }
 0x125   : > { %s6949_s1 = scalar_lea.hbm %s9190_s2, 256 }
 0x126   : > { %p6950_p11 = scmp.ne.s32.totalorder %s9190_s2, %s6949_s1  ;;  %p6956_p3 = scmp.lt.u32.totalorder %s6949_s1, %s9190_s2 }
 0x128   : > { %p6952_p8 = pnand %p6950_p11, %p9186_p7 }
 0x12a   : > { %p6953_p1 = pneg %p6952_p8 }
 0x12c   : > { %p6958_p10 = pnand %p6956_p3, %p6953_p1 }
 0x12e   : > { %6961 = shalt.err (!%p6958_p10)
}
 0x12f   : > { %s6962_s7 = scalar_lea.vmem %s531_s20, 256  ;;  %p6970_p2 = scmp.lt.s32.totalorder %s531_s20, %s531_s20 }
 0x130   : > { %p6963_p12 = scmp.ne.s32.totalorder %s531_s20, %s6962_s7  ;;  %p6971_p0 = scmp.lt.s32.totalorder %s6962_s7, %s6962_s7 }
 0x132   : > { %p6965_p4 = pnand %p6963_p12, %p9186_p7  ;;  %p6972_p5 = por %p6971_p0, %p6970_p2 }
 0x134   : > { %p6966_p6 = pneg %p6965_p4 }
 0x136   : > { %p6973_p9 = pnand %p6972_p5, %p6966_p6 }
 0x138   : > { %6976 = shalt.err (!%p6973_p9)
}
 0x139   : > { %6375 = dma.hbm_to_vmem [thread:$0]  (!%p9187_p13), %s9190_s2, 256, %s531_s20, [#allocation7], %s9189_s26, %s9189_s26, %s9188_s10  }
 0x13a   : > { %s7299_s21 = smov [#allocation29]   ;;  %s6314_s1 = smul.u32 3, %s7472_s24 }
 0x13b   : > { %s557_s30 = sshll.u32 %s7299_s21, 4  ;;  %s6315_s5 = smul.u32 48, %s7281_s27  ;;  %s558_s30 = int_to_ptr.vmem [resolvable:$true] %s557_s30 }
 0x13c   : > { %s6977_s14 = scalar_lea.hbm %s9101_s16, 32 }
 0x13d   : > { %p6978_p9 = scmp.ne.s32.totalorder %s9101_s16, %s6977_s14  ;;  %p6984_p1 = scmp.lt.u32.totalorder %s6977_s14, %s9101_s16 }
 0x13f   : > { %p6980_p11 = pnand %p6978_p9, %p9186_p7 }
 0x141   : > { %p6981_p8 = pneg %p6980_p11 }
 0x143   : > { %p6986_p3 = pnand %p6984_p1, %p6981_p8 }
 0x145   : > { %6989 = shalt.err (!%p6986_p3)
}
 0x146   : > { %s6990_s20 = scalar_lea.vmem %s558_s30, 32  ;;  %p6998_p6 = scmp.lt.s32.totalorder %s558_s30, %s558_s30 }
 0x147   : > { %p6991_p10 = scmp.ne.s32.totalorder %s558_s30, %s6990_s20  ;;  %p6999_p2 = scmp.lt.s32.totalorder %s6990_s20, %s6990_s20 }
 0x149   : > { %p6993_p12 = pnand %p6991_p10, %p9186_p7  ;;  %p7000_p0 = por %p6999_p2, %p6998_p6 }
 0x14b   : > { %p6994_p4 = pneg %p6993_p12 }
 0x14d   : > { %p7001_p5 = pnand %p7000_p0, %p6994_p4 }
 0x14f   : > { %7004 = shalt.err (!%p7001_p5)
}
 0x150   : > { %6381 = dma.hbm_to_vmem [thread:$0]  (!%p9187_p13), %s9101_s16, 32, %s558_s30, [#allocation28]  }
 0x151   : > { %s9191_s4 = sld [smem:[#allocation52_spill]]  ;;  %s593_s25 = scalar_lea.vmem [#allocation11], %s6314_s1 }
 0x152   : > { %s601_s3 = sshll.u32 %s593_s25, 4  ;;  %s9192_s14 = sld [smem:[#allocation54_spill]]  ;;  %s602_s3 = int_to_ptr.vmem [resolvable:$true] %s601_s3 }
 0x153   : > { %p9193_p13 = scmp.ne.s32.totalorder %s9178_s19, 0 }
 0x157   : > { %s7806_s21 = scalar_lea.hbm %s9191_s4, %s6315_s5  ;;  %s7010_s8 = scalar_lea.hbm %s9191_s4, 96 }
 0x158   : > { %s7812_s7 = scalar_lea.hbm %s9192_s14, %s7613_s17  ;;  %s7005_s22 = scalar_lea.hbm %s7806_s21, 48 }
 0x159   : > { %p7006_p7 = scmp.ne.s32.totalorder %s7806_s21, %s7005_s22  ;;  %p7011_p8 = scmp.lt.u32.totalorder %s7806_s21, %s9191_s4 }
 0x15a   : > { %p7012_p1 = scmp.lt.u32.totalorder %s7010_s8, %s7005_s22  ;;  %p7014_p10 = scmp.lt.u32.totalorder %s7005_s22, %s7806_s21 }
 0x15b   : > { %p7008_p9 = pnand %p7006_p7, %p9193_p13 }
 0x15c   : > { %p7013_p3 = por %p7012_p1, %p7011_p8 }
 0x15d   : > { %p7009_p11 = pneg %p7008_p9 }
 0x15e   : > { %p7015_p12 = por %p7014_p10, %p7013_p3 }
 0x160   : > { %p7016_p4 = pnand %p7015_p12, %p7009_p11 }
 0x162   : > { %7019 = shalt.err (!%p7016_p4)
}
 0x163   : > { %s7020_s1 = scalar_lea.vmem %s602_s3, 48  ;;  %s7300_s28 = smov [#allocation11]  }
 0x164   : > { %p7021_p6 = scmp.ne.s32.totalorder %s602_s3, %s7020_s1  ;;  %s7025_s10 = sshll.u32 %s7300_s28, 4  ;;  %s7026_s10 = int_to_ptr.vmem [resolvable:$false] %s7025_s10 }
 0x165   : > { %s7027_s26 = scalar_lea.vmem %s7026_s10, 96  ;;  %p7028_p5 = scmp.lt.s32.totalorder %s602_s3, %s7026_s10 }
 0x166   : > { %p7023_p2 = pnand %p7021_p6, %p9193_p13  ;;  %p7029_p7 = scmp.lt.s32.totalorder %s7027_s26, %s7020_s1 }
 0x168   : > { %p7024_p0 = pneg %p7023_p2  ;;  %p7030_p9 = por %p7029_p7, %p7028_p5 }
 0x16a   : > { %p7031_p1 = pnand %p7030_p9, %p7024_p0 }
 0x16c   : > { %7034 = shalt.err (!%p7031_p1)
}
 0x16d   : > { %p9194_p8 = scmp.ne.s32.totalorder %s9173_s0, 0  ;;  %s9195_s25 = scalar_lea.sflag [#allocation10], %s7508_s18 }
 0x16e   : > { %s632_s6 = scalar_lea.vmem [#allocation14], %s7472_s24  ;;  %s9196_s5 = sld [smem:[#allocation56_spill]] }
 0x16f   : > { %6388 = dma.hbm_to_vmem [thread:$0]  (!%p9194_p8), %s7806_s21, 48, %s602_s3, %s9195_s25  }
 0x170   : > { %s639_s23 = sshll.u32 %s632_s6, 4  ;;  %s7035_s20 = scalar_lea.hbm %s7812_s7, 16  ;;  %s640_s23 = int_to_ptr.vmem [resolvable:$true] %s639_s23 }
 0x171   : > { %p7036_p11 = scmp.ne.s32.totalorder %s7812_s7, %s7035_s20  ;;  %s7040_s28 = scalar_lea.hbm %s9192_s14, 32 }
 0x172   : > { %p7041_p12 = scmp.lt.u32.totalorder %s7812_s7, %s9192_s14  ;;  %p7042_p4 = scmp.lt.u32.totalorder %s7040_s28, %s7035_s20 }
 0x173   : > { %p7038_p3 = pnand %p7036_p11, %p9193_p13  ;;  %p7044_p2 = scmp.lt.u32.totalorder %s7035_s20, %s7812_s7 }
 0x174   : > { %s7838_s8 = scalar_lea.hbm %s9196_s5, %s7613_s17  ;;  %p7043_p6 = por %p7042_p4, %p7041_p12 }
 0x175   : > { %p7039_p10 = pneg %p7038_p3 }
 0x176   : > { %p7045_p0 = por %p7044_p2, %p7043_p6 }
 0x178   : > { %p7046_p5 = pnand %p7045_p0, %p7039_p10 }
 0x17a   : > { %7049 = shalt.err (!%p7046_p5)
}
 0x17b   : > { %s7050_s21 = scalar_lea.vmem %s640_s23, 16  ;;  %s7301_s3 = smov [#allocation14]  }
 0x17c   : > { %p7051_p7 = scmp.ne.s32.totalorder %s640_s23, %s7050_s21  ;;  %s7055_s25 = sshll.u32 %s7301_s3, 4  ;;  %s7056_s25 = int_to_ptr.vmem [resolvable:$false] %s7055_s25 }
 0x17d   : > { %s7057_s6 = scalar_lea.vmem %s7056_s25, 32  ;;  %p7058_p11 = scmp.lt.s32.totalorder %s640_s23, %s7056_s25 }
 0x17e   : > { %p7053_p9 = pnand %p7051_p7, %p9193_p13  ;;  %p7059_p3 = scmp.lt.s32.totalorder %s7057_s6, %s7050_s21 }
 0x180   : > { %p7054_p1 = pneg %p7053_p9  ;;  %p7060_p8 = por %p7059_p3, %p7058_p11 }
 0x182   : > { %p7061_p4 = pnand %p7060_p8, %p7054_p1 }
 0x184   : > { %7064 = shalt.err (!%p7061_p4)
}
 0x185   : > { %p9197_p12 = scmp.ne.s32.totalorder %s9173_s0, 0  ;;  %s9198_s22 = scalar_lea.sflag [#allocation13], %s7508_s18 }
 0x186   : > { %s666_s30 = scalar_lea.vmem [#allocation17], %s7472_s24  ;;  %s9199_s28 = sld [smem:[#allocation57_spill]] }
 0x187   : > { %6394 = dma.hbm_to_vmem [thread:$0]  (!%p9197_p12), %s7812_s7, 16, %s640_s23, %s9198_s22  }
 0x188   : > { %s673_s20 = sshll.u32 %s666_s30, 4  ;;  %s7065_s26 = scalar_lea.hbm %s7838_s8, 16  ;;  %s674_s20 = int_to_ptr.vmem [resolvable:$true] %s673_s20 }
 0x189   : > { %p7066_p8 = scmp.ne.s32.totalorder %s7838_s8, %s7065_s26  ;;  %s7070_s25 = scalar_lea.hbm %s9196_s5, 32 }
 0x18a   : > { %p7071_p2 = scmp.lt.u32.totalorder %s7838_s8, %s9196_s5  ;;  %p7072_p0 = scmp.lt.u32.totalorder %s7070_s25, %s7065_s26 }
 0x18b   : > { %p7068_p10 = pnand %p7066_p8, %p9193_p13  ;;  %p7074_p7 = scmp.lt.u32.totalorder %s7065_s26, %s7838_s8 }
 0x18c   : > { %s7864_s10 = scalar_lea.hbm %s9199_s28, %s7613_s17  ;;  %p7073_p5 = por %p7072_p0, %p7071_p2 }
 0x18d   : > { %p7069_p6 = pneg %p7068_p10 }
 0x18e   : > { %p7075_p9 = por %p7074_p7, %p7073_p5 }
 0x190   : > { %p7076_p1 = pnand %p7075_p9, %p7069_p6 }
 0x192   : > { %7079 = shalt.err (!%p7076_p1)
}
 0x193   : > { %s7080_s7 = scalar_lea.vmem %s674_s20, 16  ;;  %s7302_s23 = smov [#allocation17]  }
 0x194   : > { %p7081_p11 = scmp.ne.s32.totalorder %s674_s20, %s7080_s7  ;;  %s7085_s22 = sshll.u32 %s7302_s23, 4  ;;  %s7086_s22 = int_to_ptr.vmem [resolvable:$false] %s7085_s22 }
 0x195   : > { %s7087_s30 = scalar_lea.vmem %s7086_s22, 32  ;;  %p7088_p8 = scmp.lt.s32.totalorder %s674_s20, %s7086_s22 }
 0x196   : > { %p7083_p3 = pnand %p7081_p11, %p9193_p13  ;;  %p7089_p10 = scmp.lt.s32.totalorder %s7087_s30, %s7080_s7 }
 0x198   : > { %p7084_p4 = pneg %p7083_p3  ;;  %p7090_p12 = por %p7089_p10, %p7088_p8 }
 0x19a   : > { %p7091_p0 = pnand %p7090_p12, %p7084_p4 }
 0x19c   : > { %7094 = shalt.err (!%p7091_p0)
}
 0x19d   : > { %p9200_p2 = scmp.ne.s32.totalorder %s9173_s0, 0  ;;  %s9201_s2 = scalar_lea.sflag [#allocation16], %s7508_s18 }
 0x19e   : > { %s704_s27 = scalar_lea.vmem [#allocation20], %s7472_s24  ;;  %s9202_s3 = sld [smem:[#allocation58_spill]] }
 0x19f   : > { %6400 = dma.hbm_to_vmem [thread:$0]  (!%p9200_p2), %s7838_s8, 16, %s674_s20, %s9201_s2  }
 0x1a0   : > { %s711_s1 = sshll.u32 %s704_s27, 4  ;;  %s7095_s6 = scalar_lea.hbm %s7864_s10, 16  ;;  %s712_s1 = int_to_ptr.vmem [resolvable:$true] %s711_s1 }
 0x1a1   : > { %p7096_p12 = scmp.ne.s32.totalorder %s7864_s10, %s7095_s6  ;;  %s7100_s22 = scalar_lea.hbm %s9199_s28, 32 }
 0x1a2   : > { %p7101_p7 = scmp.lt.u32.totalorder %s7864_s10, %s9199_s28  ;;  %p7102_p9 = scmp.lt.u32.totalorder %s7100_s22, %s7095_s6 }
 0x1a3   : > { %p7098_p6 = pnand %p7096_p12, %p9193_p13  ;;  %p7104_p11 = scmp.lt.u32.totalorder %s7095_s6, %s7864_s10 }
 0x1a4   : > { %s7890_s25 = scalar_lea.hbm %s9202_s3, %s7613_s17  ;;  %p7103_p1 = por %p7102_p9, %p7101_p7 }
 0x1a5   : > { %p7099_p5 = pneg %p7098_p6 }
 0x1a6   : > { %p7105_p3 = por %p7104_p11, %p7103_p1 }
 0x1a8   : > { %p7106_p4 = pnand %p7105_p3, %p7099_p5 }
 0x1aa   : > { %7109 = shalt.err (!%p7106_p4)
}
 0x1ab   : > { %s7110_s8 = scalar_lea.vmem %s712_s1, 16  ;;  %s7303_s20 = smov [#allocation20]  }
 0x1ac   : > { %p7111_p8 = scmp.ne.s32.totalorder %s712_s1, %s7110_s8  ;;  %s7115_s2 = sshll.u32 %s7303_s20, 4  ;;  %s7116_s2 = int_to_ptr.vmem [resolvable:$false] %s7115_s2 }
 0x1ad   : > { %s7117_s27 = scalar_lea.vmem %s7116_s2, 32  ;;  %p7118_p12 = scmp.lt.s32.totalorder %s712_s1, %s7116_s2 }
 0x1ae   : > { %p7113_p10 = pnand %p7111_p8, %p9193_p13  ;;  %p7119_p6 = scmp.lt.s32.totalorder %s7117_s27, %s7110_s8 }
 0x1b0   : > { %p7114_p0 = pneg %p7113_p10  ;;  %p7120_p2 = por %p7119_p6, %p7118_p12 }
 0x1b2   : > { %p7121_p7 = pnand %p7120_p2, %p7114_p0 }
 0x1b4   : > { %7124 = shalt.err (!%p7121_p7)
}
 0x1b5   : > { %p9203_p9 = scmp.ne.s32.totalorder %s9173_s0, 0  ;;  %s9204_s4 = scalar_lea.sflag [#allocation19], %s7508_s18 }
 0x1b6   : > { %s742_s26 = scalar_lea.vmem [#allocation23], %s7472_s24  ;;  %s9205_s23 = sld [smem:[#allocation59_spill]] }
 0x1b7   : > { %6406 = dma.hbm_to_vmem [thread:$0]  (!%p9203_p9), %s7864_s10, 16, %s712_s1, %s9204_s4  }
 0x1b8   : > { %s749_s21 = sshll.u32 %s742_s26, 4  ;;  %s7125_s30 = scalar_lea.hbm %s7890_s25, 16  ;;  %s750_s21 = int_to_ptr.vmem [resolvable:$true] %s749_s21 }
 0x1b9   : > { %p7126_p2 = scmp.ne.s32.totalorder %s7890_s25, %s7125_s30  ;;  %s7130_s2 = scalar_lea.hbm %s9202_s3, 32 }
 0x1ba   : > { %p7131_p11 = scmp.lt.u32.totalorder %s7890_s25, %s9202_s3  ;;  %p7132_p3 = scmp.lt.u32.totalorder %s7130_s2, %s7125_s30 }
 0x1bb   : > { %p7128_p5 = pnand %p7126_p2, %p9193_p13  ;;  %p7134_p8 = scmp.lt.u32.totalorder %s7125_s30, %s7890_s25 }
 0x1bc   : > { %s7916_s22 = scalar_lea.hbm %s9205_s23, %s7613_s17  ;;  %p7133_p4 = por %p7132_p3, %p7131_p11 }
 0x1bd   : > { %p7129_p1 = pneg %p7128_p5 }
 0x1be   : > { %p7135_p10 = por %p7134_p8, %p7133_p4 }
 0x1c0   : > { %p7136_p0 = pnand %p7135_p10, %p7129_p1 }
 0x1c2   : > { %7139 = shalt.err (!%p7136_p0)
}
 0x1c3   : > { %s7140_s17 = scalar_lea.vmem %s750_s21, 16  ;;  %s7304_s10 = smov [#allocation23]  }
 0x1c4   : > { %p7141_p12 = scmp.ne.s32.totalorder %s750_s21, %s7140_s17  ;;  %s7145_s1 = sshll.u32 %s7304_s10, 4  ;;  %s7146_s1 = int_to_ptr.vmem [resolvable:$false] %s7145_s1 }
 0x1c5   : > { %s7147_s4 = scalar_lea.vmem %s7146_s1, 32  ;;  %p7148_p2 = scmp.lt.s32.totalorder %s750_s21, %s7146_s1 }
 0x1c6   : > { %p7143_p6 = pnand %p7141_p12, %p9193_p13  ;;  %p7149_p5 = scmp.lt.s32.totalorder %s7147_s4, %s7140_s17 }
 0x1c8   : > { %p7144_p7 = pneg %p7143_p6  ;;  %p7150_p9 = por %p7149_p5, %p7148_p2 }
 0x1ca   : > { %p7151_p3 = pnand %p7150_p9, %p7144_p7 }
 0x1cc   : > { %7154 = shalt.err (!%p7151_p3)
}
 0x1cd   : > { %p9206_p11 = scmp.ne.s32.totalorder %s9173_s0, 0  ;;  %s9207_s5 = scalar_lea.sflag [#allocation22], %s7508_s18 }
 0x1ce   : > { %s776_s26 = scalar_lea.vmem [#allocation26], %s7472_s24  ;;  %s7155_s7 = scalar_lea.hbm %s7916_s22, 16 }
 0x1cf   : > { %6412 = dma.hbm_to_vmem [thread:$0]  (!%p9206_p11), %s7890_s25, 16, %s750_s21, %s9207_s5  }
 0x1d0   : > { %s783_s6 = sshll.u32 %s776_s26, 4  ;;  %p7156_p1 = scmp.ne.s32.totalorder %s7916_s22, %s7155_s7  ;;  %s784_s6 = int_to_ptr.vmem [resolvable:$true] %s783_s6 }
 0x1d1   : > { %s7160_s20 = scalar_lea.hbm %s9205_s23, 32  ;;  %p7161_p8 = scmp.lt.u32.totalorder %s7916_s22, %s9205_s23 }
 0x1d2   : > { %p7158_p9 = pnand %p7156_p1, %p9193_p13  ;;  %p7162_p10 = scmp.lt.u32.totalorder %s7160_s20, %s7155_s7 }
 0x1d3   : > { %p7164_p12 = scmp.lt.u32.totalorder %s7155_s7, %s7916_s22 }
 0x1d4   : > { %p7159_p4 = pneg %p7158_p9  ;;  %p7163_p0 = por %p7162_p10, %p7161_p8 }
 0x1d6   : > { %p7165_p6 = por %p7164_p12, %p7163_p0 }
 0x1d8   : > { %p7166_p7 = pnand %p7165_p6, %p7159_p4 }
 0x1da   : > { %7169 = shalt.err (!%p7166_p7)
}
 0x1db   : > { %s7170_s24 = scalar_lea.vmem %s784_s6, 16  ;;  %s7305_s25 = smov [#allocation26]  }
 0x1dc   : > { %p7171_p2 = scmp.ne.s32.totalorder %s784_s6, %s7170_s24  ;;  %s7175_s21 = sshll.u32 %s7305_s25, 4  ;;  %s7176_s21 = int_to_ptr.vmem [resolvable:$false] %s7175_s21 }
 0x1dd   : > { %s7177_s17 = scalar_lea.vmem %s7176_s21, 32  ;;  %p7178_p1 = scmp.lt.s32.totalorder %s784_s6, %s7176_s21 }
 0x1de   : > { %p7173_p5 = pnand %p7171_p2, %p9193_p13  ;;  %p7179_p9 = scmp.lt.s32.totalorder %s7177_s17, %s7170_s24 }
 0x1e0   : > { %p7174_p3 = pneg %p7173_p5  ;;  %p7180_p11 = por %p7179_p9, %p7178_p1 }
 0x1e2   : > { %p7181_p8 = pnand %p7180_p11, %p7174_p3 }
 0x1e4   : > { %7184 = shalt.err (!%p7181_p8)
}
 0x1e5   : > { %p9208_p10 = scmp.ne.s32.totalorder %s9173_s0, 0  ;;  %s9209_s10 = scalar_lea.sflag [#allocation25], %s7508_s18 }
 0x1e6   : > { %s9210_s1 = sld [smem:[#allocation47_spill]] }
 0x1e7   : > { %6418 = dma.hbm_to_vmem [thread:$0]  (!%p9208_p10), %s7916_s22, 16, %s784_s6, %s9209_s10  }
 0x1ec   : > { %p9211_p4 = scmp.ne.s32.totalorder %s9210_s1, 0 }
 0x1ed   : > { %s9212_s19 = sld [smem:[#allocation43_spill]] (!%p9211_p4) }
 0x1ee   : > { %792 = sbr.rel (%p9211_p4) target bundleno = 3853 (0xf0d), region = 88 }
 0x1f3   : > { %p9213_p13 = scmp.eq.s32.totalorder (!%p9211_p4), %s9212_s19, 0 }
 0x1f5   : > { %7228 = dma.done.wait (%p9213_p13), [#allocation4], 512   ;;  %p9214_p0 = pmov %p9213_p13 }
 0x1f7   : > { %7230 = vsyncadd (%p9214_p0), [#allocation4], 4294966784  ;;  %p9215_p12 = pmov %p9214_p0 }
 0x1f8   : > { %p9216_p11 = pmov %p9214_p0 }
 0x1f9   : > { %7232 = dma.done.wait (%p9215_p12), [#allocation7], 4352  }
 0x1fa   : > { %7234 = vsyncadd (%p9216_p11), [#allocation7], 4294962944  ;;  %s9217_s0 = sld [smem:[#allocation41_spill]]  ;;  %s9218_s18 = sld [smem:[#allocation46_spill]] }
 0x1fb   : > { %s7968_s4 = sand.u32 1, %s9212_s19  }
 0x1fc   : > { %s807_s26 = scalar_lea.sflag [#allocation10], %s7968_s4 }
 0x200   : > { %s7971_s22 = sand.u32 1, %s9217_s0   ;;  %p9219_p6 = scmp.ne.s32.totalorder %s9218_s18, 0 }
 0x201   : > { %s6316_s5 = smul.u32 192, %s7971_s22 }
 0x203   : > { %s7975_s6 = scalar_lea.vmem [#allocation9], %s6316_s5 }
 0x204   : > { %7236 = dma.done.wait (%p9219_p6), %s807_s26, 3120  }
 0x205   : > { %7238 = vsyncadd (%p9219_p6), %s807_s26, 4294964176  ;;  %s6317_s7 = smul.u32 3, %s7971_s22  ;;  %s5807_s30 = sshll.u32 %s7971_s22, 6 }
 0x206   : > { %s825_s20 = scalar_lea.sflag [#allocation13], %s7968_s4  ;;  %s7986_s2 = scalar_lea.vmem [#allocation12], %s5807_s30 }
 0x207   : > { %s7983_s8 = scalar_lea.vmem [#allocation11], %s6317_s7 }
 0x208   : > { %7240 = dma.done.wait (%p9219_p6), %s825_s20, 1040  }
 0x209   : > { %7242 = vsyncadd (%p9219_p6), %s825_s20, 4294966256  ;;  %s836_s27 = scalar_lea.vmem [#allocation14], %s7971_s22  ;;  %s842_s24 = scalar_lea.sflag [#allocation16], %s7968_s4 }
 0x20a   : > { %s844_s25 = scalar_lea.vmem [#allocation15], %s7971_s22 }
 0x20b   : > { %7244 = dma.done.wait (%p9219_p6), %s842_s24, 32  }
 0x20c   : > { %7246 = vsyncadd (%p9219_p6), %s842_s24, 4294967264  ;;  %s852_s21 = scalar_lea.vmem [#allocation17], %s7971_s22  ;;  %s858_s17 = scalar_lea.sflag [#allocation19], %s7968_s4 }
 0x20d   : > { %s8001_s10 = scalar_lea.vmem [#allocation18], %s5807_s30 }
 0x20e   : > { %7248 = dma.done.wait (%p9219_p6), %s858_s17, 1040  }
 0x20f   : > { %7250 = vsyncadd (%p9219_p6), %s858_s17, 4294966256  ;;  %s869_s1 = scalar_lea.vmem [#allocation20], %s7971_s22  ;;  %s875_s0 = scalar_lea.sflag [#allocation22], %s7968_s4 }
 0x210   : > { %s8009_s5 = scalar_lea.vmem [#allocation21], %s5807_s30 }
 0x211   : > { %7252 = dma.done.wait (%p9219_p6), %s875_s0, 1040  }
 0x212   : > { %7254 = vsyncadd (%p9219_p6), %s875_s0, 4294966256  ;;  %s886_s26 = scalar_lea.vmem [#allocation23], %s7971_s22  ;;  %s892_s7 = scalar_lea.sflag [#allocation25], %s7968_s4 }
 0x213   : > { %s894_s20 = scalar_lea.vmem [#allocation24], %s7971_s22 }
 0x214   : > { %7256 = dma.done.wait (%p9219_p6), %s892_s7, 32  }
 0x215   : > { %7258 = vsyncadd (%p9219_p6), %s892_s7, 4294967264  ;;  %s902_s30 = scalar_lea.vmem [#allocation26], %s7971_s22  ;;  %p9220_p7 = pmov %p9214_p0 }
 0x216   : > { %p9221_p2 = pmov %p9214_p0 }
 0x217   : > { %7260 = dma.done.wait (%p9220_p7), [#allocation28], 2080  }
 0x218   : > { %7262 = vsyncadd (%p9221_p2), [#allocation28], 4294965216  ;;  %p9222_p5 = scmp.ne.s32.totalorder %s9212_s19, 0 }
 0x219   : > { %v1010_v0 = vld [vmem:[#allocation3 + $0x8] sm:$0xff] (!%p9222_p5)  ;;  %v1009_v1 = vld [vmem:[#allocation3] sm:$0xff] (!%p9222_p5)  ;;  %v7306_v2 = vmov (!%p9222_p5), 0   ;;  %v1012_v3 = vld [vmem:[#allocation3 + $0x18] sm:$0xff] (!%p9222_p5)  ;;  %v1013_v53 = vlaneseq (!%p9222_p5)  ;;  %v7307_v58 = vmov (!%p9222_p5), 1.0  }
 0x21a   : > { %1008 = sbr.rel (%p9222_p5) target bundleno = 895 (0x37f), region = 160  ;;  %6490 = vset.pattern.permute.xlu1 (!%p9222_p5), %v7306_v2  ;;  %6489 = vset.pattern.permute.xlu0 (!%p9222_p5), %v7306_v2  ;;  %v1011_v4 = vld [vmem:[#allocation3 + $0x10] sm:$0xff] (!%p9222_p5)  ;;  %v1068_v5 = vld [vmem:[#allocation6 + $0x80] sm:$0xff] (!%p9222_p5)  ;;  %v1069_v6 = vld [vmem:[#allocation6 + $0x88] sm:$0xff] (!%p9222_p5) }
 0x21b   : > { %1020 = vperm.xlu1 (!%p9222_p5), %6490, %v1010_v0   ;;  %1017 = vperm.xlu0 (!%p9222_p5), %6489, %v1009_v1   ;;  %v6248_v7 = vpack.c.bf16 (!%p9222_p5), %v1069_v6, %v1068_v5  ;;  %v1052_v8 = vld [vmem:[#allocation6] sm:$0xff] (!%p9222_p5)  ;;  %v1053_v9 = vld [vmem:[#allocation6 + $0x8] sm:$0xff] (!%p9222_p5)  ;;  %v1070_v10 = vld [vmem:[#allocation6 + $0x90] sm:$0xff] (!%p9222_p5)  ;;  %v1014_v54 = vand.u32 (!%p9222_p5), 127, %v1013_v53 }
 0x21c   : > { %v6250_v11 = vpack.c.bf16 (!%p9222_p5), %v1053_v9, %v1052_v8  ;;  %v1071_v12 = vld [vmem:[#allocation6 + $0x98] sm:$0xff] (!%p9222_p5)  ;;  %v1054_v13 = vld [vmem:[#allocation6 + $0x10] sm:$0xff] (!%p9222_p5)  ;;  %v1072_v16 = vld [vmem:[#allocation6 + $0xa0] sm:$0xff] (!%p9222_p5) }
 0x21d   : > { %v1055_v14 = vld [vmem:[#allocation6 + $0x18] sm:$0xff] (!%p9222_p5)  ;;  %6249 = vmatprep.subr.bf16.mxu0 (!%p9222_p5), %v6248_v7  ;;  %6280 = vmatprep.subr.bf16.mxu1 (!%p9222_p5), %v6248_v7  ;;  %v6252_v15 = vpack.c.bf16 (!%p9222_p5), %v1071_v12, %v1070_v10  ;;  %v1073_v17 = vld [vmem:[#allocation6 + $0xa8] sm:$0xff] (!%p9222_p5)  ;;  %v1056_v20 = vld [vmem:[#allocation6 + $0x20] sm:$0xff] (!%p9222_p5)  ;;  %v1015_v55 = vadd.s32 (!%p9222_p5), 128, %v1014_v54 }
 0x21e   : > { %6251 = vmatpush3.bf16.msra.mxu0 (!%p9222_p5), %v6250_v11  ;;  %6288 = vmatpush3.bf16.msra.mxu1 (!%p9222_p5), %v6250_v11  ;;  %v6254_v18 = vpack.c.bf16 (!%p9222_p5), %v1055_v14, %v1054_v13  ;;  %v6256_v19 = vpack.c.bf16 (!%p9222_p5), %v1073_v17, %v1072_v16  ;;  %v1057_v21 = vld [vmem:[#allocation6 + $0x28] sm:$0xff] (!%p9222_p5)  ;;  %v1074_v22 = vld [vmem:[#allocation6 + $0xb0] sm:$0xff] (!%p9222_p5)  ;;  %v1075_v23 = vld [vmem:[#allocation6 + $0xb8] sm:$0xff] (!%p9222_p5) }
 0x21f   : > { %1026 = vperm.xlu1 (!%p9222_p5), %6490, %v1012_v3   ;;  %1023 = vperm.xlu0 (!%p9222_p5), %6489, %v1011_v4   ;;  %v6258_v24 = vpack.c.bf16 (!%p9222_p5), %v1057_v21, %v1056_v20  ;;  %v6260_v25 = vpack.c.bf16 (!%p9222_p5), %v1075_v23, %v1074_v22  ;;  %v1058_v26 = vld [vmem:[#allocation6 + $0x30] sm:$0xff] (!%p9222_p5)  ;;  %v1059_v27 = vld [vmem:[#allocation6 + $0x38] sm:$0xff] (!%p9222_p5)  ;;  %v1076_v28 = vld [vmem:[#allocation6 + $0xc0] sm:$0xff] (!%p9222_p5) }
 0x220   : > { %6253 = vmatprep.subr.bf16.mxu0 (!%p9222_p5), %v6252_v15  ;;  %6281 = vmatprep.subr.bf16.mxu1 (!%p9222_p5), %v6252_v15  ;;  %v1077_v29 = vld [vmem:[#allocation6 + $0xc8] sm:$0xff] (!%p9222_p5)  ;;  %v6262_v30 = vpack.c.bf16 (!%p9222_p5), %v1059_v27, %v1058_v26  ;;  %v1060_v32 = vld [vmem:[#allocation6 + $0x40] sm:$0xff] (!%p9222_p5)  ;;  %v1078_v34 = vld [vmem:[#allocation6 + $0xd0] sm:$0xff] (!%p9222_p5) }
 0x221   : > { %v6264_v31 = vpack.c.bf16 %v1077_v29, %v1076_v28  ;;  %v1061_v33 = vld [vmem:[#allocation6 + $0x48] sm:$0xff]  ;;  %v1079_v35 = vld [vmem:[#allocation6 + $0xd8] sm:$0xff]  ;;  %v1062_v38 = vld [vmem:[#allocation6 + $0x50] sm:$0xff] }
 0x222   : > { %6255 = vmatpush3.bf16.msra.mxu0 %v6254_v18  ;;  %6289 = vmatpush3.bf16.msra.mxu1 %v6254_v18  ;;  %v6266_v36 = vpack.c.bf16 %v1061_v33, %v1060_v32  ;;  %v6268_v37 = vpack.c.bf16 %v1079_v35, %v1078_v34  ;;  %v1063_v39 = vld [vmem:[#allocation6 + $0x58] sm:$0xff]  ;;  %v1080_v40 = vld [vmem:[#allocation6 + $0xe0] sm:$0xff]  ;;  %v1081_v41 = vld [vmem:[#allocation6 + $0xe8] sm:$0xff] }
 0x223   : > { %6257 = vmatprep.subr.bf16.mxu0 %v6256_v19  ;;  %6282 = vmatprep.subr.bf16.mxu1 %v6256_v19  ;;  %v6270_v42 = vpack.c.bf16 %v1063_v39, %v1062_v38  ;;  %v6272_v43 = vpack.c.bf16 %v1081_v41, %v1080_v40  ;;  %v1064_v44 = vld [vmem:[#allocation6 + $0x60] sm:$0xff]  ;;  %v1065_v45 = vld [vmem:[#allocation6 + $0x68] sm:$0xff]  ;;  %v1082_v46 = vld [vmem:[#allocation6 + $0xf0] sm:$0xff] }
 0x224   : > { %v1083_v47 = vld [vmem:[#allocation6 + $0xf8] sm:$0xff]  ;;  %v6274_v48 = vpack.c.bf16 %v1065_v45, %v1064_v44  ;;  %v1066_v50 = vld [vmem:[#allocation6 + $0x70] sm:$0xff]  ;;  %v1169_v63 = vld [vmem:[#allocation8] sm:$0xff] }
 0x225   : > { %v6276_v49 = vpack.c.bf16 %v1083_v47, %v1082_v46  ;;  %v1067_v51 = vld [vmem:[#allocation6 + $0x78] sm:$0xff]  ;;  %v1170_v5 = vld [vmem:[#allocation8 + $0x8] sm:$0xff] }
 0x226   : > { %6259 = vmatpush3.bf16.msra.mxu0 %v6258_v24  ;;  %6290 = vmatpush3.bf16.msra.mxu1 %v6258_v24  ;;  %v6278_v52 = vpack.c.bf16 %v1067_v51, %v1066_v50 }
 0x227   : > { %6261 = vmatprep.subr.bf16.mxu0 %v6260_v25  ;;  %6283 = vmatprep.subr.bf16.mxu1 %v6260_v25 }
 0x22a   : > { %6263 = vmatpush3.bf16.msra.mxu0 %v6262_v30  ;;  %6291 = vmatpush3.bf16.msra.mxu1 %v6262_v30 }
 0x22b   : > { %6265 = vmatprep.subr.bf16.mxu0 %v6264_v31  ;;  %6284 = vmatprep.subr.bf16.mxu1 %v6264_v31 }
 0x22e   : > { %6267 = vmatpush3.bf16.msra.mxu0 %v6266_v36  ;;  %6292 = vmatpush3.bf16.msra.mxu1 %v6266_v36 }
 0x22f   : > { %6269 = vmatprep.subr.bf16.mxu0 %v6268_v37  ;;  %6285 = vmatprep.subr.bf16.mxu1 %v6268_v37 }
 0x232   : > { %6271 = vmatpush3.bf16.msra.mxu0 %v6270_v42  ;;  %6293 = vmatpush3.bf16.msra.mxu1 %v6270_v42 }
 0x233   : > { %6273 = vmatprep.subr.bf16.mxu0 %v6272_v43  ;;  %6286 = vmatprep.subr.bf16.mxu1 %v6272_v43 }
 0x236   : > { %6275 = vmatpush3.bf16.msra.mxu0 %v6274_v48  ;;  %6294 = vmatpush3.bf16.msra.mxu1 %v6274_v48 }
 0x237   : > { %6277 = vmatprep.subr.bf16.mxu0 %v6276_v49  ;;  %6287 = vmatprep.subr.bf16.mxu1 %v6276_v49 }
 0x23a   : > { %6279 = vmatpush3.bf16.msra.mxu0 %v6278_v52  ;;  %6295 = vmatpush3.bf16.msra.mxu1 %v6278_v52 }
 0x29a   : > { %v1021_v56 = vpop.permute.xlu1 %1020  ;;  %v1018_v57 = vpop.permute.xlu0 %1017 }
 0x29b   : > { %vm1031_vm0 = vcmp.eq.s32.totalorder %v1021_v56, %v1015_v55  ;;  %vm1028_vm1 = vcmp.eq.s32.totalorder %v1018_v57, %v1014_v54  ;;  %vm1029_vm2 = vcmp.eq.s32.totalorder %v1018_v57, %v1015_v55  ;;  %vm1030_vm3 = vcmp.eq.s32.totalorder %v1021_v56, %v1014_v54 }
 0x29c   : > { %5821 = vmatprep.mubr.msk.f32.mxu0 %vm1029_vm2, %v7307_v58 }
 0x29d   : > { %5822 = vmatmul.mubr.msk.f32.vlgmr.msra.gmra.mrb[0].mxu0 %vm1028_vm1, %v7307_v58 }
 0x29e   : > { %v1027_v59 = vpop.permute.xlu1 %1026  ;;  %v1024_v60 = vpop.permute.xlu0 %1023  ;;  %5823 = vmatprep.mubr.msk.f32.mxu0 %vm1031_vm0, %v7307_v58 }
 0x29f   : > { %vm1032_vm4 = vcmp.eq.s32.totalorder %v1024_v60, %v1014_v54  ;;  %vm1033_vm5 = vcmp.eq.s32.totalorder %v1024_v60, %v1015_v55  ;;  %vm1035_vm6 = vcmp.eq.s32.totalorder %v1027_v59, %v1015_v55  ;;  %vm1034_vm7 = vcmp.eq.s32.totalorder %v1027_v59, %v1014_v54 }
 0x2a0   : > { %5825 = vmatprep.mubr.msk.f32.mxu1 %vm1033_vm5, %v7307_v58 }
 0x2a1   : > { %5824 = vmatmul.mubr.msk.f32.gmra.mrb[2].mxu0 %vm1030_vm3, %v7307_v58  ;;  %5826 = vmatmul.mubr.msk.f32.vlgmr.msra.gmra.mrb[0].mxu1 %vm1032_vm4, %v7307_v58 }
 0x2a2   : > { %5827 = vmatprep.mubr.msk.f32.mxu1 %vm1035_vm6, %v7307_v58 }
 0x2a5   : > { %5828 = vmatmul.mubr.msk.f32.gmra.mrb[2].mxu1 %vm1034_vm7, %v7307_v58 }
 0x370   : > { %v5988_v61 = vpop.f32.mrb[0].mxu0 }
 0x371   : > { %v5989_v62 = vpop.f32.mrb[1].mxu0 }
 0x372   : > { %v5990_v0 = vadd.f32 %v5989_v62, %v5988_v61 }
 0x374   : > { %v1171_v1 = vadd.f32 %v5990_v0, %v1169_v63  ;;  %v5991_v2 = vpop.f32.mrb[2].mxu0  ;;  %v5994_v3 = vpop.f32.mrb[0].mxu1 }
 0x375   : > { %v5992_v4 = vpop.f32.mrb[3].mxu0  ;;  %v5995_v6 = vpop.f32.mrb[1].mxu1 }
 0x376   : > { %1175 = vst [vmem:[#allocation2] sm:$0xff] %v1171_v1  ;;  %v5993_v7 = vadd.f32 %v5992_v4, %v5991_v2  ;;  %v5996_v8 = vadd.f32 %v5995_v6, %v5994_v3 }
 0x378   : > { %v1172_v9 = vadd.f32 %v5993_v7, %v1170_v5  ;;  %v1173_v10 = vadd.f32 %v5996_v8, %v1169_v63  ;;  %v5997_v11 = vpop.f32.mrb[2].mxu1 }
 0x379   : > { %v5998_v12 = vpop.f32.mrb[3].mxu1 }
 0x37a   : > { %1176 = vst [vmem:[#allocation2 + $0x8] sm:$0xff] %v1172_v9  ;;  %1177 = vst [vmem:[#allocation2 + $0x10] sm:$0xff] %v1173_v10  ;;  %v5999_v13 = vadd.f32 %v5998_v12, %v5997_v11 }
 0x37c   : > { %v1174_v14 = vadd.f32 %v5999_v13, %v1170_v5 }
 0x37e   : > { %1178 = vst [vmem:[#allocation2 + $0x18] sm:$0xff] %v1174_v14 }
 0x37f PF: > { %v6521_v15 = vld [vmem:[%s7975_s6 + $0x4] ss:$12 sps:$4 sm:$0xff]   ;;  %v6523_v16 = vld [vmem:[%s7975_s6] ss:$12 sps:$4 sm:$0xff]   ;;  %v7308_v17 = vmov 0   ;;  %v1219_v46 = vlaneseq  ;;  %s7309_s19 = smov 64  }
 0x380   : > { %1394 = vmatprep.mubr.bf16.mxu0 %v7308_v17  ;;  %1362 = vmatprep.subr.bf16.mxu0 %v6521_v15  ;;  %v6524_v18 = vld [vmem:[%s7975_s6 + $0x1c] ss:$12 sps:$4 sm:$0xff]   ;;  %v6526_v19 = vld [vmem:[%s7975_s6 + $0x18] ss:$12 sps:$4 sm:$0xff]   ;;  %v6527_v20 = vld [vmem:[%s7975_s6 + $0x34] ss:$12 sps:$4 sm:$0xff]  }
 0x381   : > { %1363 = vmatpush1.bf16.msra.mxu0 %v6523_v16  ;;  %v6529_v21 = vld [vmem:[%s7975_s6 + $0x30] ss:$12 sps:$4 sm:$0xff]   ;;  %v6530_v22 = vld [vmem:[%s7975_s6 + $0x4c] ss:$12 sps:$4 sm:$0xff]   ;;  %v6532_v24 = vld [vmem:[%s7975_s6 + $0x48] ss:$12 sps:$4 sm:$0xff]  }
 0x382   : > { %1364 = vmatprep.subr.bf16.mxu0 %v6524_v18  ;;  %v1179_v23 = vld [vmem:[#allocation2] sm:$0xff]  ;;  %v1180_v26 = vld [vmem:[#allocation2 + $0x8] sm:$0xff]  ;;  %v6546_v29 = vld [vmem:[%s7975_s6 + $0x20] ss:$12 sps:$4 sm:$0xff]   ;;  %v8053_v47 = vshrl.u32 %v1219_v46, 7  ;;  %s7310_s18 = smov 96  }
 0x383   : > { %v6533_v25 = vld [vmem:[%s7975_s6 + $0x64] ss:$12 sps:$4 sm:$0xff]   ;;  %v1183_v27 = vpack.c.bf16 %v1180_v26, %v1179_v23  ;;  %v6545_v28 = vld [vmem:[%s7975_s6 + $0x8] ss:$12 sps:$4 sm:$0xff]   ;;  %v6535_v30 = vld [vmem:[%s7975_s6 + $0x60] ss:$12 sps:$4 sm:$0xff]  }
 0x384   : > { %6072 = vmatprep.subr.bf16.mxu1 %v6545_v28  ;;  %v6536_v31 = vld [vmem:[%s7975_s6 + $0x7c] ss:$12 sps:$4 sm:$0xff]   ;;  %v6547_v32 = vld [vmem:[%s7975_s6 + $0x38] ss:$12 sps:$4 sm:$0xff]   ;;  %v6539_v34 = vld [vmem:[%s7975_s6 + $0x94] ss:$12 sps:$4 sm:$0xff]  }
 0x385   : > { %1365 = vmatpush1.bf16.msra.mxu0 %v6526_v19  ;;  %6088 = vmatprep.mubr.bf16.mxu1 %v1183_v27  ;;  %v6538_v33 = vld [vmem:[%s7975_s6 + $0x78] ss:$12 sps:$4 sm:$0xff]   ;;  %v6548_v35 = vld [vmem:[%s7975_s6 + $0x50] ss:$12 sps:$4 sm:$0xff]   ;;  %v6549_v38 = vld [vmem:[%s7975_s6 + $0x68] ss:$12 sps:$4 sm:$0xff]  }
 0x386   : > { %1366 = vmatprep.subr.bf16.mxu0 %v6527_v20  ;;  %6073 = vmatpush3.bf16.msra.mxu1 %v6545_v28  ;;  %v6541_v36 = vld [vmem:[%s7975_s6 + $0x90] ss:$12 sps:$4 sm:$0xff]   ;;  %v6542_v37 = vld [vmem:[%s7975_s6 + $0xac] ss:$12 sps:$4 sm:$0xff]   ;;  %v6544_v39 = vld [vmem:[%s7975_s6 + $0xa8] ss:$12 sps:$4 sm:$0xff]  }
 0x387   : > { %6074 = vmatprep.subr.bf16.mxu1 %v6546_v29  ;;  %v6550_v40 = vld [vmem:[%s7975_s6 + $0x80] ss:$12 sps:$4 sm:$0xff]   ;;  %v6551_v41 = vld [vmem:[%s7975_s6 + $0x98] ss:$12 sps:$4 sm:$0xff]   ;;  %v6552_v44 = vld [vmem:[%s7975_s6 + $0xb0] ss:$12 sps:$4 sm:$0xff]  }
 0x388   : > { %v1181_v42 = vld [vmem:[#allocation2 + $0x10] sm:$0xff]  ;;  %v1182_v43 = vld [vmem:[#allocation2 + $0x18] sm:$0xff]  ;;  %v9148_v48 = vsub.s32 1, %v8053_v47  ;;  %v1221_v50 = vsub.s32 0, %v8053_v47  ;;  %s7311_s4 = smov 32   ;;  %v7312_v5 = vmov 0.0  }
 0x389   : > { %1367 = vmatpush1.bf16.msra.mxu0 %v6529_v21  ;;  %v1184_v45 = vpack.c.bf16 %v1182_v43, %v1181_v42  ;;  %v1217_v49 = vld [vmem:[%s7983_s8] sm:$0x7]  ;;  %vm7313_vm8 = vmmov 0   ;;  %v1229_v10 = vsub.s32 2, %v8053_v47  ;;  %v7314_v20 = vmov 1983009808  }
 0x38a   : > { %1368 = vmatprep.subr.bf16.mxu0 %v6530_v22  ;;  %6075 = vmatpush3.bf16.msra.mxu1 %v6546_v29  ;;  %v1226_v51 = vrot.slane %v1217_v49, %v9148_v48  ;;  %v1222_v54 = vrot.slane %v1217_v49, %v1221_v50  ;;  %v1511_v21 = vunpack.c.l.s4 %v7314_v20  ;;  %vm3244_vm9 = vcmask 261120   ;;  %s9223_s22 = sld [smem:[#allocation43_spill]] }
 0x38b   : > { %6076 = vmatprep.subr.bf16.mxu1 %v6547_v32  ;;  %v1230_v13 = vrot.slane %v1217_v49, %v1229_v10  ;;  %vm3621_vm10 = vcmask 130048   ;;  %vm4754_vm11 = vcmask 523264   ;;  %vm4759_vm12 = vcmask 785408  }
 0x38c   : > { %v1512_v22 = vunpack.c.0.s8 %v1511_v21 }
 0x38d   : > { %1369 = vmatpush1.bf16.msra.mxu0 %v6532_v24 }
 0x38e   : > { %1370 = vmatprep.subr.bf16.mxu0 %v6533_v25  ;;  %6077 = vmatpush3.bf16.msra.mxu1 %v6547_v32  ;;  %v7315_v25 = vmov 1934713408  }
 0x38f   : > { %6078 = vmatprep.subr.bf16.mxu1 %v6548_v35  ;;  %v1543_v26 = vunpack.c.l.s4 %v7315_v25 }
 0x390   : > { %p5932_p3 = scmp.ne.s32.totalorder %s9223_s22, 1 }
 0x391   : > { %1371 = vmatpush1.bf16.msra.mxu0 %v6535_v30 }
 0x392   : > { %1372 = vmatprep.subr.bf16.mxu0 %v6536_v31  ;;  %6079 = vmatpush3.bf16.msra.mxu1 %v6548_v35 }
 0x393   : > { %6080 = vmatprep.subr.bf16.mxu1 %v6549_v38 }
 0x395   : > { %1373 = vmatpush1.bf16.msra.mxu0 %v6538_v33 }
 0x396   : > { %1374 = vmatprep.subr.bf16.mxu0 %v6539_v34  ;;  %6081 = vmatpush3.bf16.msra.mxu1 %v6549_v38  ;;  %v1544_v34 = vunpack.c.0.s8 %v1543_v26 }
 0x397   : > { %6082 = vmatprep.subr.bf16.mxu1 %v6550_v40 }
 0x399   : > { %1375 = vmatpush1.bf16.msra.mxu0 %v6541_v36 }
 0x39a   : > { %1376 = vmatprep.subr.bf16.mxu0 %v6542_v37  ;;  %6083 = vmatpush3.bf16.msra.mxu1 %v6550_v40 }
 0x39b   : > { %6084 = vmatprep.subr.bf16.mxu1 %v6551_v41 }
 0x39d   : > { %1377 = vmatpush1.bf16.msra.mxu0 %v6544_v39 }
 0x39e   : > { %6085 = vmatpush3.bf16.msra.mxu1 %v6551_v41  ;;  %6092 = vmatprep.subr.bf16.mxu0 %v7312_v5  ;;  %v8165_v41 = vsub.s32 %v1544_v34, %v8053_v47 }
 0x39f   : > { %6086 = vmatprep.subr.bf16.mxu1 %v6552_v44 }
 0x3a0   : > { %1395 = vmatmul.mubr.bf16.vlgmr.msra.gmra.mrb[0].mxu0 %v1183_v27  ;;  %v8156_v27 = vsub.s32 %v1512_v22, %v8053_v47 }
 0x3a1   : > { %1404 = vmatprep.mubr.bf16.mxu0 %v7308_v17 }
 0x3a2   : > { %6087 = vmatpush3.bf16.msra.mxu1 %v6552_v44 }
 0x3a3   : > { %6104 = vmatprep.subr.bf16.mxu1 %v7312_v5 }
 0x3a5   : > { %6089 = vmatmul.mubr.bf16.vlgmr.msra.gmra.mrb[0].mxu1 %v1184_v45 }
 0x3a6   : > { %6106 = vmatprep.mubr.msk.bf16.mxu1 %vm7313_vm8, %v7312_v5 }
 0x3a8   : > { %1405 = vmatmul.mubr.bf16.gmra.mrb[4].mxu0 %v1184_v45 }
 0x3a9   : > { %6094 = vmatprep.mubr.msk.bf16.mxu0 %vm7313_vm8, %v7312_v5 }
 0x473   : > { %v1396_v52 = vpop.f32.mrb[0].mxu0 }
 0x474   : > { %v1398_v53 = vpop.f32.mrb[1].mxu0  ;;  %v1397_v58 = vadd.f32 %v1396_v52, %v1222_v54 }
 0x475   : > { %v8062_v55 = vadd.f32 %v1398_v53, %v1226_v51  ;;  %v1400_v56 = vpop.f32.mrb[2].mxu0 }
 0x476   : > { %v1402_v57 = vpop.f32.mrb[3].mxu0  ;;  %v8074_v62 = vmul.f32 0.17677669, %v1397_v58  ;;  %v1401_v63 = vadd.f32 %v1400_v56, %v1222_v54 }
 0x477   : > { %2076 = vrot.lane.b32.xlu1 %v8062_v55, %s7309_s19  ;;  %2064 = vrot.lane.b32.xlu0 %v8062_v55, %s7310_s18  ;;  %v8068_v59 = vadd.f32 %v1402_v57, %v1226_v51 }
 0x478   : > { %v8080_v2 = vmul.f32 0.17677669, %v1401_v63  ;;  %v6090_v11 = vpop.f32.mrb[0].mxu1 }
 0x479   : > { %v1449_v12 = vpop.f32.mrb[1].mxu1  ;;  %v8149_v19 = vadd.f32 %v6090_v11, %v1230_v13 }
 0x47a   : > { %v6091_v14 = vpop.f32.mrb[2].mxu1  ;;  %v8133_v16 = vadd.f32 %v1449_v12, %v1230_v13 }
 0x47b   : > { %2078 = vrot.lane.b32.xlu1 %v8068_v59, %s7309_s19  ;;  %2088 = vrot.lane.b32.xlu0 %v8062_v55, %s7311_s4  ;;  %v1406_v60 = vpop.f32.mrb[4].mxu0  ;;  %v1452_v15 = vpop.f32.mrb[3].mxu1  ;;  %v8135_v17 = vadd.f32 %v6091_v14, %v1230_v13 }
 0x47c   : > { %v1408_v61 = vpop.f32.mrb[5].mxu0  ;;  %v1407_v6 = vadd.f32 %v1406_v60, %v1222_v54  ;;  %v8137_v18 = vadd.f32 %v1452_v15, %v1230_v13 }
 0x47d   : > { %v1410_v0 = vpop.f32.mrb[6].mxu0  ;;  %v8094_v3 = vadd.f32 %v1408_v61, %v1226_v51 }
 0x47e   : > { %v1412_v1 = vpop.f32.mrb[7].mxu0  ;;  %v1411_v7 = vadd.f32 %v1410_v0, %v1222_v54  ;;  %v8112_v8 = vmul.f32 0.17677669, %v1407_v6 }
 0x47f   : > { %2090 = vrot.lane.b32.xlu1 %v8068_v59, %s7311_s4  ;;  %1472 = vrot.lane.b32.xlu0 %v8074_v62, %s7310_s18  ;;  %v8096_v4 = vadd.f32 %v1412_v1, %v1226_v51 }
 0x480   : > { %v8114_v9 = vmul.f32 0.17677669, %v1411_v7 }
 0x483   : > { %1474 = vrot.lane.b32.xlu1 %v8080_v2, %s7310_s18  ;;  %2066 = vrot.lane.b32.xlu0 %v8068_v59, %s7310_s18 }
 0x487   : > { %1486 = vrot.lane.b32.xlu1 %v8080_v2, %s7309_s19  ;;  %1484 = vrot.lane.b32.xlu0 %v8074_v62, %s7309_s19 }
 0x48b   : > { %1498 = vrot.lane.b32.xlu1 %v8080_v2, %s7311_s4  ;;  %1496 = vrot.lane.b32.xlu0 %v8074_v62, %s7311_s4 }
 0x48f   : > { %2070 = vrot.lane.b32.xlu1 %v8096_v4, %s7310_s18  ;;  %2068 = vrot.lane.b32.xlu0 %v8094_v3, %s7310_s18 }
 0x493   : > { %2082 = vrot.lane.b32.xlu1 %v8096_v4, %s7309_s19  ;;  %2080 = vrot.lane.b32.xlu0 %v8094_v3, %s7309_s19 }
 0x497   : > { %2094 = vrot.lane.b32.xlu1 %v8096_v4, %s7311_s4  ;;  %2092 = vrot.lane.b32.xlu0 %v8094_v3, %s7311_s4 }
 0x49b   : > { %1478 = vrot.lane.b32.xlu1 %v8114_v9, %s7310_s18  ;;  %1476 = vrot.lane.b32.xlu0 %v8112_v8, %s7310_s18 }
 0x49f   : > { %1490 = vrot.lane.b32.xlu1 %v8114_v9, %s7309_s19  ;;  %1488 = vrot.lane.b32.xlu0 %v8112_v8, %s7309_s19 }
 0x4a3   : > { %1502 = vrot.lane.b32.xlu1 %v8114_v9, %s7311_s4  ;;  %1500 = vrot.lane.b32.xlu0 %v8112_v8, %s7311_s4 }
 0x4a7   : > { %2656 = vrot.lane.b32.xlu1 %v8133_v16, %s7310_s18  ;;  %2658 = vrot.lane.b32.xlu0 %v8137_v18, %s7310_s18 }
 0x4ab   : > { %2668 = vrot.lane.b32.xlu1 %v8133_v16, %s7309_s19  ;;  %2680 = vrot.lane.b32.xlu0 %v8133_v16, %s7311_s4 }
 0x4af   : > { %2670 = vrot.lane.b32.xlu1 %v8137_v18, %s7309_s19 }
 0x4b3   : > { %2682 = vrot.lane.b32.xlu1 %v8137_v18, %s7311_s4 }
 0x4b7   : > { %2660 = vrot.lane.b32.xlu1 %v8149_v19, %s7310_s18 }
 0x4e9   : > { %v2077_v23 = vpop.permute.xlu1 %2076  ;;  %v2065_v24 = vpop.permute.xlu0 %2064 }
 0x4ea   : > { %v2100_v30 = vcombine.low %v8062_v55, %v2077_v23  ;;  %v2101_v31 = vcombine.high %v8062_v55, %v2077_v23 }
 0x4ec   : > { %v2108_v39 = vrot.slane %v2100_v30, %v8156_v27  ;;  %v2115_v40 = vrot.slane %v2101_v31, %v8156_v27 }
 0x4ed   : > { %v2079_v28 = vpop.permute.xlu1 %2078  ;;  %v2089_v29 = vpop.permute.xlu0 %2088 }
 0x4ee   : > { %v2116_v32 = vcombine.low %v2065_v24, %v2089_v29  ;;  %v2117_v33 = vcombine.high %v2065_v24, %v2089_v29  ;;  %v2168_v46 = vcombine.low %v8068_v59, %v2079_v28  ;;  %v2169_v49 = vcombine.high %v8068_v59, %v2079_v28 }
 0x4f0   : > { %v2124_v35 = vrot.slane %v2116_v32, %v8156_v27  ;;  %v2131_v36 = vrot.slane %v2117_v33, %v8156_v27  ;;  %v2176_v60 = vrot.slane %v2168_v46, %v8156_v27  ;;  %v2183_v59 = vrot.slane %v2169_v49, %v8156_v27 }
 0x4f1   : > { %v2091_v37 = vpop.permute.xlu1 %2090  ;;  %v1473_v38 = vpop.permute.xlu0 %1472 }
 0x4f2   : > { %v2132_v42 = vcombine.low %v2108_v39, %v2124_v35  ;;  %v2133_v43 = vcombine.high %v2108_v39, %v2124_v35  ;;  %v2148_v44 = vcombine.low %v2115_v40, %v2131_v36  ;;  %v2149_v45 = vcombine.high %v2115_v40, %v2131_v36 }
 0x4f4   : > { %v8170_v55 = vrot.slane %v2132_v42, %v8165_v41  ;;  %v8173_v56 = vrot.slane %v2133_v43, %v8165_v41  ;;  %v8176_v57 = vrot.slane %v2148_v44, %v8165_v41  ;;  %v8179_v58 = vrot.slane %v2149_v45, %v8165_v41 }
 0x4f5   : > { %v1475_v51 = vpop.permute.xlu1 %1474  ;;  %v2067_v52 = vpop.permute.xlu0 %2066 }
 0x4f6   : > { %v2184_v53 = vcombine.low %v2067_v52, %v2091_v37  ;;  %v2185_v54 = vcombine.high %v2067_v52, %v2091_v37  ;;  %v2372_v20 = vcombine.low %v8170_v55, %v8173_v56  ;;  %v5861_v21 = vcombine.high %v8170_v55, %v8173_v56 }
 0x4f7   : > { %v2388_v22 = vcombine.low %v8176_v57, %v8179_v58 }
 0x4f8   : > { %v2192_v61 = vrot.slane %v2184_v53, %v8156_v27  ;;  %v2199_v63 = vrot.slane %v2185_v54, %v8156_v27 }
 0x4f9   : > { %v1487_v0 = vpop.permute.xlu1 %1486  ;;  %v1485_v1 = vpop.permute.xlu0 %1484 }
 0x4fa   : > { %v1576_v6 = vcombine.low %v8080_v2, %v1487_v0  ;;  %v1577_v7 = vcombine.high %v8080_v2, %v1487_v0  ;;  %v1508_v10 = vcombine.low %v8074_v62, %v1485_v1  ;;  %v1509_v11 = vcombine.high %v8074_v62, %v1485_v1 }
 0x4fb   : > { %v2200_v12 = vcombine.low %v2176_v60, %v2192_v61  ;;  %v2201_v13 = vcombine.high %v2176_v60, %v2192_v61  ;;  %v2216_v14 = vcombine.low %v2183_v59, %v2199_v63  ;;  %v2217_v15 = vcombine.high %v2183_v59, %v2199_v63 }
 0x4fc   : > { %v5862_v2 = vcombine.high %v8176_v57, %v8179_v58  ;;  %v1584_v33 = vrot.slane %v1576_v6, %v8156_v27  ;;  %v1591_v34 = vrot.slane %v1577_v7, %v8156_v27  ;;  %v1516_v35 = vrot.slane %v1508_v10, %v8156_v27 }
 0x4fd   : > { %v8198_v23 = vrot.slane %v2200_v12, %v8165_v41  ;;  %v8201_v62 = vrot.slane %v2201_v13, %v8165_v41  ;;  %v8204_v24 = vrot.slane %v2216_v14, %v8165_v41  ;;  %v8207_v25 = vrot.slane %v2217_v15, %v8165_v41  ;;  %v1499_v26 = vpop.permute.xlu1 %1498  ;;  %v1497_v28 = vpop.permute.xlu0 %1496 }
 0x4fe   : > { %v1592_v29 = vcombine.low %v1475_v51, %v1499_v26  ;;  %v1593_v30 = vcombine.high %v1475_v51, %v1499_v26  ;;  %v1524_v31 = vcombine.low %v1473_v38, %v1497_v28  ;;  %v1525_v32 = vcombine.high %v1473_v38, %v1497_v28 }
 0x4ff   : > { %v1523_v36 = vrot.slane %v1509_v11, %v8156_v27  ;;  %v2440_v43 = vcombine.low %v8198_v23, %v8201_v62  ;;  %v5863_v38 = vcombine.high %v8198_v23, %v8201_v62  ;;  %v2456_v44 = vcombine.low %v8204_v24, %v8207_v25 }
 0x500   : > { %v1600_v37 = vrot.slane %v1592_v29, %v8156_v27  ;;  %v1607_v39 = vrot.slane %v1593_v30, %v8156_v27  ;;  %v1532_v40 = vrot.slane %v1524_v31, %v8156_v27  ;;  %v1539_v42 = vrot.slane %v1525_v32, %v8156_v27 }
 0x501   : > { %v5864_v45 = vcombine.high %v8204_v24, %v8207_v25  ;;  %v8225_v46 = vpop.permute.xlu1 %2070  ;;  %v8227_v49 = vpop.permute.xlu0 %2068 }
 0x502   : > { %v1608_v51 = vcombine.low %v1584_v33, %v1600_v37  ;;  %v1609_v52 = vcombine.high %v1584_v33, %v1600_v37  ;;  %v1624_v53 = vcombine.low %v1591_v34, %v1607_v39  ;;  %v1625_v54 = vcombine.high %v1591_v34, %v1607_v39 }
 0x503   : > { %v1540_v55 = vcombine.low %v1516_v35, %v1532_v40  ;;  %v1541_v56 = vcombine.high %v1516_v35, %v1532_v40  ;;  %v1556_v60 = vcombine.low %v1523_v36, %v1539_v42  ;;  %v1557_v59 = vcombine.high %v1523_v36, %v1539_v42 }
 0x504   : > { %v1616_v61 = vrot.slane %v1608_v51, %v8165_v41  ;;  %v1623_v63 = vrot.slane %v1609_v52, %v8165_v41  ;;  %v1632_v0 = vrot.slane %v1624_v53, %v8165_v41  ;;  %v1639_v1 = vrot.slane %v1625_v54, %v8165_v41 }
 0x505   : > { %v1548_v6 = vrot.slane %v1540_v55, %v8165_v41  ;;  %v1555_v7 = vrot.slane %v1541_v56, %v8165_v41  ;;  %v1564_v10 = vrot.slane %v1556_v60, %v8165_v41  ;;  %v1571_v11 = vrot.slane %v1557_v59, %v8165_v41  ;;  %v2083_v23 = vpop.permute.xlu1 %2082  ;;  %v2081_v28 = vpop.permute.xlu0 %2080 }
 0x506   : > { %v1848_v12 = vcombine.low %v1616_v61, %v1623_v63  ;;  %v5855_v13 = vcombine.high %v1616_v61, %v1623_v63  ;;  %v1864_v14 = vcombine.low %v1632_v0, %v1639_v1  ;;  %v5856_v15 = vcombine.high %v1632_v0, %v1639_v1 }
 0x507   : > { %v1780_v62 = vcombine.low %v1548_v6, %v1555_v7  ;;  %v5853_v24 = vcombine.high %v1548_v6, %v1555_v7  ;;  %v1796_v25 = vcombine.low %v1564_v10, %v1571_v11  ;;  %v5854_v26 = vcombine.high %v1564_v10, %v1571_v11 }
 0x508   : > { %v1855_v29 = vrot.slane %v1848_v12, %v8156_v27  ;;  %v1863_v30 = vrot.slane %v5855_v13, %v8156_v27  ;;  %v8240_v31 = vrot.slane %v1864_v14, %v8156_v27  ;;  %v1879_v32 = vrot.slane %v5856_v15, %v8156_v27 }
 0x509   : > { %v1787_v33 = vrot.slane %v1780_v62, %v8156_v27  ;;  %v1795_v34 = vrot.slane %v5853_v24, %v8156_v27  ;;  %v8246_v35 = vrot.slane %v1796_v25, %v8156_v27  ;;  %v8249_v36 = vrot.slane %v5854_v26, %v8156_v27  ;;  %v2095_v56 = vpop.permute.xlu1 %2094 }
 0x50a   : > { %v8252_v37 = vrot.slane %v2372_v20, %v8156_v27  ;;  %v8255_v39 = vrot.slane %v5861_v21, %v8156_v27  ;;  %v8258_v40 = vrot.slane %v2388_v22, %v8156_v27  ;;  %v1880_v42 = vcombine.low %v1855_v29, %v1863_v30 }
 0x50b   : > { %v8264_v51 = vrot.slane %v5862_v2, %v8156_v27  ;;  %v8267_v52 = vrot.slane %v2440_v43, %v8156_v27  ;;  %v8270_v53 = vrot.slane %v5863_v38, %v8156_v27  ;;  %v1881_v20 = vcombine.high %v1855_v29, %v1863_v30  ;;  %v2093_v38 = vpop.permute.xlu0 %2092 }
 0x50c   : > { %v8273_v21 = vrot.slane %v2456_v44, %v8156_v27  ;;  %v8276_v22 = vrot.slane %v5864_v45, %v8156_v27  ;;  %v1896_v54 = vcombine.low %v8240_v31, %v1879_v32  ;;  %v1812_v55 = vcombine.low %v1787_v33, %v1795_v34 }
 0x50d   : > { %v1897_v57 = vcombine.high %v8240_v31, %v1879_v32  ;;  %v1813_v58 = vcombine.high %v1787_v33, %v1795_v34  ;;  %v1828_v2 = vcombine.low %v8246_v35, %v8249_v36  ;;  %v1829_v43 = vcombine.high %v8246_v35, %v8249_v36  ;;  %v8317_v31 = vpop.permute.xlu1 %1478 }
 0x50e   : > { %v8285_v44 = vrot.slane %v1880_v42, %v8165_v41  ;;  %v2304_v45 = vcombine.low %v8096_v4, %v2083_v23  ;;  %v2305_v60 = vcombine.high %v8096_v4, %v2083_v23  ;;  %v2236_v59 = vcombine.low %v8094_v3, %v2081_v28 }
 0x50f   : > { %v8291_v61 = vrot.slane %v1881_v20, %v8165_v41  ;;  %v2237_v63 = vcombine.high %v8094_v3, %v2081_v28  ;;  %v2320_v0 = vcombine.low %v8225_v46, %v2095_v56  ;;  %v2321_v1 = vcombine.high %v8225_v46, %v2095_v56  ;;  %v8327_v36 = vpop.permute.xlu0 %1476 }
 0x510   : > { %v8297_v6 = vrot.slane %v1896_v54, %v8165_v41  ;;  %v8300_v7 = vrot.slane %v1812_v55, %v8165_v41  ;;  %v2312_v10 = vrot.slane %v2304_v45, %v8156_v27  ;;  %v2252_v4 = vcombine.low %v8227_v49, %v2093_v38 }
 0x511   : > { %v2319_v11 = vrot.slane %v2305_v60, %v8156_v27  ;;  %v2328_v12 = vrot.slane %v2320_v0, %v8156_v27  ;;  %v2335_v3 = vrot.slane %v2321_v1, %v8156_v27  ;;  %v2253_v13 = vcombine.high %v8227_v49, %v2093_v38 }
 0x512   : > { %v8309_v46 = vrot.slane %v1828_v2, %v8165_v41  ;;  %v2244_v14 = vrot.slane %v2236_v59, %v8156_v27  ;;  %v2251_v15 = vrot.slane %v2237_v63, %v8156_v27  ;;  %v2260_v23 = vrot.slane %v2252_v4, %v8156_v27 }
 0x513   : > { %v2336_v62 = vcombine.low %v2312_v10, %v2328_v12  ;;  %v2337_v24 = vcombine.high %v2312_v10, %v2328_v12  ;;  %v2352_v25 = vcombine.low %v2319_v11, %v2335_v3  ;;  %v2353_v26 = vcombine.high %v2319_v11, %v2335_v3  ;;  %v1491_v3 = vpop.permute.xlu1 %1490 }
 0x514   : > { %v2267_v28 = vrot.slane %v2253_v13, %v8156_v27  ;;  %v2268_v29 = vcombine.low %v2244_v14, %v2260_v23  ;;  %v2269_v30 = vcombine.high %v2244_v14, %v2260_v23  ;;  %v2404_v49 = vcombine.low %v8252_v37, %v8255_v39 }
 0x515   : > { %v2344_v32 = vrot.slane %v2336_v62, %v8165_v41  ;;  %v2351_v33 = vrot.slane %v2337_v24, %v8165_v41  ;;  %v8322_v34 = vrot.slane %v2352_v25, %v8165_v41  ;;  %v8325_v35 = vrot.slane %v2353_v26, %v8165_v41  ;;  %v1489_v62 = vpop.permute.xlu0 %1488 }
 0x516   : > { %v8330_v42 = vrot.slane %v2268_v29, %v8165_v41  ;;  %v8333_v20 = vrot.slane %v2269_v30, %v8165_v41  ;;  %v2284_v54 = vcombine.low %v2251_v15, %v2267_v28  ;;  %v2285_v55 = vcombine.high %v2251_v15, %v2267_v28 }
 0x517   : > { %v8336_v56 = vrot.slane %v1897_v57, %v8165_v41  ;;  %v8339_v2 = vrot.slane %v1813_v58, %v8165_v41  ;;  %v2420_v38 = vcombine.low %v8258_v40, %v8264_v51  ;;  %v2472_v45 = vcombine.low %v8267_v52, %v8270_v53 }
 0x518   : > { %v1912_v60 = vcombine.low %v8285_v44, %v8297_v6  ;;  %v8348_v59 = vrot.slane %v1829_v43, %v8165_v41  ;;  %v2576_v63 = vcombine.low %v2344_v32, %v2351_v33  ;;  %v5867_v0 = vcombine.high %v2344_v32, %v2351_v33 }
 0x519   : > { %v1844_v57 = vcombine.low %v8300_v7, %v8309_v46  ;;  %v8353_v58 = vrot.slane %v2284_v54, %v8165_v41  ;;  %v8356_v1 = vrot.slane %v2285_v55, %v8165_v41  ;;  %v2412_v10 = vrot.slane %v2404_v49, %v8165_v41 }
 0x51a   : > { %v2592_v4 = vcombine.low %v8322_v34, %v8325_v35  ;;  %v5868_v43 = vcombine.high %v8322_v34, %v8325_v35  ;;  %v2508_v11 = vcombine.low %v8330_v42, %v8333_v20  ;;  %v5865_v12 = vcombine.high %v8330_v42, %v8333_v20 }
 0x51b   : > { %v2428_v13 = vrot.slane %v2420_v38, %v8165_v41  ;;  %v2480_v14 = vrot.slane %v2472_v45, %v8165_v41  ;;  %v2488_v15 = vcombine.low %v8273_v21, %v8276_v22  ;;  %v2405_v23 = vcombine.high %v8252_v37, %v8255_v39  ;;  %v1503_v45 = vpop.permute.xlu1 %1502 }
 0x51c   : > { %v8374_v24 = vrot.slane %v2576_v63, %v8156_v27  ;;  %v8377_v25 = vrot.slane %v5867_v0, %v8156_v27  ;;  %v2421_v26 = vcombine.high %v8258_v40, %v8264_v51  ;;  %v2473_v28 = vcombine.high %v8267_v52, %v8270_v53 }
 0x51d   : > { %v2524_v29 = vcombine.low %v8353_v58, %v8356_v1  ;;  %v2496_v30 = vrot.slane %v2488_v15, %v8165_v41  ;;  %v8387_v37 = vrot.slane %v2405_v23, %v8165_v41  ;;  %v2489_v39 = vcombine.high %v8273_v21, %v8276_v22  ;;  %v1501_v15 = vpop.permute.xlu0 %1500 }
 0x51e   : > { %v8392_v49 = vrot.slane %v2421_v26, %v8165_v41  ;;  %v8395_v32 = vrot.slane %v2473_v28, %v8165_v41  ;;  %v1712_v40 = vcombine.low %v8114_v9, %v1491_v3  ;;  %v1713_v51 = vcombine.high %v8114_v9, %v1491_v3 }
 0x51f   : > { %v5866_v52 = vcombine.high %v8353_v58, %v8356_v1  ;;  %v2436_v53 = vcombine.low %v2412_v10, %v2428_v13  ;;  %v2504_v33 = vcombine.low %v2480_v14, %v2496_v30  ;;  %v8402_v54 = vrot.slane %v2489_v39, %v8165_v41 }
 0x520   : > { %v2438_v21 = vcombine.low %v8387_v37, %v8392_v49  ;;  %v1720_v22 = vrot.slane %v1712_v40, %v8156_v27  ;;  %v1644_v55 = vcombine.low %v8112_v8, %v1489_v62  ;;  %v1645_v38 = vcombine.high %v8112_v8, %v1489_v62 }
 0x521   : > { %v2644_v63 = vpack.c.bf16 %v2504_v33, %v2436_v53  ;;  %v2506_v9 = vcombine.low %v8395_v32, %v8402_v54  ;;  %v1727_v0 = vrot.slane %v1713_v51, %v8156_v27  ;;  %v2052_v3 = vpack.c.bf16 %v1912_v60, %v1844_v57 }
 0x522   : > { %v1846_v23 = vcombine.low %v8339_v2, %v8348_v59  ;;  %v1914_v26 = vcombine.low %v8291_v61, %v8336_v56  ;;  %v2437_v28 = vcombine.high %v2412_v10, %v2428_v13  ;;  %v2505_v39 = vcombine.high %v2480_v14, %v2496_v30 }
 0x523   : > { %v3249_v40 = vsel %vm3244_vm9, %v2644_v63, 0  ;;  %v2646_v8 = vpack.c.bf16 %v2506_v9, %v2438_v21  ;;  %v1728_v62 = vcombine.low %v8317_v31, %v1503_v45  ;;  %v1729_v53 = vcombine.high %v8317_v31, %v1503_v45 }
 0x524   : > { %6093 = vmatpush3.bf16.xpose.msra.mxu0 %v3249_v40  ;;  %v1652_v51 = vrot.slane %v1644_v55, %v8156_v27  ;;  %v2645_v60 = vpack.c.bf16 %v2505_v39, %v2437_v28  ;;  %v1660_v57 = vcombine.low %v8327_v36, %v1501_v15  ;;  %v1661_v33 = vcombine.high %v8327_v36, %v1501_v15 }
 0x525   : > { %v3343_v48 = vsel %vm3244_vm9, %v2646_v8, 0  ;;  %v1659_v10 = vrot.slane %v1645_v38, %v8156_v27  ;;  %6098 = vmatprep.subr.bf16.mxu0 %v7312_v5  ;;  %v1736_v13 = vrot.slane %v1728_v62, %v8156_v27  ;;  %v1743_v14 = vrot.slane %v1729_v53, %v8156_v27 }
 0x526   : > { %6105 = vmatpush3.bf16.xpose.msra.mxu1 %v3343_v48  ;;  %v2054_v31 = vpack.c.bf16 %v1914_v26, %v1846_v23  ;;  %v3296_v30 = vsel %vm3244_vm9, %v2645_v60, 0  ;;  %v1668_v21 = vrot.slane %v1660_v57, %v8156_v27  ;;  %v1675_v55 = vrot.slane %v1661_v33, %v8156_v27 }
 0x527   : > { %v1744_v45 = vcombine.low %v1720_v22, %v1736_v13  ;;  %v1745_v36 = vcombine.high %v1720_v22, %v1736_v13  ;;  %v1760_v63 = vcombine.low %v1727_v0, %v1743_v14  ;;  %v1761_v9 = vcombine.high %v1727_v0, %v1743_v14  ;;  %6116 = vmatprep.subr.bf16.mxu1 %v7312_v5 }
 0x528   : > { %v1676_v38 = vcombine.low %v1652_v51, %v1668_v21  ;;  %v1677_v15 = vcombine.high %v1652_v51, %v1668_v21  ;;  %v1692_v28 = vcombine.low %v1659_v10, %v1675_v55  ;;  %v1693_v39 = vcombine.high %v1659_v10, %v1675_v55 }
 0x529   : > { %v1752_v40 = vrot.slane %v1744_v45, %v8165_v41  ;;  %v1759_v48 = vrot.slane %v1745_v36, %v8165_v41  ;;  %v1768_v23 = vrot.slane %v1760_v63, %v8165_v41  ;;  %v1775_v26 = vrot.slane %v1761_v9, %v8165_v41 }
 0x52a   : > { %v1684_v8 = vrot.slane %v1676_v38, %v8165_v41  ;;  %v1691_v22 = vrot.slane %v1677_v15, %v8165_v41  ;;  %v1700_v0 = vrot.slane %v1692_v28, %v8165_v41  ;;  %v1707_v62 = vrot.slane %v1693_v39, %v8165_v41 }
 0x52b   : > { %6095 = vmatmul.mubr.msk.bf16.vlgmr.msra.gmra.mrb[8].mxu0 %vm3244_vm9, %v2052_v3  ;;  %v1984_v53 = vcombine.low %v1752_v40, %v1759_v48  ;;  %v5859_v51 = vcombine.high %v1752_v40, %v1759_v48  ;;  %v2000_v60 = vcombine.low %v1768_v23, %v1775_v26  ;;  %v5860_v57 = vcombine.high %v1768_v23, %v1775_v26 }
 0x52c   : > { %6099 = vmatpush3.bf16.xpose.msra.mxu0 %v3296_v30  ;;  %v1916_v33 = vcombine.low %v1684_v8, %v1691_v22  ;;  %v5857_v10 = vcombine.high %v1684_v8, %v1691_v22  ;;  %v1932_v13 = vcombine.low %v1700_v0, %v1707_v62  ;;  %v5858_v14 = vcombine.high %v1700_v0, %v1707_v62 }
 0x52d   : > { %6107 = vmatmul.mubr.msk.bf16.vlgmr.msra.gmra.mrb[4].mxu1 %vm3244_vm9, %v2054_v31  ;;  %v8442_v21 = vrot.slane %v1984_v53, %v8156_v27  ;;  %v8445_v55 = vrot.slane %v5859_v51, %v8156_v27  ;;  %v8448_v45 = vrot.slane %v2000_v60, %v8156_v27  ;;  %v8451_v3 = vrot.slane %v5860_v57, %v8156_v27 }
 0x52e   : > { %v8454_v30 = vrot.slane %v1916_v33, %v8156_v27  ;;  %v8457_v36 = vrot.slane %v5857_v10, %v8156_v27  ;;  %v8460_v31 = vrot.slane %v1932_v13, %v8156_v27  ;;  %v8463_v63 = vrot.slane %v5858_v14, %v8156_v27  ;;  %6100 = vmatprep.mubr.msk.bf16.mxu0 %vm7313_vm8, %v7312_v5 }
 0x52f   : > { %v2515_v9 = vrot.slane %v2508_v11, %v8156_v27  ;;  %v2523_v38 = vrot.slane %v5865_v12, %v8156_v27  ;;  %v1845_v15 = vcombine.high %v8300_v7, %v8309_v46  ;;  %v1913_v28 = vcombine.high %v8285_v44, %v8297_v6  ;;  %6110 = vmatprep.subr.bf16.mxu0 %v7312_v5 }
 0x530   : > { %v2599_v39 = vrot.slane %v2592_v4, %v8156_v27  ;;  %v2607_v11 = vrot.slane %v5868_v43, %v8156_v27  ;;  %v2531_v7 = vrot.slane %v2524_v29, %v8156_v27  ;;  %v2539_v44 = vrot.slane %v5866_v52, %v8156_v27  ;;  %6118 = vmatprep.mubr.msk.bf16.mxu1 %vm7313_vm8, %v7312_v5 }
 0x531   : > { %v2016_v6 = vcombine.low %v8442_v21, %v8445_v55  ;;  %v2032_v46 = vcombine.low %v8448_v45, %v8451_v3  ;;  %v1948_v34 = vcombine.low %v8454_v30, %v8457_v36  ;;  %v1964_v35 = vcombine.low %v8460_v31, %v8463_v63 }
 0x532   : > { %v2053_v42 = vpack.c.bf16 %v1913_v28, %v1845_v15  ;;  %v2439_v20 = vcombine.high %v8387_v37, %v8392_v49  ;;  %v2507_v58 = vcombine.high %v8395_v32, %v8402_v54  ;;  %v2540_v1 = vcombine.low %v2515_v9, %v2523_v38 }
 0x533   : > { %v2556_v4 = vcombine.low %v2531_v7, %v2539_v44  ;;  %v2608_v43 = vcombine.low %v8374_v24, %v8377_v25  ;;  %v2624_v12 = vcombine.low %v2599_v39, %v2607_v11  ;;  %v2024_v40 = vrot.slane %v2016_v6, %v8165_v41 }
 0x534   : > { %6101 = vmatmul.mubr.msk.bf16.vlgmr.msra.gmra.mrb[12].mxu0 %vm3244_vm9, %v2053_v42  ;;  %v2647_v29 = vpack.c.bf16 %v2507_v58, %v2439_v20  ;;  %v2548_v52 = vrot.slane %v2540_v1, %v8165_v41  ;;  %v2040_v32 = vrot.slane %v2032_v46, %v8165_v41  ;;  %v1956_v54 = vrot.slane %v1948_v34, %v8165_v41 }
 0x535   : > { %v2564_v48 = vrot.slane %v2556_v4, %v8165_v41  ;;  %v2616_v37 = vrot.slane %v2608_v43, %v8165_v41  ;;  %v2632_v49 = vrot.slane %v2624_v12, %v8165_v41  ;;  %6112 = vmatprep.mubr.msk.bf16.mxu0 %vm7313_vm8, %v7312_v5  ;;  %v1972_v23 = vrot.slane %v1964_v35, %v8165_v41  ;;  %v2657_v43 = vpop.permute.xlu1 %2656  ;;  %v2659_v12 = vpop.permute.xlu0 %2658 }
 0x536   : > { %v3390_v26 = vsel %vm3244_vm9, %v2647_v29, 0  ;;  %v1847_v53 = vcombine.high %v8339_v2, %v8348_v59  ;;  %v1915_v51 = vcombine.high %v8291_v61, %v8336_v56  ;;  %v2541_v60 = vcombine.high %v2515_v9, %v2523_v38 }
 0x537   : > { %6111 = vmatpush3.bf16.xpose.msra.mxu0 %v3390_v26  ;;  %v2572_v8 = vcombine.low %v2548_v52, %v2564_v48  ;;  %v2640_v22 = vcombine.low %v2616_v37, %v2632_v49  ;;  %v2573_v0 = vcombine.high %v2548_v52, %v2564_v48  ;;  %v2641_v62 = vcombine.high %v2616_v37, %v2632_v49 }
 0x538   : > { %6122 = vmatprep.subr.bf16.mxu0 %v7312_v5  ;;  %v2557_v57 = vcombine.high %v2531_v7, %v2539_v44  ;;  %v2609_v10 = vcombine.high %v8374_v24, %v8377_v25  ;;  %v2625_v13 = vcombine.high %v2599_v39, %v2607_v11  ;;  %v1980_v15 = vcombine.low %v1956_v54, %v1972_v23 }
 0x539   : > { %v2648_v33 = vpack.c.bf16 %v2640_v22, %v2572_v8  ;;  %v2649_v14 = vpack.c.bf16 %v2641_v62, %v2573_v0  ;;  %v2555_v28 = vrot.slane %v2541_v60, %v8165_v41  ;;  %v2048_v59 = vcombine.low %v2024_v40, %v2040_v32  ;;  %v2669_v48 = vpop.permute.xlu1 %2668  ;;  %v2681_v37 = vpop.permute.xlu0 %2680 }
 0x53a   : > { %v2571_v6 = vrot.slane %v2557_v57, %v8165_v41  ;;  %v2623_v61 = vrot.slane %v2609_v10, %v8165_v41  ;;  %v2639_v56 = vrot.slane %v2625_v13, %v8165_v41  ;;  %v2017_v9 = vcombine.high %v8442_v21, %v8445_v55 }
 0x53b   : > { %v3437_v2 = vsel %vm3244_vm9, %v2648_v33, 0  ;;  %v2033_v24 = vcombine.high %v8448_v45, %v8451_v3  ;;  %v2055_v25 = vpack.c.bf16 %v1915_v51, %v1847_v53  ;;  %v1949_v39 = vcombine.high %v8454_v30, %v8457_v36 }
 0x53c   : > { %6117 = vmatpush3.bf16.xpose.msra.mxu1 %v3437_v2  ;;  %v2574_v38 = vcombine.low %v2555_v28, %v2571_v6  ;;  %v1965_v11 = vcombine.high %v8460_v31, %v8463_v63  ;;  %v1981_v7 = vcombine.high %v1956_v54, %v1972_v23  ;;  %v2642_v44 = vcombine.low %v2623_v61, %v2639_v56 }
 0x53d   : > { %6128 = vmatprep.subr.bf16.mxu1 %v7312_v5  ;;  %v3484_v21 = vsel %vm3244_vm9, %v2649_v14, 0  ;;  %v2049_v55 = vcombine.high %v2024_v40, %v2040_v32  ;;  %v2575_v46 = vcombine.high %v2555_v28, %v2571_v6  ;;  %v2643_v45 = vcombine.high %v2623_v61, %v2639_v56  ;;  %v2671_v53 = vpop.permute.xlu1 %2670 }
 0x53e   : > { %6113 = vmatmul.mubr.msk.bf16.vlgmr.msra.gmra.mrb[16].mxu0 %vm3244_vm9, %v2055_v25  ;;  %v2056_v3 = vpack.c.bf16 %v2048_v59, %v1980_v15  ;;  %v2650_v30 = vpack.c.bf16 %v2642_v44, %v2574_v38  ;;  %v2031_v36 = vrot.slane %v2017_v9, %v8165_v41  ;;  %v2047_v31 = vrot.slane %v2033_v24, %v8165_v41 }
 0x53f   : > { %6123 = vmatpush3.bf16.xpose.msra.mxu0 %v3484_v21  ;;  %6124 = vmatprep.mubr.msk.bf16.mxu0 %vm7313_vm8, %v7312_v5  ;;  %v1963_v63 = vrot.slane %v1949_v39, %v8165_v41  ;;  %v1979_v34 = vrot.slane %v1965_v11, %v8165_v41  ;;  %v2057_v35 = vpack.c.bf16 %v2049_v55, %v1981_v7 }
 0x540   : > { %6134 = vmatprep.subr.bf16.mxu0 %v7312_v5  ;;  %v2651_v42 = vpack.c.bf16 %v2643_v45, %v2575_v46  ;;  %v3531_v20 = vsel %vm3244_vm9, %v2650_v30, 0  ;;  %v2050_v1 = vcombine.low %v2031_v36, %v2047_v31  ;;  %v2051_v52 = vcombine.high %v2031_v36, %v2047_v31 }
 0x541   : > { %v1982_v58 = vcombine.low %v1963_v63, %v1979_v34  ;;  %v1983_v29 = vcombine.high %v1963_v63, %v1979_v34  ;;  %v2692_v49 = vcombine.low %v8133_v16, %v2669_v48  ;;  %v2693_v32 = vcombine.high %v8133_v16, %v2669_v48  ;;  %v2683_v6 = vpop.permute.xlu1 %2682 }
 0x542   : > { %v3578_v4 = vsel %vm3244_vm9, %v2651_v42, 0  ;;  %v2708_v54 = vcombine.low %v2657_v43, %v2681_v37  ;;  %v2709_v23 = vcombine.high %v2657_v43, %v2681_v37  ;;  %v2760_v51 = vcombine.low %v8137_v18, %v2671_v53 }
 0x543   : > { %6119 = vmatmul.mubr.msk.bf16.vlgmr.msra.gmra.mrb[8].mxu1 %vm3244_vm9, %v2056_v3  ;;  %v2058_v40 = vpack.c.bf16 %v2050_v1, %v1982_v58  ;;  %v2059_v26 = vpack.c.bf16 %v2051_v52, %v1983_v29  ;;  %v2700_v8 = vrot.slane %v2692_v49, %v8156_v27  ;;  %v2707_v22 = vrot.slane %v2693_v32, %v8156_v27 }
 0x544   : > { %6129 = vmatpush3.bf16.xpose.msra.mxu1 %v3531_v20  ;;  %6130 = vmatprep.mubr.msk.bf16.mxu1 %vm7313_vm8, %v7312_v5  ;;  %v2716_v0 = vrot.slane %v2708_v54, %v8156_v27  ;;  %v2723_v62 = vrot.slane %v2709_v23, %v8156_v27  ;;  %v2761_v16 = vcombine.high %v8137_v18, %v2671_v53 }
 0x545   : > { %6140 = vmatprep.subr.bf16.mxu1 %v7312_v5  ;;  %v2768_v15 = vrot.slane %v2760_v51, %v8156_v27  ;;  %v2776_v59 = vcombine.low %v2659_v12, %v2683_v6  ;;  %v2777_v61 = vcombine.high %v2659_v12, %v2683_v6 }
 0x546   : > { %6125 = vmatmul.mubr.msk.bf16.vlgmr.msra.gmra.mrb[20].mxu0 %vm3244_vm9, %v2057_v35  ;;  %v2724_v60 = vcombine.low %v2700_v8, %v2716_v0  ;;  %v2725_v57 = vcombine.high %v2700_v8, %v2716_v0  ;;  %v2740_v33 = vcombine.low %v2707_v22, %v2723_v62  ;;  %v2741_v10 = vcombine.high %v2707_v22, %v2723_v62 }
 0x547   : > { %6135 = vmatpush3.bf16.xpose.msra.mxu0 %v3578_v4  ;;  %6136 = vmatprep.mubr.msk.bf16.mxu0 %vm7313_vm8, %v7312_v5  ;;  %v2775_v28 = vrot.slane %v2761_v16, %v8156_v27  ;;  %v2784_v38 = vrot.slane %v2776_v59, %v8156_v27  ;;  %v2791_v39 = vrot.slane %v2777_v61, %v8156_v27 }
 0x548   : > { %6146 = vmatprep.subr.bf16.mxu0 %v7312_v5  ;;  %v2732_v13 = vrot.slane %v2724_v60, %v8165_v41  ;;  %v2739_v14 = vrot.slane %v2725_v57, %v8165_v41  ;;  %v2748_v2 = vrot.slane %v2740_v33, %v8165_v41  ;;  %v2755_v18 = vrot.slane %v2741_v10, %v8165_v41 }
 0x549   : > { %v2792_v55 = vcombine.low %v2768_v15, %v2784_v38  ;;  %v2793_v46 = vcombine.high %v2768_v15, %v2784_v38  ;;  %v2808_v45 = vcombine.low %v2775_v28, %v2791_v39  ;;  %v2809_v3 = vcombine.high %v2775_v28, %v2791_v39 }
 0x54a   : > { %v2964_v56 = vcombine.low %v2732_v13, %v2739_v14  ;;  %v5869_v9 = vcombine.high %v2732_v13, %v2739_v14  ;;  %v2980_v24 = vcombine.low %v2748_v2, %v2755_v18  ;;  %v5870_v25 = vcombine.high %v2748_v2, %v2755_v18 }
 0x54b   : > { %6131 = vmatmul.mubr.msk.bf16.vlgmr.msra.gmra.mrb[12].mxu1 %vm3244_vm9, %v2058_v40  ;;  %v2800_v31 = vrot.slane %v2792_v55, %v8165_v41  ;;  %v2807_v63 = vrot.slane %v2793_v46, %v8165_v41  ;;  %v2816_v34 = vrot.slane %v2808_v45, %v8165_v41  ;;  %v2823_v35 = vrot.slane %v2809_v3, %v8165_v41 }
 0x54c   : > { %6142 = vmatprep.mubr.msk.bf16.mxu1 %vm7313_vm8, %v7312_v5  ;;  %v2971_v11 = vrot.slane %v2964_v56, %v8156_v27  ;;  %v2979_v7 = vrot.slane %v5869_v9, %v8156_v27  ;;  %v2987_v44 = vrot.slane %v2980_v24, %v8156_v27  ;;  %v2995_v21 = vrot.slane %v5870_v25, %v8156_v27 }
 0x54d   : > { %v3032_v42 = vcombine.low %v2800_v31, %v2807_v63  ;;  %v5871_v20 = vcombine.high %v2800_v31, %v2807_v63  ;;  %v3048_v58 = vcombine.low %v2816_v34, %v2823_v35  ;;  %v5872_v1 = vcombine.high %v2816_v34, %v2823_v35 }
 0x54e   : > { %6137 = vmatmul.mubr.msk.bf16.vlgmr.msra.gmra.mrb[24].mxu0 %vm3244_vm9, %v2059_v26  ;;  %v2996_v30 = vcombine.low %v2971_v11, %v2979_v7  ;;  %v3012_v36 = vcombine.low %v2987_v44, %v2995_v21  ;;  %v2997_v62 = vcombine.high %v2971_v11, %v2979_v7  ;;  %v3013_v53 = vcombine.high %v2987_v44, %v2995_v21 }
 0x54f   : > { %6148 = vmatprep.mubr.msk.bf16.mxu0 %vm7313_vm8, %v7312_v5  ;;  %v3039_v12 = vrot.slane %v3032_v42, %v8156_v27  ;;  %v3047_v29 = vrot.slane %v5871_v20, %v8156_v27  ;;  %v3055_v52 = vrot.slane %v3048_v58, %v8156_v27  ;;  %v3063_v40 = vrot.slane %v5872_v1, %v8156_v27 }
 0x550   : > { %v3004_v4 = vrot.slane %v2996_v30, %v8165_v41  ;;  %v3020_v43 = vrot.slane %v3012_v36, %v8165_v41  ;;  %v3011_v60 = vrot.slane %v2997_v62, %v8165_v41  ;;  %v3027_v57 = vrot.slane %v3013_v53, %v8165_v41 }
 0x551   : > { %v3064_v48 = vcombine.low %v3039_v12, %v3047_v29  ;;  %v3080_v37 = vcombine.low %v3055_v52, %v3063_v40  ;;  %v3065_v51 = vcombine.high %v3039_v12, %v3047_v29  ;;  %v3081_v16 = vcombine.high %v3055_v52, %v3063_v40 }
 0x552   : > { %v3028_v49 = vcombine.low %v3004_v4, %v3020_v43  ;;  %v3029_v23 = vcombine.high %v3004_v4, %v3020_v43  ;;  %v3030_v13 = vcombine.low %v3011_v60, %v3027_v57  ;;  %v3031_v15 = vcombine.high %v3011_v60, %v3027_v57  ;;  %v8684_v57 = vpop.permute.xlu1 %2660 }
 0x553   : > { %v3072_v32 = vrot.slane %v3064_v48, %v8165_v41  ;;  %v3088_v54 = vrot.slane %v3080_v37, %v8165_v41  ;;  %v3079_v33 = vrot.slane %v3065_v51, %v8165_v41  ;;  %v3095_v10 = vrot.slane %v3081_v16, %v8165_v41 }
 0x555   : > { %v3096_v26 = vcombine.low %v3072_v32, %v3088_v54  ;;  %v3097_v8 = vcombine.high %v3072_v32, %v3088_v54  ;;  %v3098_v14 = vcombine.low %v3079_v33, %v3095_v10  ;;  %v3099_v28 = vcombine.high %v3079_v33, %v3095_v10 }
 0x557   : > { %v3236_v22 = vpack.c.bf16 %v3096_v26, %v3028_v49  ;;  %v3237_v0 = vpack.c.bf16 %v3097_v8, %v3029_v23  ;;  %v8608_v6 = vpack.c.bf16 %v3098_v14, %v3030_v13  ;;  %v8610_v2 = vpack.c.bf16 %v3099_v28, %v3031_v15 }
 0x559   : > { %6141 = vmatpush3.bf16.msra.mxu1 %v3236_v22  ;;  %6147 = vmatpush3.bf16.msra.mxu0 %v3237_v0 }
 0x55a   : > { %6152 = vmatprep.subr.bf16.mxu1 %v7312_v5  ;;  %6158 = vmatprep.subr.bf16.mxu0 %v7312_v5 }
 0x5fe   : > { %v8612_v18 = vpop.f32.mrb[8].mxu0 }
 0x5ff   : > { %v6096_v59 = vpop.f32.mrb[9].mxu0  ;;  %v3622_v61 = vsel %vm3621_vm10, %v8612_v18, -inf }
 0x600   : > { %v8616_v56 = vpop.f32.mrb[4].mxu1  ;;  %3623 = vmax.xlane.f32.xlu0 %v3622_v61  ;;  %v8618_v9 = vpop.f32.mrb[10].mxu0 }
 0x601   : > { %v6108_v24 = vpop.f32.mrb[5].mxu1  ;;  %v3634_v25 = vsel %vm3621_vm10, %v8616_v56, -inf  ;;  %v6097_v38 = vpop.f32.mrb[11].mxu0  ;;  %v3625_v44 = vsel %vm3621_vm10, %v8618_v9, -inf }
 0x602   : > { %3635 = vmax.xlane.f32.xlu1 %v3634_v25  ;;  %v8622_v39 = vpop.f32.mrb[6].mxu1 }
 0x603   : > { %v6109_v11 = vpop.f32.mrb[7].mxu1  ;;  %v3637_v7 = vsel %vm3621_vm10, %v8622_v39, -inf }
 0x604   : > { %3638 = vmax.xlane.f32.xlu0 %v3637_v7 }
 0x606   : > { %3626 = vmax.xlane.f32.xlu1 %v3625_v44 }
 0x607   : > { %v8628_v21 = vpop.f32.mrb[12].mxu0 }
 0x608   : > { %v6102_v55 = vpop.f32.mrb[13].mxu0  ;;  %v3628_v46 = vsel %vm3621_vm10, %v8628_v21, -inf }
 0x609   : > { %3629 = vmax.xlane.f32.xlu0 %v3628_v46  ;;  %v8632_v45 = vpop.f32.mrb[14].mxu0 }
 0x60a   : > { %v6103_v3 = vpop.f32.mrb[15].mxu0  ;;  %v3631_v30 = vsel %vm3621_vm10, %v8632_v45, -inf }
 0x60d   : > { %3632 = vmax.xlane.f32.xlu0 %v3631_v30 }
 0x611   : > { %v8636_v36 = vpop.f32.mrb[16].mxu0 }
 0x612   : > { %v6114_v31 = vpop.f32.mrb[17].mxu0  ;;  %v3640_v52 = vsel %vm3621_vm10, %v8636_v36, -inf }
 0x613   : > { %v8638_v63 = vpop.f32.mrb[18].mxu0 }
 0x614   : > { %v6115_v34 = vpop.f32.mrb[19].mxu0  ;;  %v3643_v48 = vsel %vm3621_vm10, %v8638_v63, -inf }
 0x616   : > { %v8640_v35 = vpop.f32.mrb[8].mxu1 }
 0x617   : > { %v6120_v42 = vpop.f32.mrb[9].mxu1  ;;  %v3646_v20 = vsel %vm3621_vm10, %v8640_v35, -inf }
 0x618   : > { %3647 = vmax.xlane.f32.xlu1 %v3646_v20  ;;  %v8644_v58 = vpop.f32.mrb[10].mxu1 }
 0x619   : > { %v8646_v1 = vpop.f32.mrb[20].mxu0  ;;  %v6121_v4 = vpop.f32.mrb[11].mxu1  ;;  %v3649_v43 = vsel %vm3621_vm10, %v8644_v58, -inf }
 0x61a   : > { %v6126_v12 = vpop.f32.mrb[21].mxu0  ;;  %3650 = vmax.xlane.f32.xlu0 %v3649_v43  ;;  %v3652_v62 = vsel %vm3621_vm10, %v8646_v1, -inf }
 0x61b   : > { %v8650_v29 = vpop.f32.mrb[22].mxu0 }
 0x61c   : > { %v6127_v40 = vpop.f32.mrb[23].mxu0  ;;  %3641 = vmax.xlane.f32.xlu1 %v3640_v52  ;;  %v3655_v51 = vsel %vm3621_vm10, %v8650_v29, -inf }
 0x61e   : > { %3644 = vmax.xlane.f32.xlu0 %v3643_v48  ;;  %v8656_v37 = vpop.f32.mrb[12].mxu1 }
 0x61f   : > { %v6132_v49 = vpop.f32.mrb[13].mxu1  ;;  %v3658_v32 = vsel %vm3621_vm10, %v8656_v37, -inf }
 0x620   : > { %3659 = vmax.xlane.f32.xlu1 %v3658_v32  ;;  %v8660_v54 = vpop.f32.mrb[14].mxu1 }
 0x621   : > { %v8662_v23 = vpop.f32.mrb[24].mxu0  ;;  %v6133_v26 = vpop.f32.mrb[15].mxu1  ;;  %v3661_v8 = vsel %vm3621_vm10, %v8660_v54, -inf }
 0x622   : > { %v6138_v22 = vpop.f32.mrb[25].mxu0  ;;  %3662 = vmax.xlane.f32.xlu0 %v3661_v8  ;;  %v3664_v16 = vsel %vm3621_vm10, %v8662_v23, -inf }
 0x623   : > { %v8666_v0 = vpop.f32.mrb[26].mxu0 }
 0x624   : > { %v6139_v53 = vpop.f32.mrb[27].mxu0  ;;  %3653 = vmax.xlane.f32.xlu1 %v3652_v62  ;;  %v3667_v60 = vsel %vm3621_vm10, %v8666_v0, -inf }
 0x626   : > { %3656 = vmax.xlane.f32.xlu0 %v3655_v51 }
 0x635   : > { %2672 = vrot.lane.b32.xlu1 %v8149_v19, %s7309_s19 }
 0x63c   : > { %2662 = vrot.lane.b32.xlu0 %v8135_v17, %s7310_s18 }
 0x659   : > { %3665 = vmax.xlane.f32.xlu1 %v3664_v16 }
 0x65b   : > { %3668 = vmax.xlane.f32.xlu0 %v3667_v60 }
 0x66a   : > { %2674 = vrot.lane.b32.xlu1 %v8135_v17, %s7309_s19 }
 0x671   : > { %2684 = vrot.lane.b32.xlu0 %v8149_v19, %s7311_s4 }
 0x68d   : > { %v3624_v33 = vpop.xlane.xlu0 %3623 }
 0x68e   : > { %v3670_v10 = vsub.f32 %v8612_v18, %v3624_v33 }
 0x68f   : > { %v3636_v13 = vpop.xlane.xlu1 %3635 }
 0x690   : > { %v3674_v14 = vsub.f32 %v8616_v56, %v3636_v13  ;;  %v3686_v15 = vmul.f32 1.442695, %v3670_v10 }
 0x691   : > { %v3639_v28 = vpop.xlane.xlu0 %3638 }
 0x692   : > { %v3694_v59 = vmul.f32 1.442695, %v3674_v14  ;;  %6577 = vpow2.f32 %v3686_v15  ;;  %v3675_v61 = vsub.f32 %v8622_v39, %v3639_v28 }
 0x693   : > { %v3627_v24 = vpop.xlane.xlu1 %3626 }
 0x694   : > { %6579 = vpow2.f32 %v3694_v59  ;;  %v3671_v25 = vsub.f32 %v8618_v9, %v3627_v24  ;;  %v3696_v38 = vmul.f32 1.442695, %v3675_v61 }
 0x696   : > { %v3688_v11 = vmul.f32 1.442695, %v3671_v25  ;;  %6581 = vpow2.f32 %v3696_v38  ;;  %v3630_v7 = vpop.xlane.xlu0 %3629 }
 0x697   : > { %v3672_v18 = vsub.f32 %v8628_v21, %v3630_v7 }
 0x698   : > { %6583 = vpow2.f32 %v3688_v11 }
 0x699   : > { %v3690_v44 = vmul.f32 1.442695, %v3672_v18 }
 0x69a   : > { %v3633_v55 = vpop.xlane.xlu0 %3632 }
 0x69b   : > { %6585 = vpow2.f32 %v3690_v44  ;;  %v3673_v46 = vsub.f32 %v8632_v45, %v3633_v55 }
 0x69c   : > { %v8691_v56 = vpop.eup %6577 }
 0x69d   : > { %v3718_v39 = vsel %vm3621_vm10, %v8691_v56, 0.0  ;;  %v3692_v9 = vmul.f32 1.442695, %v3673_v46 }
 0x69e   : > { %v8696_v3 = vpop.eup %6579  ;;  %3719 = vadd.xlane.f32.xlu1 %v3718_v39 }
 0x69f   : > { %v3730_v30 = vsel %vm3621_vm10, %v8696_v3, 0.0  ;;  %6587 = vpow2.f32 %v3692_v9 }
 0x6a0   : > { %v8700_v31 = vpop.eup %6581  ;;  %3731 = vadd.xlane.f32.xlu0 %v3730_v30 }
 0x6a1   : > { %v3733_v21 = vsel %vm3621_vm10, %v8700_v31, 0.0 }
 0x6a2   : > { %v8704_v34 = vpop.eup %6583  ;;  %3734 = vadd.xlane.f32.xlu1 %v3733_v21 }
 0x6a3   : > { %v3721_v45 = vsel %vm3621_vm10, %v8704_v34, 0.0 }
 0x6a4   : > { %3722 = vadd.xlane.f32.xlu0 %v3721_v45 }
 0x6a5   : > { %v8708_v42 = vpop.eup %6585  ;;  %v3648_v20 = vpop.xlane.xlu1 %3647 }
 0x6a6   : > { %v3678_v4 = vsub.f32 %v8640_v35, %v3648_v20  ;;  %v3724_v43 = vsel %vm3621_vm10, %v8708_v42, 0.0 }
 0x6a7   : > { %3725 = vadd.xlane.f32.xlu1 %v3724_v43  ;;  %v3651_v12 = vpop.xlane.xlu0 %3650 }
 0x6a8   : > { %v3702_v52 = vmul.f32 1.442695, %v3678_v4  ;;  %v3679_v40 = vsub.f32 %v8644_v58, %v3651_v12 }
 0x6a9   : > { %v8714_v48 = vpop.eup %6587  ;;  %v3642_v49 = vpop.xlane.xlu1 %3641 }
 0x6aa   : > { %6589 = vpow2.f32 %v3702_v52  ;;  %v3704_v32 = vmul.f32 1.442695, %v3679_v40  ;;  %v3676_v26 = vsub.f32 %v8636_v36, %v3642_v49  ;;  %v3727_v8 = vsel %vm3621_vm10, %v8714_v48, 0.0 }
 0x6ab   : > { %3728 = vadd.xlane.f32.xlu0 %v3727_v8  ;;  %v3645_v35 = vpop.xlane.xlu0 %3644 }
 0x6ac   : > { %6591 = vpow2.f32 %v3704_v32  ;;  %v3698_v22 = vmul.f32 1.442695, %v3676_v26  ;;  %v3677_v62 = vsub.f32 %v8638_v63, %v3645_v35 }
 0x6ad   : > { %v3660_v53 = vpop.xlane.xlu1 %3659 }
 0x6ae   : > { %6593 = vpow2.f32 %v3698_v22  ;;  %v3700_v51 = vmul.f32 1.442695, %v3677_v62  ;;  %v3682_v58 = vsub.f32 %v8656_v37, %v3660_v53 }
 0x6af   : > { %v3663_v16 = vpop.xlane.xlu0 %3662 }
 0x6b0   : > { %v3710_v60 = vmul.f32 1.442695, %v3682_v58  ;;  %6595 = vpow2.f32 %v3700_v51  ;;  %v3683_v55 = vsub.f32 %v8660_v54, %v3663_v16 }
 0x6b1   : > { %v3654_v33 = vpop.xlane.xlu1 %3653 }
 0x6b2   : > { %v3680_v36 = vsub.f32 %v8646_v1, %v3654_v33  ;;  %6597 = vpow2.f32 %v3710_v60  ;;  %v3712_v9 = vmul.f32 1.442695, %v3683_v55 }
 0x6b3   : > { %v3657_v10 = vpop.xlane.xlu0 %3656 }
 0x6b4   : > { %v8722_v13 = vpop.eup %6589  ;;  %v3706_v14 = vmul.f32 1.442695, %v3680_v36  ;;  %v3681_v15 = vsub.f32 %v8650_v29, %v3657_v10 }
 0x6b5   : > { %v3742_v63 = vsel %vm3621_vm10, %v8722_v13, 0.0  ;;  %v8754_v46 = vpop.permute.xlu1 %2672 }
 0x6b6   : > { %v8727_v28 = vpop.eup %6591  ;;  %6599 = vpow2.f32 %v3706_v14  ;;  %v3708_v37 = vmul.f32 1.442695, %v3681_v15  ;;  %3743 = vadd.xlane.f32.xlu1 %v3742_v63 }
 0x6b7   : > { %v3745_v59 = vsel %vm3621_vm10, %v8727_v28, 0.0  ;;  %v8756_v39 = vpop.permute.xlu0 %2662 }
 0x6b8   : > { %v8731_v61 = vpop.eup %6593  ;;  %3746 = vadd.xlane.f32.xlu0 %v3745_v59  ;;  %6601 = vpow2.f32 %v3708_v37  ;;  %v2828_v37 = vcombine.low %v8149_v19, %v8754_v46 }
 0x6b9   : > { %v3736_v1 = vsel %vm3621_vm10, %v8731_v61, 0.0  ;;  %6603 = vpow2.f32 %v3712_v9 }
 0x6ba   : > { %v8735_v29 = vpop.eup %6595 }
 0x6bb   : > { %v3739_v25 = vsel %vm3621_vm10, %v8735_v29, 0.0 }
 0x6bc   : > { %3737 = vadd.xlane.f32.xlu0 %v3736_v1  ;;  %v8737_v24 = vpop.eup %6597 }
 0x6bd   : > { %v3754_v7 = vsel %vm3621_vm10, %v8737_v24, 0.0 }
 0x6c0   : > { %v8741_v38 = vpop.eup %6599  ;;  %3740 = vadd.xlane.f32.xlu0 %v3739_v25  ;;  %v2829_v25 = vcombine.high %v8149_v19, %v8754_v46 }
 0x6c1   : > { %v3748_v11 = vsel %vm3621_vm10, %v8741_v38, 0.0 }
 0x6c2   : > { %3749 = vadd.xlane.f32.xlu1 %v3748_v11  ;;  %v8747_v18 = vpop.eup %6601 }
 0x6c3   : > { %v3751_v44 = vsel %vm3621_vm10, %v8747_v18, 0.0  ;;  %v8760_v12 = vpop.eup %6603 }
 0x6c4   : > { %3755 = vadd.xlane.f32.xlu0 %v3754_v7  ;;  %v3757_v54 = vsel %vm3621_vm10, %v8760_v12, 0.0 }
 0x6c8   : > { %3752 = vadd.xlane.f32.xlu0 %v3751_v44 }
 0x6d3   : > { %2686 = vrot.lane.b32.xlu1 %v8135_v17, %s7311_s4 }
 0x6e6   : > { %v3666_v30 = vpop.xlane.xlu1 %3665 }
 0x6e7   : > { %v3684_v21 = vsub.f32 %v8662_v23, %v3666_v30 }
 0x6e8   : > { %v3669_v45 = vpop.xlane.xlu0 %3668 }
 0x6e9   : > { %v3714_v20 = vmul.f32 1.442695, %v3684_v21  ;;  %v3685_v4 = vsub.f32 %v8666_v0, %v3669_v45 }
 0x6ea   : > { %v8772_v0 = vpop.permute.xlu1 %2674 }
 0x6eb   : > { %6605 = vpow2.f32 %v3714_v20  ;;  %v3716_v43 = vmul.f32 1.442695, %v3685_v4 }
 0x6ec   : > { %v2685_v32 = vpop.permute.xlu0 %2684 }
 0x6ed   : > { %6607 = vpow2.f32 %v3716_v43  ;;  %v2844_v15 = vcombine.low %v8684_v57, %v2685_v32 }
 0x6f5   : > { %v8762_v52 = vpop.eup %6605 }
 0x6f6   : > { %v3760_v40 = vsel %vm3621_vm10, %v8762_v52, 0.0 }
 0x6f7   : > { %v8768_v49 = vpop.eup %6607  ;;  %3758 = vadd.xlane.f32.xlu1 %v3757_v54  ;;  %3761 = vadd.xlane.f32.xlu0 %v3760_v40  ;;  %v2896_v54 = vcombine.low %v8135_v17, %v8772_v0  ;;  %v2897_v40 = vcombine.high %v8135_v17, %v8772_v0 }
 0x6f8   : > { %v3763_v23 = vsel %vm3621_vm10, %v8768_v49, 0.0 }
 0x6fb   : > { %3764 = vadd.xlane.f32.xlu0 %v3763_v23 }
 0x72b   : > { %v3720_v26 = vpop.xlane.xlu1 %3719 }
 0x72c   : > { %6609 = vrcp.f32 %v3720_v26 }
 0x72d   : > { %v3732_v8 = vpop.xlane.xlu0 %3731 }
 0x72f   : > { %v3735_v35 = vpop.xlane.xlu1 %3734 }
 0x731   : > { %v3723_v22 = vpop.xlane.xlu0 %3722 }
 0x732   : > { %6611 = vrcp.f32 %v3723_v22 }
 0x733   : > { %6613 = vrcp.f32 %v3735_v35 }
 0x734   : > { %v3726_v62 = vpop.xlane.xlu1 %3725  ;;  %6615 = vrcp.f32 %v3732_v8 }
 0x735   : > { %6617 = vrcp.f32 %v3726_v62 }
 0x736   : > { %v6610_v51 = vpop.eup %6609 }
 0x737   : > { %v3782_v16 = vmul.f32 %v6610_v51, %v8691_v56  ;;  %v2904_v51 = vrot.slane %v2896_v54, %v8156_v27 }
 0x738   : > { %v3729_v53 = vpop.xlane.xlu0 %3728 }
 0x739   : > { %6619 = vrcp.f32 %v3729_v53 }
 0x73c   : > { %v6612_v58 = vpop.eup %6611 }
 0x73d   : > { %v3783_v60 = vmul.f32 %v6612_v58, %v8704_v34  ;;  %v6614_v36 = vpop.eup %6613  ;;  %v2845_v34 = vcombine.high %v8684_v57, %v2685_v32  ;;  %v2836_v57 = vrot.slane %v2828_v37, %v8156_v27  ;;  %v2911_v58 = vrot.slane %v2897_v40, %v8156_v27 }
 0x73e   : > { %v6616_v10 = vpop.eup %6615  ;;  %v3787_v63 = vmul.f32 %v6614_v36, %v8700_v31  ;;  %v2852_v31 = vrot.slane %v2844_v15, %v8156_v27 }
 0x73f   : > { %v3798_v33 = vpack.c.bf16 %v3783_v60, %v3782_v16  ;;  %v6618_v14 = vpop.eup %6617  ;;  %v3786_v59 = vmul.f32 %v6616_v10, %v8696_v3  ;;  %v2859_v55 = vrot.slane %v2845_v34, %v8156_v27  ;;  %v2843_v3 = vrot.slane %v2829_v25, %v8156_v27 }
 0x740   : > { %v3784_v1 = vmul.f32 %v6618_v14, %v8708_v42  ;;  %v2860_v19 = vcombine.low %v2836_v57, %v2852_v31 }
 0x741   : > { %6143 = vmatmul.mubr.msk.bf16.vlgmr.msra.gmra.mrb[16].mxu1 %vm3621_vm10, %v3798_v33  ;;  %v3800_v44 = vpack.c.bf16 %v3787_v63, %v3786_v59  ;;  %v2876_v46 = vcombine.low %v2843_v3, %v2859_v55  ;;  %v2877_v9 = vcombine.high %v2843_v3, %v2859_v55 }
 0x742   : > { %6153 = vmatpush3.bf16.msra.mxu1 %v8608_v6  ;;  %6154 = vmatprep.mubr.msk.bf16.mxu1 %vm7313_vm8, %v7312_v5  ;;  %v2868_v45 = vrot.slane %v2860_v19, %v8165_v41 }
 0x743   : > { %6164 = vmatprep.subr.bf16.mxu1 %v7312_v5  ;;  %v6620_v56 = vpop.eup %6619  ;;  %v3744_v30 = vpop.xlane.xlu1 %3743  ;;  %v2884_v20 = vrot.slane %v2876_v46, %v8165_v41  ;;  %v2891_v4 = vrot.slane %v2877_v9, %v8165_v41 }
 0x744   : > { %v3785_v6 = vmul.f32 %v6620_v56, %v8714_v48  ;;  %v2861_v48 = vcombine.high %v2836_v57, %v2852_v31 }
 0x745   : > { %v3747_v11 = vpop.xlane.xlu0 %3746  ;;  %v3116_v8 = vcombine.low %v2884_v20, %v2891_v4  ;;  %v5874_v35 = vcombine.high %v2884_v20, %v2891_v4 }
 0x746   : > { %v3799_v7 = vpack.c.bf16 %v3785_v6, %v3784_v1 }
 0x747   : > { %v3123_v10 = vrot.slane %v3116_v8, %v8156_v27 }
 0x748   : > { %6149 = vmatmul.mubr.msk.bf16.vlgmr.msra.gmra.mrb[28].mxu0 %vm3621_vm10, %v3799_v7 }
 0x749   : > { %6155 = vmatmul.mubr.msk.bf16.vlgmr.msra.gmra.mrb[20].mxu1 %vm3621_vm10, %v3800_v44  ;;  %6159 = vmatpush3.bf16.msra.mxu0 %v8610_v2  ;;  %v3738_v42 = vpop.xlane.xlu0 %3737  ;;  %v2875_v2 = vrot.slane %v2861_v48, %v8165_v41 }
 0x74a   : > { %6160 = vmatprep.mubr.msk.bf16.mxu0 %vm7313_vm8, %v7312_v5  ;;  %6170 = vmatprep.subr.bf16.mxu0 %v7312_v5  ;;  %6621 = vrcp.f32 %v3738_v42 }
 0x74b   : > { %6166 = vmatprep.mubr.msk.bf16.mxu1 %vm7313_vm8, %v7312_v5  ;;  %v3100_v32 = vcombine.low %v2868_v45, %v2875_v2  ;;  %v5873_v26 = vcombine.high %v2868_v45, %v2875_v2 }
 0x74d   : > { %v3741_v21 = vpop.xlane.xlu0 %3740  ;;  %v3107_v17 = vrot.slane %v3100_v32, %v8156_v27  ;;  %v3115_v36 = vrot.slane %v5873_v26, %v8156_v27 }
 0x74e   : > { %6623 = vrcp.f32 %v3741_v21 }
 0x74f   : > { %v3750_v43 = vpop.xlane.xlu1 %3749  ;;  %6625 = vrcp.f32 %v3744_v30  ;;  %v3132_v7 = vcombine.low %v3107_v17, %v3115_v36  ;;  %v3133_v21 = vcombine.high %v3107_v17, %v3115_v36 }
 0x750   : > { %6627 = vrcp.f32 %v3747_v11 }
 0x751   : > { %v8811_v23 = vpop.xlane.xlu0 %3755  ;;  %v3140_v9 = vrot.slane %v3132_v7, %v8165_v41 }
 0x753   : > { %v2687_v22 = vpop.permute.xlu1 %2686 }
 0x754   : > { %v2912_v62 = vcombine.low %v8756_v39, %v2687_v22  ;;  %v2913_v53 = vcombine.high %v8756_v39, %v2687_v22  ;;  %v6622_v60 = vpop.eup %6621  ;;  %v3131_v39 = vrot.slane %v5874_v35, %v8156_v27 }
 0x755   : > { %v3753_v16 = vpop.xlane.xlu0 %3752  ;;  %v3788_v37 = vmul.f32 %v6622_v60, %v8731_v61 }
 0x756   : > { %v2920_v0 = vrot.slane %v2912_v62, %v8156_v27  ;;  %v2927_v33 = vrot.slane %v2913_v53, %v8156_v27  ;;  %6629 = vrcp.f32 %v3753_v16  ;;  %v3148_v44 = vcombine.low %v3123_v10, %v3131_v39 }
 0x757   : > { %6631 = vrcp.f32 %v3750_v43  ;;  %v3149_v45 = vcombine.high %v3123_v10, %v3131_v39  ;;  %v3147_v62 = vrot.slane %v3133_v21, %v8165_v41 }
 0x758   : > { %v6624_v14 = vpop.eup %6623  ;;  %v2928_v15 = vcombine.low %v2904_v51, %v2920_v0  ;;  %v2929_v63 = vcombine.high %v2904_v51, %v2920_v0  ;;  %v2944_v56 = vcombine.low %v2911_v58, %v2927_v33  ;;  %v2945_v34 = vcombine.high %v2911_v58, %v2927_v33 }
 0x759   : > { %v3789_v59 = vmul.f32 %v6624_v14, %v8735_v29  ;;  %v6626_v46 = vpop.eup %6625  ;;  %v3156_v30 = vrot.slane %v3148_v44, %v8165_v41  ;;  %v3163_v53 = vrot.slane %v3149_v45, %v8165_v41  ;;  %6633 = vrcp.f32 %v8811_v23 }
 0x75a   : > { %v2936_v1 = vrot.slane %v2928_v15, %v8165_v41  ;;  %v2943_v6 = vrot.slane %v2929_v63, %v8165_v41  ;;  %v2952_v25 = vrot.slane %v2944_v56, %v8165_v41  ;;  %v2959_v11 = vrot.slane %v2945_v34, %v8165_v41  ;;  %v6628_v2 = vpop.eup %6627 }
 0x75b   : > { %v3801_v31 = vpack.c.bf16 %v3789_v59, %v3788_v37  ;;  %v3164_v51 = vcombine.low %v3140_v9, %v3156_v30  ;;  %v3165_v16 = vcombine.high %v3140_v9, %v3156_v30  ;;  %v3791_v17 = vmul.f32 %v6628_v2, %v8727_v28 }
 0x75c   : > { %v3168_v55 = vcombine.low %v2936_v1, %v2943_v6  ;;  %v5875_v57 = vcombine.high %v2936_v1, %v2943_v6  ;;  %v3184_v3 = vcombine.low %v2952_v25, %v2959_v11  ;;  %v5876_v42 = vcombine.high %v2952_v25, %v2959_v11 }
 0x75d   : > { %6161 = vmatmul.mubr.msk.bf16.vlgmr.msra.gmra.mrb[32].mxu0 %vm3621_vm10, %v3801_v31  ;;  %v3790_v14 = vmul.f32 %v6626_v46, %v8722_v13  ;;  %v3166_v63 = vcombine.low %v3147_v62, %v3163_v53  ;;  %v3167_v56 = vcombine.high %v3147_v62, %v3163_v53 }
 0x75e   : > { %v3175_v61 = vrot.slane %v3168_v55, %v8156_v27  ;;  %v3183_v29 = vrot.slane %v5875_v57, %v8156_v27  ;;  %v3191_v19 = vrot.slane %v3184_v3, %v8156_v27  ;;  %v3199_v48 = vrot.slane %v5876_v42, %v8156_v27  ;;  %6172 = vmatprep.mubr.msk.bf16.mxu0 %vm7313_vm8, %v7312_v5 }
 0x75f   : > { %v3802_v34 = vpack.c.bf16 %v3791_v17, %v3790_v14 }
 0x760   : > { %v3200_v20 = vcombine.low %v3175_v61, %v3183_v29  ;;  %v3216_v4 = vcombine.low %v3191_v19, %v3199_v48  ;;  %v3201_v43 = vcombine.high %v3175_v61, %v3183_v29  ;;  %v3217_v54 = vcombine.high %v3191_v19, %v3199_v48  ;;  %v6630_v40 = vpop.eup %6629 }
 0x761   : > { %v6632_v22 = vpop.eup %6631  ;;  %v3793_v0 = vmul.f32 %v6630_v40, %v8747_v18 }
 0x762   : > { %v3208_v32 = vrot.slane %v3200_v20, %v8165_v41  ;;  %v3224_v26 = vrot.slane %v3216_v4, %v8165_v41  ;;  %v3215_v8 = vrot.slane %v3201_v43, %v8165_v41  ;;  %v3231_v35 = vrot.slane %v3217_v54, %v8165_v41 }
 0x763   : > { %v3792_v15 = vmul.f32 %v6632_v22, %v8741_v38  ;;  %v6634_v1 = vpop.eup %6633 }
 0x764   : > { %v3232_v58 = vcombine.low %v3208_v32, %v3224_v26  ;;  %v3233_v60 = vcombine.high %v3208_v32, %v3224_v26  ;;  %v3234_v10 = vcombine.low %v3215_v8, %v3231_v35  ;;  %v3235_v39 = vcombine.high %v3215_v8, %v3231_v35 }
 0x765   : > { %v3803_v37 = vpack.c.bf16 %v3793_v0, %v3792_v15  ;;  %v3794_v25 = vmul.f32 %v6634_v1, %v8737_v24 }
 0x766   : > { %v3240_v33 = vpack.c.bf16 %v3232_v58, %v3164_v51  ;;  %v3241_v36 = vpack.c.bf16 %v3233_v60, %v3165_v16  ;;  %v3242_v28 = vpack.c.bf16 %v3234_v10, %v3166_v63  ;;  %v3243_v18 = vpack.c.bf16 %v3235_v39, %v3167_v56 }
 0x768   : > { %6165 = vmatpush3.bf16.msra.mxu1 %v3240_v33  ;;  %6171 = vmatpush3.bf16.msra.mxu0 %v3241_v36 }
 0x769   : > { %6176 = vmatprep.subr.bf16.mxu1 %v7312_v5  ;;  %6182 = vmatprep.subr.bf16.mxu0 %v7312_v5 }
 0x76b   : > { %6167 = vmatmul.mubr.msk.bf16.vlgmr.msra.gmra.mrb[24].mxu1 %vm3621_vm10, %v3802_v34  ;;  %6173 = vmatmul.mubr.msk.bf16.vlgmr.msra.gmra.mrb[36].mxu0 %vm3621_vm10, %v3803_v37 }
 0x76c   : > { %6177 = vmatpush3.bf16.msra.mxu1 %v3242_v28  ;;  %6183 = vmatpush3.bf16.msra.mxu0 %v3243_v18 }
 0x76d   : > { %6178 = vmatprep.mubr.msk.bf16.mxu1 %vm7313_vm8, %v7312_v5  ;;  %6184 = vmatprep.mubr.msk.bf16.mxu0 %vm7313_vm8, %v7312_v5 }
 0x784   : > { %v3759_v13 = vpop.xlane.xlu1 %3758  ;;  %v3762_v38 = vpop.xlane.xlu0 %3761 }
 0x785   : > { %6635 = vrcp.f32 %v3759_v13 }
 0x786   : > { %6637 = vrcp.f32 %v3762_v38 }
 0x788   : > { %v3765_v59 = vpop.xlane.xlu0 %3764 }
 0x789   : > { %6639 = vrcp.f32 %v3765_v59 }
 0x78f   : > { %v6636_v6 = vpop.eup %6635 }
 0x790   : > { %v3795_v11 = vmul.f32 %v6636_v6, %v8760_v12  ;;  %v6638_v31 = vpop.eup %6637 }
 0x791   : > { %v3796_v55 = vmul.f32 %v6638_v31, %v8762_v52 }
 0x792   : > { %v3804_v7 = vpack.c.bf16 %v3795_v11, %v3794_v25 }
 0x793   : > { %v6640_v44 = vpop.eup %6639 }
 0x794   : > { %v3797_v5 = vmul.f32 %v6640_v44, %v8768_v49  ;;  %6179 = vmatmul.mubr.msk.bf16.vlgmr.msra.gmra.mrb[28].mxu1 %vm3621_vm10, %v3804_v7 }
 0x796   : > { %v3805_v23 = vpack.c.bf16 %v3797_v5, %v3796_v55 }
 0x798   : > { %6185 = vmatmul.mubr.msk.bf16.vlgmr.msra.gmra.mrb[40].mxu0 %vm3621_vm10, %v3805_v23 }
 0x814   : > { %v3843_v57 = vpop.f32.mrb[16].mxu1 }
 0x815   : > { %v6144_v3 = vpop.f32.mrb[17].mxu1 }
 0x816   : > { %v3846_v42 = vpop.f32.mrb[18].mxu1 }
 0x817   : > { %v6145_v61 = vpop.f32.mrb[19].mxu1 }
 0x81b   : > { %v3887_v29 = vpop.f32.mrb[28].mxu0 }
 0x81c   : > { %v3931_v24 = vpop.f32.mrb[20].mxu1  ;;  %v6150_v48 = vpop.f32.mrb[29].mxu0 }
 0x81d   : > { %v4158_v19 = vcombine.low %v3843_v57, %v3931_v24  ;;  %v4159_v12 = vcombine.high %v3843_v57, %v3931_v24  ;;  %v6156_v46 = vpop.f32.mrb[21].mxu1  ;;  %v3890_v9 = vpop.f32.mrb[30].mxu0 }
 0x81e   : > { %v3934_v30 = vpop.f32.mrb[22].mxu1  ;;  %v6151_v49 = vpop.f32.mrb[31].mxu0 }
 0x81f   : > { %v4226_v52 = vcombine.low %v3846_v42, %v3934_v30  ;;  %v4227_v21 = vcombine.high %v3846_v42, %v3934_v30  ;;  %v6157_v45 = vpop.f32.mrb[23].mxu1  ;;  %v4166_v54 = vrot.slane %v4158_v19, %v8156_v27  ;;  %v4173_v40 = vrot.slane %v4159_v12, %v8156_v27 }
 0x821   : > { %v4234_v60 = vrot.slane %v4226_v52, %v8156_v27  ;;  %v4241_v17 = vrot.slane %v4227_v21, %v8156_v27 }
 0x830   : > { %v3975_v2 = vpop.f32.mrb[32].mxu0 }
 0x831   : > { %v4174_v20 = vcombine.low %v3887_v29, %v3975_v2  ;;  %v4175_v4 = vcombine.high %v3887_v29, %v3975_v2  ;;  %v6162_v43 = vpop.f32.mrb[33].mxu0 }
 0x832   : > { %v3978_v32 = vpop.f32.mrb[34].mxu0 }
 0x833   : > { %v4182_v26 = vrot.slane %v4174_v20, %v8156_v27  ;;  %v4189_v8 = vrot.slane %v4175_v4, %v8156_v27  ;;  %v4242_v35 = vcombine.low %v3890_v9, %v3978_v32  ;;  %v4243_v22 = vcombine.high %v3890_v9, %v3978_v32  ;;  %v6163_v62 = vpop.f32.mrb[35].mxu0 }
 0x835   : > { %v4190_v53 = vcombine.low %v4166_v54, %v4182_v26  ;;  %v4191_v51 = vcombine.high %v4166_v54, %v4182_v26  ;;  %v4206_v58 = vcombine.low %v4173_v40, %v4189_v8  ;;  %v4207_v16 = vcombine.high %v4173_v40, %v4189_v8 }
 0x836   : > { %v4250_v0 = vrot.slane %v4242_v35, %v8156_v27  ;;  %v4257_v33 = vrot.slane %v4243_v22, %v8156_v27 }
 0x837   : > { %v4198_v36 = vrot.slane %v4190_v53, %v8165_v41  ;;  %v4205_v10 = vrot.slane %v4191_v51, %v8165_v41  ;;  %v4214_v39 = vrot.slane %v4206_v58, %v8165_v41  ;;  %v4221_v14 = vrot.slane %v4207_v16, %v8165_v41  ;;  %v6553_v53 = vld [vmem:[%s7986_s2] sm:$0xff]   ;;  %v6554_v51 = vld [vmem:[%s7986_s2 + $0x8] sm:$0xff]  }
 0x838   : > { %v4258_v15 = vcombine.low %v4234_v60, %v4250_v0  ;;  %v4259_v63 = vcombine.high %v4234_v60, %v4250_v0  ;;  %v4274_v56 = vcombine.low %v4241_v17, %v4257_v33  ;;  %v4275_v34 = vcombine.high %v4241_v17, %v4257_v33  ;;  %6188 = vmatprep.subr.bf16.mxu1 %v6553_v53 }
 0x839   : > { %v4430_v37 = vcombine.low %v4198_v36, %v4205_v10  ;;  %v5893_v28 = vcombine.high %v4198_v36, %v4205_v10  ;;  %v4446_v18 = vcombine.low %v4214_v39, %v4221_v14  ;;  %v5894_v13 = vcombine.high %v4214_v39, %v4221_v14  ;;  %6189 = vmatpush3.bf16.msra.mxu1 %v6553_v53  ;;  %v6555_v39 = vld [vmem:[%s7986_s2 + $0x10] sm:$0xff]  }
 0x83a   : > { %v4266_v38 = vrot.slane %v4258_v15, %v8165_v41  ;;  %v4273_v59 = vrot.slane %v4259_v63, %v8165_v41  ;;  %v4282_v1 = vrot.slane %v4274_v56, %v8165_v41  ;;  %v4289_v6 = vrot.slane %v4275_v34, %v8165_v41  ;;  %6190 = vmatprep.subr.bf16.mxu1 %v6554_v51  ;;  %v6556_v56 = vld [vmem:[%s7986_s2 + $0x18] sm:$0xff]   ;;  %v6557_v34 = vld [vmem:[%s7986_s2 + $0x20] sm:$0xff]  }
 0x83b   : > { %v4437_v25 = vrot.slane %v4430_v37, %v8156_v27  ;;  %v4445_v11 = vrot.slane %v5893_v28, %v8156_v27  ;;  %v4453_v31 = vrot.slane %v4446_v18, %v8156_v27  ;;  %v4461_v7 = vrot.slane %v5894_v13, %v8156_v27  ;;  %v6558_v37 = vld [vmem:[%s7986_s2 + $0x28] sm:$0xff]  }
 0x83c   : > { %v4498_v44 = vcombine.low %v4266_v38, %v4273_v59  ;;  %v5895_v55 = vcombine.high %v4266_v38, %v4273_v59  ;;  %v4514_v5 = vcombine.low %v4282_v1, %v4289_v6  ;;  %v5896_v23 = vcombine.high %v4282_v1, %v4289_v6 }
 0x83d   : > { %v4462_v57 = vcombine.low %v4437_v25, %v4445_v11  ;;  %v4478_v3 = vcombine.low %v4453_v31, %v4461_v7  ;;  %v4463_v42 = vcombine.high %v4437_v25, %v4445_v11  ;;  %v4479_v61 = vcombine.high %v4453_v31, %v4461_v7  ;;  %6191 = vmatpush3.bf16.msra.mxu1 %v6554_v51 }
 0x83e   : > { %v4505_v29 = vrot.slane %v4498_v44, %v8156_v27  ;;  %v4513_v24 = vrot.slane %v5895_v55, %v8156_v27  ;;  %v4521_v19 = vrot.slane %v4514_v5, %v8156_v27  ;;  %v4529_v12 = vrot.slane %v5896_v23, %v8156_v27  ;;  %v8887_v48 = vpop.f32.mrb[24].mxu1  ;;  %v8889_v46 = vpop.f32.mrb[36].mxu0  ;;  %6192 = vmatprep.subr.bf16.mxu1 %v6555_v39 }
 0x83f   : > { %v6168_v9 = vpop.f32.mrb[25].mxu1  ;;  %v6174_v30 = vpop.f32.mrb[37].mxu0  ;;  %v8892_v52 = vrot.slane %v4462_v57, %v8165_v41  ;;  %v8895_v21 = vrot.slane %v4478_v3, %v8165_v41  ;;  %v4477_v49 = vrot.slane %v4463_v42, %v8165_v41  ;;  %v4493_v45 = vrot.slane %v4479_v61, %v8165_v41 }
 0x840   : > { %v8899_v2 = vpop.f32.mrb[26].mxu1  ;;  %v8901_v20 = vpop.f32.mrb[38].mxu0  ;;  %v4530_v4 = vcombine.low %v4505_v29, %v4513_v24  ;;  %v4546_v43 = vcombine.low %v4521_v19, %v4529_v12  ;;  %v4531_v54 = vcombine.high %v4505_v29, %v4513_v24  ;;  %v4547_v40 = vcombine.high %v4521_v19, %v4529_v12 }
 0x841   : > { %v6169_v32 = vpop.f32.mrb[27].mxu1  ;;  %v6175_v26 = vpop.f32.mrb[39].mxu0  ;;  %v4494_v8 = vcombine.low %v8892_v52, %v8895_v21  ;;  %v4495_v35 = vcombine.high %v8892_v52, %v8895_v21  ;;  %v4496_v22 = vcombine.low %v4477_v49, %v4493_v45  ;;  %v4497_v62 = vcombine.high %v4477_v49, %v4493_v45  ;;  %6193 = vmatpush3.bf16.msra.mxu1 %v6555_v39 }
 0x842   : > { %v8910_v58 = vrot.slane %v4530_v4, %v8165_v41  ;;  %v8913_v16 = vrot.slane %v4546_v43, %v8165_v41  ;;  %v4545_v60 = vrot.slane %v4531_v54, %v8165_v41  ;;  %v4561_v17 = vrot.slane %v4547_v40, %v8165_v41  ;;  %6194 = vmatprep.subr.bf16.mxu1 %v6556_v56 }
 0x844   : > { %v4563_v0 = vcombine.high %v8910_v58, %v8913_v16  ;;  %v4562_v33 = vcombine.low %v8910_v58, %v8913_v16  ;;  %v4564_v36 = vcombine.low %v4545_v60, %v4561_v17  ;;  %v4565_v10 = vcombine.high %v4545_v60, %v4561_v17  ;;  %v5901_v16 = vld [vmem:[%s836_s27] ss:$0 sm:$0xff] }
 0x845   : > { %6195 = vmatpush3.bf16.msra.mxu1 %v6556_v56 }
 0x846   : > { %v6491_v14 = vpack.i.bf16 %v4563_v0, %v4495_v35  ;;  %v6496_v15 = vpack.i.bf16 %v4564_v36, %v4496_v22  ;;  %v8922_v63 = vpack.i.bf16 %v4565_v10, %v4497_v62  ;;  %6196 = vmatprep.subr.bf16.mxu1 %v6557_v34 }
 0x848   : > { %6492 = vrot.lane.b32.xlu1 %v6491_v14, %s7311_s4 }
 0x849   : > { %6197 = vmatpush3.bf16.msra.mxu1 %v6557_v34 }
 0x84a   : > { %6198 = vmatprep.subr.bf16.mxu1 %v6558_v37 }
 0x84c   : > { %6497 = vrot.lane.b32.xlu1 %v6496_v15, %s7309_s19 }
 0x84d   : > { %6199 = vmatpush3.bf16.msra.mxu1 %v6558_v37 }
 0x867   : > { %v4107_v28 = vpop.f32.mrb[28].mxu1 }
 0x868   : > { %v4294_v18 = vcombine.low %v8887_v48, %v4107_v28  ;;  %v4295_v13 = vcombine.high %v8887_v48, %v4107_v28  ;;  %v6180_v38 = vpop.f32.mrb[29].mxu1 }
 0x869   : > { %v4110_v59 = vpop.f32.mrb[30].mxu1  ;;  %v6559_v38 = vld [vmem:[%s7986_s2 + $0x30] sm:$0xff]  }
 0x86a   : > { %v4362_v1 = vcombine.low %v8899_v2, %v4110_v59  ;;  %v4363_v6 = vcombine.high %v8899_v2, %v4110_v59  ;;  %v6181_v25 = vpop.f32.mrb[31].mxu1  ;;  %v4302_v55 = vrot.slane %v4294_v18, %v8156_v27  ;;  %v4309_v5 = vrot.slane %v4295_v13, %v8156_v27  ;;  %6200 = vmatprep.subr.bf16.mxu1 %v6559_v38 }
 0x86b   : > { %v4151_v11 = vpop.f32.mrb[40].mxu0  ;;  %6201 = vmatpush3.bf16.msra.mxu1 %v6559_v38 }
 0x86c   : > { %v4310_v31 = vcombine.low %v8889_v46, %v4151_v11  ;;  %v4311_v7 = vcombine.high %v8889_v46, %v4151_v11  ;;  %v6186_v44 = vpop.f32.mrb[41].mxu0  ;;  %v4370_v46 = vrot.slane %v4362_v1, %v8156_v27  ;;  %v4377_v9 = vrot.slane %v4363_v6, %v8156_v27 }
 0x86d   : > { %v4154_v23 = vpop.f32.mrb[42].mxu0 }
 0x86e   : > { %v4318_v57 = vrot.slane %v4310_v31, %v8156_v27  ;;  %v4325_v3 = vrot.slane %v4311_v7, %v8156_v27  ;;  %v4378_v42 = vcombine.low %v8901_v20, %v4154_v23  ;;  %v4379_v61 = vcombine.high %v8901_v20, %v4154_v23  ;;  %v6187_v29 = vpop.f32.mrb[43].mxu0 }
 0x870   : > { %v4326_v24 = vcombine.low %v4302_v55, %v4318_v57  ;;  %v4327_v19 = vcombine.high %v4302_v55, %v4318_v57  ;;  %v4342_v12 = vcombine.low %v4309_v5, %v4325_v3  ;;  %v4343_v48 = vcombine.high %v4309_v5, %v4325_v3 }
 0x871   : > { %v4386_v30 = vrot.slane %v4378_v42, %v8156_v27  ;;  %v4393_v49 = vrot.slane %v4379_v61, %v8156_v27 }
 0x872   : > { %v4334_v45 = vrot.slane %v4326_v24, %v8165_v41  ;;  %v4341_v2 = vrot.slane %v4327_v19, %v8165_v41  ;;  %v4350_v4 = vrot.slane %v4342_v12, %v8165_v41  ;;  %v4357_v20 = vrot.slane %v4343_v48, %v8165_v41  ;;  %v6560_v48 = vld [vmem:[%s7986_s2 + $0x38] sm:$0xff]  }
 0x873   : > { %v4394_v43 = vcombine.low %v4370_v46, %v4386_v30  ;;  %v4395_v54 = vcombine.high %v4370_v46, %v4386_v30  ;;  %v4410_v40 = vcombine.low %v4377_v9, %v4393_v49  ;;  %v4411_v32 = vcombine.high %v4377_v9, %v4393_v49  ;;  %6202 = vmatprep.subr.bf16.mxu1 %v6560_v48 }
 0x874   : > { %v4566_v26 = vcombine.low %v4334_v45, %v4341_v2  ;;  %v5897_v35 = vcombine.high %v4334_v45, %v4341_v2  ;;  %v4582_v22 = vcombine.low %v4350_v4, %v4357_v20  ;;  %v5898_v62 = vcombine.high %v4350_v4, %v4357_v20  ;;  %6203 = vmatpush3.bf16.msra.mxu1 %v6560_v48 }
 0x875   : > { %v4402_v53 = vrot.slane %v4394_v43, %v8165_v41  ;;  %v4409_v51 = vrot.slane %v4395_v54, %v8165_v41  ;;  %v4418_v60 = vrot.slane %v4410_v40, %v8165_v41  ;;  %v4425_v17 = vrot.slane %v4411_v32, %v8165_v41 }
 0x876   : > { %v4573_v0 = vrot.slane %v4566_v26, %v8156_v27  ;;  %v4581_v36 = vrot.slane %v5897_v35, %v8156_v27  ;;  %v4589_v10 = vrot.slane %v4582_v22, %v8156_v27  ;;  %v4597_v39 = vrot.slane %v5898_v62, %v8156_v27 }
 0x877   : > { %v4634_v14 = vcombine.low %v4402_v53, %v4409_v51  ;;  %v5899_v15 = vcombine.high %v4402_v53, %v4409_v51  ;;  %v4650_v56 = vcombine.low %v4418_v60, %v4425_v17  ;;  %v5900_v34 = vcombine.high %v4418_v60, %v4425_v17 }
 0x878   : > { %v4599_v37 = vcombine.high %v4573_v0, %v4581_v36  ;;  %v4615_v28 = vcombine.high %v4589_v10, %v4597_v39  ;;  %v4598_v18 = vcombine.low %v4573_v0, %v4581_v36  ;;  %v4614_v13 = vcombine.low %v4589_v10, %v4597_v39 }
 0x879   : > { %v4641_v59 = vrot.slane %v4634_v14, %v8156_v27  ;;  %v4649_v1 = vrot.slane %v5899_v15, %v8156_v27  ;;  %v4657_v6 = vrot.slane %v4650_v56, %v8156_v27  ;;  %v4665_v25 = vrot.slane %v5900_v34, %v8156_v27 }
 0x87a   : > { %v4613_v11 = vrot.slane %v4599_v37, %v8165_v41  ;;  %v4629_v31 = vrot.slane %v4615_v28, %v8165_v41  ;;  %v4606_v7 = vrot.slane %v4598_v18, %v8165_v41  ;;  %v4622_v44 = vrot.slane %v4614_v13, %v8165_v41 }
 0x87b   : > { %v4667_v55 = vcombine.high %v4641_v59, %v4649_v1  ;;  %v4683_v5 = vcombine.high %v4657_v6, %v4665_v25  ;;  %v4666_v23 = vcombine.low %v4641_v59, %v4649_v1  ;;  %v4682_v57 = vcombine.low %v4657_v6, %v4665_v25 }
 0x87c   : > { %v4632_v3 = vcombine.low %v4613_v11, %v4629_v31  ;;  %v4630_v42 = vcombine.low %v4606_v7, %v4622_v44  ;;  %v4631_v61 = vcombine.high %v4606_v7, %v4622_v44  ;;  %v4633_v29 = vcombine.high %v4613_v11, %v4629_v31  ;;  %v6657_v7 = vld [vmem:[#allocation2] sm:$0xff] }
 0x87d   : > { %v4681_v27 = vrot.slane %v4667_v55, %v8165_v41  ;;  %v4697_v24 = vrot.slane %v4683_v5, %v8165_v41  ;;  %v4674_v19 = vrot.slane %v4666_v23, %v8165_v41  ;;  %v4690_v12 = vrot.slane %v4682_v57, %v8165_v41  ;;  %v6658_v55 = vld [vmem:[#allocation2 + $0x8] sm:$0xff]  ;;  %v6659_v57 = vld [vmem:[#allocation2 + $0x10] sm:$0xff] }
 0x87f   : > { %v4700_v46 = vcombine.low %v4681_v27, %v4697_v24  ;;  %v4699_v9 = vcombine.high %v4674_v19, %v4690_v12  ;;  %v4698_v30 = vcombine.low %v4674_v19, %v4690_v12  ;;  %v4701_v49 = vcombine.high %v4681_v27, %v4697_v24 }
 0x881   : > { %v6511_v45 = vpack.i.bf16 %v4700_v46, %v4632_v3  ;;  %v6501_v2 = vpack.i.bf16 %v4699_v9, %v4631_v61  ;;  %v6516_v4 = vpack.i.bf16 %v4701_v49, %v4633_v29  ;;  %v6561_v29 = vld [vmem:[%s8001_s10] sm:$0xff]  }
 0x882   : > { %6208 = vmatprep.subr.bf16.mxu0 %v6561_v29 }
 0x883   : > { %6512 = vrot.lane.b32.xlu1 %v6511_v45, %s7309_s19  ;;  %6502 = vrot.lane.b32.xlu0 %v6501_v2, %s7311_s4 }
 0x884   : > { %6209 = vmatpush3.bf16.msra.mxu0 %v6561_v29  ;;  %v6575_v29 = vld [vmem:[%s8009_s5 + $0x30] sm:$0xff]  }
 0x887   : > { %6517 = vrot.lane.b32.xlu1 %v6516_v4, %s7310_s18  ;;  %6507 = vrot.lane.b32.xlu0 %v8922_v63, %s7310_s18 }
 0x8ba   : > { %v6493_v41 = vpop.permute.xlu1 %6492 }
 0x8bb   : > { %v6495_v43 = vunpack.i.h.bf16 %v6493_v41  ;;  %v6494_v54 = vunpack.i.l.bf16 %v6493_v41 }
 0x8bd   : > { %v4750_v63 = vsel %vm3244_vm9, %v4494_v8, %v6494_v54  ;;  %v4751_v0 = vsel %vm3244_vm9, %v4562_v33, %v6495_v43 }
 0x8be   : > { %v6498_v20 = vpop.permute.xlu1 %6497 }
 0x8bf   : > { %v6500_v22 = vunpack.i.h.bf16 %v6498_v20  ;;  %v6499_v62 = vunpack.i.l.bf16 %v6498_v20 }
 0x8c1   : > { %v4755_v34 = vsel %vm4754_vm11, %v4750_v63, %v6499_v62  ;;  %v4756_v37 = vsel %vm4754_vm11, %v4751_v0, %v6500_v22  ;;  %v6566_v22 = vld [vmem:[%s8001_s10 + $0x28] sm:$0xff]   ;;  %v6567_v62 = vld [vmem:[%s8001_s10 + $0x30] sm:$0xff]   ;;  %v6572_v63 = vld [vmem:[%s8009_s5 + $0x18] sm:$0xff]  }
 0x8c2   : > { %v6573_v0 = vld [vmem:[%s8009_s5 + $0x20] sm:$0xff]  }
 0x8f5   : > { %v6513_v40 = vpop.permute.xlu1 %6512  ;;  %v6503_v32 = vpop.permute.xlu0 %6502 }
 0x8f6   : > { %v6505_v26 = vunpack.i.h.bf16 %v6503_v32  ;;  %v6504_v35 = vunpack.i.l.bf16 %v6503_v32  ;;  %v6515_v53 = vunpack.i.h.bf16 %v6513_v40  ;;  %v6514_v51 = vunpack.i.l.bf16 %v6513_v40  ;;  %v6562_v40 = vld [vmem:[%s8001_s10 + $0x8] sm:$0xff]   ;;  %v6563_v32 = vld [vmem:[%s8001_s10 + $0x10] sm:$0xff]  }
 0x8f7   : > { %6210 = vmatprep.subr.bf16.mxu0 %v6562_v40 }
 0x8f8   : > { %v4752_v60 = vsel %vm3244_vm9, %v4630_v42, %v6504_v35  ;;  %v4753_v17 = vsel %vm3244_vm9, %v4698_v30, %v6505_v26  ;;  %v6660_v42 = vld [vmem:[#allocation2 + $0x18] sm:$0xff]  ;;  %6211 = vmatpush3.bf16.msra.mxu0 %v6562_v40  ;;  %v5921_v40 = vld [vmem:[%s886_s26] ss:$0 sm:$0xff] }
 0x8f9   : > { %v6518_v36 = vpop.permute.xlu1 %6517  ;;  %v6508_v10 = vpop.permute.xlu0 %6507  ;;  %v4757_v28 = vsel %vm4754_vm11, %v4752_v60, %v6514_v51  ;;  %v4758_v18 = vsel %vm4754_vm11, %v4753_v17, %v6515_v53  ;;  %6212 = vmatprep.subr.bf16.mxu0 %v6563_v32  ;;  %v6564_v26 = vld [vmem:[%s8001_s10 + $0x18] sm:$0xff]   ;;  %v6565_v35 = vld [vmem:[%s8001_s10 + $0x20] sm:$0xff]   ;;  %v6570_v51 = vld [vmem:[%s8009_s5 + $0x8] sm:$0xff]  }
 0x8fa   : > { %v6520_v39 = vunpack.i.h.bf16 %v6518_v36  ;;  %v6519_v14 = vunpack.i.l.bf16 %v6518_v36  ;;  %v6510_v15 = vunpack.i.h.bf16 %v6508_v10  ;;  %v6509_v56 = vunpack.i.l.bf16 %v6508_v10  ;;  %v6569_v53 = vld [vmem:[%s8009_s5] sm:$0xff]   ;;  %v6568_v60 = vld [vmem:[%s8001_s10 + $0x38] sm:$0xff]   ;;  %v6574_v36 = vld [vmem:[%s8009_s5 + $0x28] sm:$0xff]  }
 0x8fb   : > { %6228 = vmatprep.subr.bf16.mxu1 %v6569_v53  ;;  %v6571_v17 = vld [vmem:[%s8009_s5 + $0x10] sm:$0xff]  }
 0x8fc   : > { %v4762_v52 = vsel %vm4759_vm12, %v4757_v28, %v6519_v14  ;;  %v4763_v21 = vsel %vm4759_vm12, %v4758_v18, %v6520_v39  ;;  %v4760_v8 = vsel %vm4759_vm12, %v4755_v34, %v6509_v56  ;;  %v4761_v13 = vsel %vm4759_vm12, %v4756_v37, %v6510_v15  ;;  %6213 = vmatpush3.bf16.msra.mxu0 %v6563_v32 }
 0x8fd   : > { %v4765_v38 = vpack.c.bf16 %v4763_v21, %v4762_v52  ;;  %v4764_v58 = vpack.c.bf16 %v4761_v13, %v4760_v8  ;;  %6214 = vmatprep.subr.bf16.mxu0 %v6564_v26 }
 0x8ff   : > { %6204 = vmatprep.mubr.bf16.mxu1 %v4764_v58 }
 0x900   : > { %6205 = vmatmul.mubr.bf16.vlgmr.msra.gmra.mrb[32].mxu1 %v4765_v38  ;;  %6215 = vmatpush3.bf16.msra.mxu0 %v6564_v26  ;;  %v5910_v38 = vld [vmem:[%s844_s25] ss:$0 sm:$0xff] }
 0x901   : > { %6216 = vmatprep.subr.bf16.mxu0 %v6565_v35  ;;  %6229 = vmatpush3.bf16.msra.mxu1 %v6569_v53 }
 0x902   : > { %6230 = vmatprep.subr.bf16.mxu1 %v6570_v51 }
 0x904   : > { %6217 = vmatpush3.bf16.msra.mxu0 %v6565_v35 }
 0x905   : > { %6218 = vmatprep.subr.bf16.mxu0 %v6566_v22  ;;  %6231 = vmatpush3.bf16.msra.mxu1 %v6570_v51 }
 0x906   : > { %6232 = vmatprep.subr.bf16.mxu1 %v6571_v17 }
 0x908   : > { %6219 = vmatpush3.bf16.msra.mxu0 %v6566_v22 }
 0x909   : > { %6220 = vmatprep.subr.bf16.mxu0 %v6567_v62  ;;  %6233 = vmatpush3.bf16.msra.mxu1 %v6571_v17 }
 0x90a   : > { %6234 = vmatprep.subr.bf16.mxu1 %v6572_v63 }
 0x90c   : > { %6221 = vmatpush3.bf16.msra.mxu0 %v6567_v62 }
 0x90d   : > { %6222 = vmatprep.subr.bf16.mxu0 %v6568_v60  ;;  %6235 = vmatpush3.bf16.msra.mxu1 %v6572_v63 }
 0x90e   : > { %6236 = vmatprep.subr.bf16.mxu1 %v6573_v0 }
 0x910   : > { %6223 = vmatpush3.bf16.msra.mxu0 %v6568_v60 }
 0x911   : > { %6237 = vmatpush3.bf16.msra.mxu1 %v6573_v0 }
 0x912   : > { %6238 = vmatprep.subr.bf16.mxu1 %v6574_v36 }
 0x915   : > { %6239 = vmatpush3.bf16.msra.mxu1 %v6574_v36 }
 0x916   : > { %6240 = vmatprep.subr.bf16.mxu1 %v6575_v29 }
 0x919   : > { %6241 = vmatpush3.bf16.msra.mxu1 %v6575_v29  ;;  %v5931_v29 = vld [vmem:[%s902_s30] ss:$0 sm:$0xff] }
 0x9d3   : > { %v6206_v33 = vpop.f32.mrb[32].mxu1 }
 0x9d4   : > { %v4871_v59 = vpop.f32.mrb[33].mxu1  ;;  %v4880_v11 = vadd.f32 %v6206_v33, %v5901_v16 }
 0x9d5   : > { %v4872_v1 = vadd.f32 %v5901_v16, %v4871_v59  ;;  %v6207_v6 = vpop.f32.mrb[34].mxu1 }
 0x9d6   : > { %v4874_v25 = vpop.f32.mrb[35].mxu1  ;;  %v4883_v23 = vadd.f32 %v6207_v6, %v5901_v16  ;;  %v4888_v3 = vadd.f32 %v6659_v57, %v4880_v11  ;;  %v5911_v6 = vld [vmem:[%s852_s21] ss:$0 sm:$0xff] }
 0x9d7   : > { %v4875_v31 = vadd.f32 %v5901_v16, %v4874_v25  ;;  %v4886_v44 = vadd.f32 %v6657_v7, %v4872_v1 }
 0x9d8   : > { %v4889_v61 = vadd.f32 %v6660_v42, %v4883_v23 }
 0x9d9   : > { %4892 = vadd.xlane.f32.xlu0 %v4886_v44  ;;  %v4887_v5 = vadd.f32 %v6658_v55, %v4875_v31 }
 0x9db   : > { %4894 = vadd.xlane.f32.xlu1 %v4887_v5 }
 0x9dd   : > { %4896 = vadd.xlane.f32.xlu0 %v4888_v3 }
 0x9e1   : > { %4898 = vadd.xlane.f32.xlu0 %v4889_v61 }
 0xa66   : > { %v4893_v27 = vpop.xlane.xlu0 %4892 }
 0xa67   : > { %v4901_v24 = vmul.f32 0.0078125, %v4893_v27  ;;  %v6576_v27 = vld [vmem:[%s8009_s5 + $0x38] sm:$0xff]  }
 0xa68   : > { %v4895_v19 = vpop.xlane.xlu1 %4894  ;;  %6242 = vmatprep.subr.bf16.mxu1 %v6576_v27 }
 0xa69   : > { %v8989_v12 = vsub.f32 %v4886_v44, %v4901_v24  ;;  %v4902_v48 = vmul.f32 0.0078125, %v4895_v19  ;;  %6243 = vmatpush3.bf16.msra.mxu1 %v6576_v27  ;;  %v5912_v24 = vld [vmem:[%s869_s1] ss:$0 sm:$0xff] }
 0xa6a   : > { %v4897_v46 = vpop.xlane.xlu0 %4896 }
 0xa6b   : > { %v8991_v9 = vsub.f32 %v4887_v5, %v4902_v48  ;;  %v4903_v30 = vmul.f32 0.0078125, %v4897_v46  ;;  %v4909_v49 = vmul.f32 %v8989_v12, %v8989_v12 }
 0xa6d   : > { %v8995_v45 = vsub.f32 %v4888_v3, %v4903_v30  ;;  %4913 = vadd.xlane.f32.xlu1 %v4909_v49  ;;  %v4910_v2 = vmul.f32 %v8991_v9, %v8991_v9 }
 0xa6e   : > { %v4899_v4 = vpop.xlane.xlu0 %4898 }
 0xa6f   : > { %v4904_v41 = vmul.f32 0.0078125, %v4899_v4  ;;  %4915 = vadd.xlane.f32.xlu0 %v4910_v2  ;;  %v4911_v20 = vmul.f32 %v8995_v45, %v8995_v45 }
 0xa71   : > { %v9001_v43 = vsub.f32 %v4889_v61, %v4904_v41  ;;  %4917 = vadd.xlane.f32.xlu1 %v4911_v20 }
 0xa73   : > { %v4912_v54 = vmul.f32 %v9001_v43, %v9001_v43 }
 0xa75   : > { %4919 = vadd.xlane.f32.xlu0 %v4912_v54 }
 0xafa   : > { %v4914_v10 = vpop.xlane.xlu1 %4913 }
 0xafb   : > { %v4921_v39 = vmul.f32 0.0078125, %v4914_v10 }
 0xafc   : > { %v4916_v14 = vpop.xlane.xlu0 %4915 }
 0xafd   : > { %v4925_v15 = vadd.f32 1e-05, %v4921_v39  ;;  %v4922_v56 = vmul.f32 0.0078125, %v4916_v14 }
 0xafe   : > { %v4918_v34 = vpop.xlane.xlu1 %4917 }
 0xaff   : > { %6641 = vrsqrt.f32 %v4925_v15  ;;  %v4926_v37 = vadd.f32 1e-05, %v4922_v56  ;;  %v4923_v28 = vmul.f32 0.0078125, %v4918_v34 }
 0xb01   : > { %6643 = vrsqrt.f32 %v4926_v37  ;;  %v4927_v18 = vadd.f32 1e-05, %v4923_v28 }
 0xb02   : > { %v4920_v52 = vpop.xlane.xlu0 %4919 }
 0xb03   : > { %6645 = vrsqrt.f32 %v4927_v18  ;;  %v4924_v21 = vmul.f32 0.0078125, %v4920_v52 }
 0xb05   : > { %v4928_v8 = vadd.f32 1e-05, %v4924_v21 }
 0xb07   : > { %6647 = vrsqrt.f32 %v4928_v8 }
 0xb09   : > { %v6642_v13 = vpop.eup %6641 }
 0xb0a   : > { %v4933_v58 = vmul.f32 %v6642_v13, %v8989_v12 }
 0xb0b   : > { %v6644_v16 = vpop.eup %6643 }
 0xb0c   : > { %v4934_v33 = vmul.f32 %v6644_v16, %v8991_v9  ;;  %v4943_v59 = vmul.f32 %v5910_v38, %v4933_v58 }
 0xb0d   : > { %v6646_v1 = vpop.eup %6645 }
 0xb0e   : > { %v4935_v25 = vmul.f32 %v6646_v1, %v8995_v45  ;;  %v4944_v11 = vmul.f32 %v5910_v38, %v4934_v33  ;;  %v4953_v31 = vadd.f32 %v5911_v6, %v4943_v59 }
 0xb10   : > { %v4954_v7 = vadd.f32 %v5911_v6, %v4944_v11  ;;  %v4945_v23 = vmul.f32 %v5910_v38, %v4935_v25 }
 0xb11   : > { %v6648_v44 = vpop.eup %6647 }
 0xb12   : > { %v4936_v55 = vmul.f32 %v6648_v44, %v9001_v43  ;;  %v4957_v5 = vpack.c.bf16 %v4954_v7, %v4953_v31  ;;  %v4955_v3 = vadd.f32 %v5911_v6, %v4945_v23 }
 0xb14   : > { %6224 = vmatprep.mubr.bf16.mxu0 %v4957_v5  ;;  %v4946_v57 = vmul.f32 %v5910_v38, %v4936_v55 }
 0xb16   : > { %v4956_v42 = vadd.f32 %v5911_v6, %v4946_v57 }
 0xb18   : > { %v4958_v61 = vpack.c.bf16 %v4956_v42, %v4955_v3 }
 0xb1a   : > { %6225 = vmatmul.mubr.bf16.vlgmr.msra.gmra.mrb[44].mxu0 %v4958_v61 }
 0xbed   : > { %v6226_v19 = vpop.f32.mrb[44].mxu0 }
 0xbee   : > { %v5073_v12 = vadd.f32 %v6226_v19, %v5912_v24  ;;  %v5064_v48 = vpop.f32.mrb[45].mxu0 }
 0xbef   : > { %v5065_v46 = vadd.f32 %v5912_v24, %v5064_v48  ;;  %v6227_v9 = vpop.f32.mrb[46].mxu0 }
 0xbf0   : > { %v5076_v30 = vadd.f32 %v6227_v9, %v5912_v24  ;;  %v5067_v49 = vpop.f32.mrb[47].mxu0  ;;  %v5081_v2 = vmax.f32 %v5073_v12, 0.0 }
 0xbf1   : > { %v5068_v45 = vadd.f32 %v5912_v24, %v5067_v49  ;;  %v5079_v41 = vmax.f32 %v5065_v46, 0.0 }
 0xbf2   : > { %v5082_v4 = vmax.f32 %v5076_v30, 0.0 }
 0xbf3   : > { %v5080_v20 = vmax.f32 %v5068_v45, 0.0 }
 0xbf4   : > { %v5084_v43 = vpack.c.bf16 %v5082_v4, %v5081_v2 }
 0xbf5   : > { %v5083_v54 = vpack.c.bf16 %v5080_v20, %v5079_v41  ;;  %v6661_v20 = vld [vmem:[#allocation27 + $0x4] ss:$8 sps:$4 sm:$0xff] (!%p5932_p3)  }
 0xbf6   : > { %5393 = vmatprep.subr.bf16.mxu0 (!%p5932_p3), %v6661_v20  ;;  %6296 = vmatprep.subr.bf16.mxu1 (!%p5932_p3), %v6661_v20 }
 0xbf7   : > { %6244 = vmatprep.mubr.bf16.mxu1 %v5083_v54  ;;  %v7316_v54 = vmov (!%p5932_p3), 0  }
 0xbf8   : > { %6245 = vmatmul.mubr.bf16.vlgmr.msra.gmra.mrb[36].mxu1 %v5084_v43  ;;  %v6663_v43 = vld [vmem:[#allocation27] ss:$8 sps:$4 sm:$0xff] (!%p5932_p3)   ;;  %5425 = vmatprep.mubr.bf16.mxu0 (!%p5932_p3), %v7316_v54 }
 0xbf9   : > { %5435 = vmatprep.mubr.bf16.mxu1 (!%p5932_p3), %v7316_v54  ;;  %5394 = vmatpush1.bf16.msra.mxu0 (!%p5932_p3), %v6663_v43 }
 0xbfa   : > { %6304 = vmatpush1.bf16.msra.mxu1 (!%p5932_p3), %v6663_v43 }
 0xccb   : > { %v6246_v32 = vpop.f32.mrb[36].mxu1 }
 0xccc   : > { %v5190_v26 = vpop.f32.mrb[37].mxu1  ;;  %v5199_v53 = vadd.f32 %v6246_v32, %v5921_v40  ;;  %v6666_v32 = vld [vmem:[#allocation27 + $0x10] ss:$8 sps:$4 sm:$0xff] (!%p5932_p3)  }
 0xccd   : > { %v5191_v35 = vadd.f32 %v5921_v40, %v5190_v26  ;;  %v6247_v22 = vpop.f32.mrb[38].mxu1  ;;  %v6667_v26 = vld [vmem:[#allocation27 + $0x24] ss:$8 sps:$4 sm:$0xff] (!%p5932_p3)  }
 0xcce   : > { %v5193_v62 = vpop.f32.mrb[39].mxu1  ;;  %v5202_v17 = vadd.f32 %v6247_v22, %v5921_v40  ;;  %v5207_v0 = vadd.f32 %v5199_v53, %v4955_v3  ;;  %v5930_v3 = vld [vmem:[%s894_s20] ss:$0 sm:$0xff]  ;;  %v6673_v53 = vld [vmem:[#allocation27 + $0x44] ss:$8 sps:$4 sm:$0xff] (!%p5932_p3)  }
 0xccf   : > { %v5194_v51 = vadd.f32 %v5921_v40, %v5193_v62  ;;  %v5205_v60 = vadd.f32 %v5191_v35, %v4953_v31  ;;  %v6664_v40 = vld [vmem:[#allocation27 + $0x14] ss:$8 sps:$4 sm:$0xff] (!%p5932_p3)   ;;  %v6669_v35 = vld [vmem:[#allocation27 + $0x20] ss:$8 sps:$4 sm:$0xff] (!%p5932_p3)   ;;  %v6672_v62 = vld [vmem:[#allocation27 + $0x30] ss:$8 sps:$4 sm:$0xff] (!%p5932_p3)  }
 0xcd0   : > { %v5208_v36 = vadd.f32 %v5202_v17, %v4956_v42  ;;  %5395 = vmatprep.subr.bf16.mxu0 (!%p5932_p3), %v6664_v40  ;;  %6297 = vmatprep.subr.bf16.mxu1 (!%p5932_p3), %v6664_v40  ;;  %v6670_v22 = vld [vmem:[#allocation27 + $0x34] ss:$8 sps:$4 sm:$0xff] (!%p5932_p3)   ;;  %v6678_v17 = vld [vmem:[#allocation27 + $0x50] ss:$8 sps:$4 sm:$0xff] (!%p5932_p3)  }
 0xcd1   : > { %5211 = vadd.xlane.f32.xlu1 %v5205_v60  ;;  %v5206_v63 = vadd.f32 %v5194_v51, %v4954_v7  ;;  %5396 = vmatpush1.bf16.msra.mxu0 (!%p5932_p3), %v6666_v32  ;;  %v6675_v51 = vld [vmem:[#allocation27 + $0x40] ss:$8 sps:$4 sm:$0xff] (!%p5932_p3)  }
 0xcd2   : > { %6305 = vmatpush1.bf16.msra.mxu1 (!%p5932_p3), %v6666_v32  ;;  %5397 = vmatprep.subr.bf16.mxu0 (!%p5932_p3), %v6667_v26 }
 0xcd3   : > { %5213 = vadd.xlane.f32.xlu0 %v5206_v63  ;;  %6298 = vmatprep.subr.bf16.mxu1 (!%p5932_p3), %v6667_v26 }
 0xcd5   : > { %5215 = vadd.xlane.f32.xlu1 %v5207_v0  ;;  %5398 = vmatpush1.bf16.msra.mxu0 (!%p5932_p3), %v6669_v35 }
 0xcd6   : > { %6306 = vmatpush1.bf16.msra.mxu1 (!%p5932_p3), %v6669_v35  ;;  %5399 = vmatprep.subr.bf16.mxu0 (!%p5932_p3), %v6670_v22 }
 0xcd7   : > { %5217 = vadd.xlane.f32.xlu0 %v5208_v36  ;;  %6299 = vmatprep.subr.bf16.mxu1 (!%p5932_p3), %v6670_v22 }
 0xcd9   : > { %5400 = vmatpush1.bf16.msra.mxu0 (!%p5932_p3), %v6672_v62 }
 0xcda   : > { %6307 = vmatpush1.bf16.msra.mxu1 (!%p5932_p3), %v6672_v62  ;;  %5401 = vmatprep.subr.bf16.mxu0 (!%p5932_p3), %v6673_v53 }
 0xcdb   : > { %6300 = vmatprep.subr.bf16.mxu1 (!%p5932_p3), %v6673_v53 }
 0xcdd   : > { %5402 = vmatpush1.bf16.msra.mxu0 (!%p5932_p3), %v6675_v51 }
 0xcde   : > { %6308 = vmatpush1.bf16.msra.mxu1 (!%p5932_p3), %v6675_v51 }
 0xd5e   : > { %v5212_v10 = vpop.xlane.xlu1 %5211 }
 0xd5f   : > { %v5219_v39 = vmul.f32 0.0078125, %v5212_v10  ;;  %v6684_v10 = vld [vmem:[#allocation27 + $0x70] ss:$8 sps:$4 sm:$0xff] (!%p5932_p3)  }
 0xd60   : > { %v5214_v14 = vpop.xlane.xlu0 %5213 }
 0xd61   : > { %v5223_v15 = vsub.f32 %v5205_v60, %v5219_v39  ;;  %v5220_v56 = vmul.f32 0.0078125, %v5214_v14  ;;  %v6676_v60 = vld [vmem:[#allocation27 + $0x54] ss:$8 sps:$4 sm:$0xff] (!%p5932_p3)  }
 0xd62   : > { %v5216_v34 = vpop.xlane.xlu1 %5215  ;;  %5403 = vmatprep.subr.bf16.mxu0 (!%p5932_p3), %v6676_v60  ;;  %6301 = vmatprep.subr.bf16.mxu1 (!%p5932_p3), %v6676_v60 }
 0xd63   : > { %v5224_v37 = vsub.f32 %v5206_v63, %v5220_v56  ;;  %v5221_v28 = vmul.f32 0.0078125, %v5216_v34  ;;  %v5227_v18 = vmul.f32 %v5223_v15, %v5223_v15  ;;  %v6679_v63 = vld [vmem:[#allocation27 + $0x64] ss:$8 sps:$4 sm:$0xff] (!%p5932_p3)   ;;  %5404 = vmatpush1.bf16.msra.mxu0 (!%p5932_p3), %v6678_v17  ;;  %6309 = vmatpush1.bf16.msra.mxu1 (!%p5932_p3), %v6678_v17  ;;  %v9224_v34 = vsub.s32 (!%p5932_p3), 1, %v8053_v47 }
 0xd64   : > { %v5218_v52 = vpop.xlane.xlu0 %5217  ;;  %5405 = vmatprep.subr.bf16.mxu0 (!%p5932_p3), %v6679_v63  ;;  %6302 = vmatprep.subr.bf16.mxu1 (!%p5932_p3), %v6679_v63 }
 0xd65   : > { %v5225_v21 = vsub.f32 %v5207_v0, %v5221_v28  ;;  %v5222_v8 = vmul.f32 0.0078125, %v5218_v52  ;;  %5231 = vadd.xlane.f32.xlu1 %v5227_v18  ;;  %v5228_v13 = vmul.f32 %v5224_v37, %v5224_v37  ;;  %v6681_v0 = vld [vmem:[#allocation27 + $0x60] ss:$8 sps:$4 sm:$0xff] (!%p5932_p3)  }
 0xd67   : > { %v5226_v38 = vsub.f32 %v5208_v36, %v5222_v8  ;;  %5233 = vadd.xlane.f32.xlu0 %v5228_v13  ;;  %v5229_v58 = vmul.f32 %v5225_v21, %v5225_v21  ;;  %v6682_v36 = vld [vmem:[#allocation27 + $0x74] ss:$8 sps:$4 sm:$0xff] (!%p5932_p3)   ;;  %5406 = vmatpush1.bf16.msra.mxu0 (!%p5932_p3), %v6681_v0 }
 0xd68   : > { %6310 = vmatpush1.bf16.msra.mxu1 (!%p5932_p3), %v6681_v0  ;;  %5407 = vmatprep.subr.bf16.mxu0 (!%p5932_p3), %v6682_v36 }
 0xd69   : > { %5235 = vadd.xlane.f32.xlu1 %v5229_v58  ;;  %v5230_v16 = vmul.f32 %v5226_v38, %v5226_v38  ;;  %6303 = vmatprep.subr.bf16.mxu1 (!%p5932_p3), %v6682_v36 }
 0xd6b   : > { %5237 = vadd.xlane.f32.xlu0 %v5230_v16  ;;  %5408 = vmatpush1.bf16.msra.mxu0 (!%p5932_p3), %v6684_v10 }
 0xd6c   : > { %6311 = vmatpush1.bf16.msra.mxu1 (!%p5932_p3), %v6684_v10 }
 0xdf2   : > { %v5232_v33 = vpop.xlane.xlu1 %5231 }
 0xdf3   : > { %v5239_v59 = vmul.f32 0.0078125, %v5232_v33 }
 0xdf4   : > { %v5234_v1 = vpop.xlane.xlu0 %5233 }
 0xdf5   : > { %v5243_v6 = vadd.f32 1e-05, %v5239_v59  ;;  %v5240_v25 = vmul.f32 0.0078125, %v5234_v1 }
 0xdf6   : > { %v5236_v11 = vpop.xlane.xlu1 %5235 }
 0xdf7   : > { %6649 = vrsqrt.f32 %v5243_v6  ;;  %v5244_v31 = vadd.f32 1e-05, %v5240_v25  ;;  %v5241_v7 = vmul.f32 0.0078125, %v5236_v11 }
 0xdf8   : > { %v5238_v44 = vpop.xlane.xlu0 %5237 }
 0xdf9   : > { %6651 = vrsqrt.f32 %v5244_v31  ;;  %v5245_v55 = vadd.f32 1e-05, %v5241_v7  ;;  %v5242_v5 = vmul.f32 0.0078125, %v5238_v44 }
 0xdfb   : > { %6653 = vrsqrt.f32 %v5245_v55  ;;  %v5246_v23 = vadd.f32 1e-05, %v5242_v5 }
 0xdfd   : > { %6655 = vrsqrt.f32 %v5246_v23 }
 0xe01   : > { %v6650_v57 = vpop.eup %6649 }
 0xe02   : > { %v5251_v42 = vmul.f32 %v6650_v57, %v5223_v15  ;;  %v5301_v15 = vld [vmem:[#allocation29] sm:$0x3] (!%p5932_p3) }
 0xe03   : > { %v6652_v61 = vpop.eup %6651  ;;  %v5306_v56 = vrot.slane (!%p5932_p3), %v5301_v15, %v1221_v50 }
 0xe04   : > { %v5261_v27 = vmul.f32 %v5930_v3, %v5251_v42  ;;  %v5252_v24 = vmul.f32 %v6652_v61, %v5224_v37  ;;  %v5310_v37 = vrot.slane (!%p5932_p3), %v5301_v15, %v9224_v34 }
 0xe05   : > { %v6654_v19 = vpop.eup %6653 }
 0xe06   : > { %v9036_v12 = vadd.f32 %v5931_v29, %v5261_v27  ;;  %v5262_v48 = vmul.f32 %v5930_v3, %v5252_v24  ;;  %v5253_v46 = vmul.f32 %v6654_v19, %v5225_v21 }
 0xe07   : > { %v6656_v9 = vpop.eup %6655 }
 0xe08   : > { %5275 = vst [vmem:[#allocation2] sm:$0xff] %v9036_v12  ;;  %v9039_v30 = vadd.f32 %v5931_v29, %v5262_v48  ;;  %v5263_v49 = vmul.f32 %v5930_v3, %v5253_v46  ;;  %v5254_v45 = vmul.f32 %v6656_v9, %v5226_v38  ;;  %5282 = sbr.rel (%p5932_p3) target bundleno = 3818 (0xeea), region = 164 }
 0xe0a   : > { %5276 = vst [vmem:[#allocation2 + $0x8] sm:$0xff] %v9039_v30  ;;  %v5273_v2 = vadd.f32 %v5931_v29, %v5263_v49  ;;  %v5264_v4 = vmul.f32 %v5930_v3, %v5254_v45  ;;  %v5283_v39 = vpack.c.bf16 (!%p5932_p3), %v9039_v30, %v9036_v12 }
 0xe0c   : > { %5277 = vst [vmem:[#allocation2 + $0x10] sm:$0xff] %v5273_v2  ;;  %v5274_v41 = vadd.f32 %v5931_v29, %v5264_v4  ;;  %5426 = vmatmul.mubr.bf16.vlgmr.msra.gmra.mrb[0].mxu0 (!%p5932_p3), %v5283_v39 }
 0xe0e   : > { %5278 = vst [vmem:[#allocation2 + $0x18] sm:$0xff] %v5274_v41  ;;  %v5284_v14 = vpack.c.bf16 (!%p5932_p3), %v5274_v41, %v5273_v2 }
 0xe10   : > { %5436 = vmatmul.mubr.bf16.vlgmr.msra.gmra.mrb[0].mxu1 %v5284_v14 }
 0xedf   : > { %v5427_v28 = vpop.f32.mrb[0].mxu0 }
 0xee0   : > { %v5428_v52 = vadd.f32 %v5427_v28, %v5306_v56  ;;  %v5429_v8 = vpop.f32.mrb[1].mxu0 }
 0xee1   : > { %v5430_v38 = vadd.f32 %v5429_v8, %v5310_v37  ;;  %v5431_v16 = vpop.f32.mrb[2].mxu0 }
 0xee2   : > { %5446 = vst [vmem:[#allocation30] sm:$0xff] %v5428_v52  ;;  %v5432_v59 = vadd.f32 %v5431_v16, %v5306_v56  ;;  %v5433_v6 = vpop.f32.mrb[3].mxu0 }
 0xee3   : > { %v5437_v18 = vpop.f32.mrb[0].mxu1  ;;  %5447 = vst [vmem:[#allocation30 + $0x8] sm:$0xff] %v5430_v38  ;;  %v5434_v47 = vadd.f32 %v5433_v6, %v5310_v37 }
 0xee4   : > { %v5438_v21 = vadd.f32 %v5437_v18, %v5306_v56  ;;  %v5439_v13 = vpop.f32.mrb[1].mxu1  ;;  %5448 = vst [vmem:[#allocation30 + $0x10] sm:$0xff] %v5432_v59 }
 0xee5   : > { %v5440_v58 = vadd.f32 %v5439_v13, %v5310_v37  ;;  %v5441_v33 = vpop.f32.mrb[2].mxu1  ;;  %5449 = vst [vmem:[#allocation30 + $0x18] sm:$0xff] %v5434_v47 }
 0xee6   : > { %5450 = vst [vmem:[#allocation30 + $0x20] sm:$0xff] %v5438_v21  ;;  %v5442_v1 = vadd.f32 %v5441_v33, %v5306_v56  ;;  %v5443_v25 = vpop.f32.mrb[3].mxu1 }
 0xee7   : > { %5451 = vst [vmem:[#allocation30 + $0x28] sm:$0xff] %v5440_v58  ;;  %v5444_v50 = vadd.f32 %v5443_v25, %v5310_v37 }
 0xee8   : > { %5452 = vst [vmem:[#allocation30 + $0x30] sm:$0xff] %v5442_v1 }
 0xee9   : > { %5453 = vst [vmem:[#allocation30 + $0x38] sm:$0xff] %v5444_v50 }
 0xeea PF: > { %s9225_s6 = sld [smem:[#allocation43_spill]]  ;;  %s7317_s8 = smov [#allocation30]  }
 0xeeb   : > { %s5460_s2 = sshll.u32 %s7317_s8, 4  ;;  %s5461_s2 = int_to_ptr.vmem [resolvable:$true] %s5460_s2 }
 0xeec   : > { %s7185_s27 = scalar_lea.vmem %s5461_s2, 1024  ;;  %p7192_p4 = scmp.lt.s32.totalorder %s5461_s2, %s5461_s2 }
 0xeed   : > { %p7186_p9 = scmp.ne.s32.totalorder %s5461_s2, %s7185_s27  ;;  %p7193_p13 = scmp.lt.s32.totalorder %s7185_s27, %s7185_s27 }
 0xeef   : > { %p7194_p0 = por %p7193_p13, %p7192_p4 }
 0xef0   : > { %p6430_p1 = scmp.eq.s32.totalorder %s9225_s6, 1 }
 0xef2   : > { %p7187_p8 = pnand %p7186_p9, %p6430_p1 }
 0xef4   : > { %p7188_p10 = pneg %p7187_p8 }
 0xef6   : > { %p7195_p12 = pnand %p7194_p0, %p7188_p10 }
 0xef8   : > { %7198 = shalt.err (!%p7195_p12)
}
 0xef9   : > { %s9226_s21 = sld [smem:[#allocation60_spill]] }
 0xeff   : > { %s7199_s17 = scalar_lea.hbm %s9226_s21, 1024 }
 0xf00   : > { %p7200_p11 = scmp.ne.s32.totalorder %s9226_s21, %s7199_s17  ;;  %p7205_p2 = scmp.lt.u32.totalorder %s7199_s17, %s9226_s21 }
 0xf02   : > { %p7201_p6 = pnand %p7200_p11, %p6430_p1 }
 0xf04   : > { %p7202_p7 = pneg %p7201_p6 }
 0xf06   : > { %p7207_p5 = pnand %p7205_p2, %p7202_p7 }
 0xf08   : > { %7210 = shalt.err (!%p7207_p5)
}
 0xf09   : > { %s7318_s26 = smov 256   ;;  %s7319_s7 = smov 16  }
 0xf0a   : > { %6363 = dma.vmem_to_hbm [thread:$0]  (%p6430_p1), %s5461_s2, 1024, %s9226_s21, [#allocation5], %s7318_s26, %s7318_s26, %s7319_s7  }
 0xf0b   : > { %7264 = dma.done.wait (%p6430_p1), [#allocation5], 1024  }
 0xf0c   : > { %7266 = vsyncadd (%p6430_p1), [#allocation5], 4294966272 }
 0xf0d PF: > { %s9227_s27 = sld [smem:[#allocation44_spill]]  ;;  %s9228_s24 = sld [smem:[#allocation41_spill]] }
 0xf0e   : > { %s9229_s25 = sld [smem:[#allocation42_spill]]  ;;  %s9230_s26 = sld [smem:[#allocation45_spill]] }
 0xf13   : > { %p46_p3 = scmp.ge.s32.totalorder %s9227_s27, 4  }
 0xf15   :  { %48 = sbr.rel (!%p46_p3) target bundleno = 31 (0x1f), region = 285 }
 0xf1c   :  { %5476 = vsyncpa [#allocation4], 1 }
 0xf1d   :  { %5478 = vsyncpa [#allocation4 + $0x1], 1 }
 0xf1e   :  { %5479 = vsyncpa [#allocation7], 1 }
 0xf1f   :  { %5480 = vsyncpa [#allocation10], 1 }
 0xf20   :  { %5482 = vsyncpa [#allocation10 + $0x1], 1 }
 0xf21   :  { %5483 = vsyncpa [#allocation13], 1 }
 0xf22   :  { %5485 = vsyncpa [#allocation13 + $0x1], 1 }
 0xf23   :  { %5486 = vsyncpa [#allocation16], 1 }
 0xf24   :  { %5488 = vsyncpa [#allocation16 + $0x1], 1 }
 0xf25   :  { %5489 = vsyncpa [#allocation19], 1 }
 0xf26   :  { %5491 = vsyncpa [#allocation19 + $0x1], 1 }
 0xf27   :  { %5492 = vsyncpa [#allocation22], 1 }
 0xf28   :  { %5494 = vsyncpa [#allocation22 + $0x1], 1 }
 0xf29   :  { %5495 = vsyncpa [#allocation25], 1 }
 0xf2a   :  { %5497 = vsyncpa [#allocation25 + $0x1], 1 }
 0xf2b   :  { %5498 = vsyncpa [#allocation28], 1 }
 0xf2c   :  { %5499 = vsyncpa [#allocation5], 1 }
 0xf2d   :  { %5501 = vsyncpa [#allocation5 + $0x1], 1 }

</bundles_post_ra>
